<compile_context>
chip_gen: v5e
topology: v5e:2x2
jax: 0.10.0
libtpu: 0.0.40
codegen_flags: <defaults>
</compile_context>

<pallas_src>
import jax
import jax.numpy as jnp
from jax import lax
from jax.experimental import pallas as pl
from jax.experimental.pallas import tpu as pltpu

EPS = 1e-3
VMEM_LIMIT = 32 * 1024 * 1024  # modest explicit scoped-VMEM budget (blocks are tiny)


def _round_up(x, m):
    return (x + m - 1) // m * m


# ----------------------------------------------------------------------------
# Kernel 1: spatial (1,k,k) conv + folded-BN shift + ReLU.
# One grid step = one (n,t) frame, flattened to rows. Each tap is a contiguous
# (M2, Cin) row-slice of the flat frame -> pure 2D slices + MXU dots, no
# im2col tensor in HBM and no in-kernel reshapes.
# ----------------------------------------------------------------------------
def _make_spatial_kernel(k, s, Wp, M2, Cin, Cpad):
    def kernel(x_ref, w_ref, shift_ref, o_ref):
        # x_ref:     (1, Pflat, Cin)  bf16  (zero-padded, flattened frame)
        # w_ref:     (k*k, Cin, Cpad) bf16  (BN scale folded in)
        # shift_ref: (1, Cpad)        f32
        # o_ref:     (1, M2, Cpad)    bf16
        acc = jnp.zeros((M2, Cpad), jnp.float32)
        for kh in range(k):
            for kw in range(k):
                o = kh * Wp + kw
                if s == 1:
                    lhs = x_ref[0, o:o + M2, :]          # contiguous rows
                else:
                    lhs = x_ref[0, pl.ds(o, M2, s), :]   # strided rows
                acc = acc + jnp.dot(lhs, w_ref[kh * k + kw],
                                    preferred_element_type=jnp.float32)
        y = jnp.maximum(acc + shift_ref[...], 0.0)
        o_ref[0] = y.astype(o_ref.dtype)
    return kernel


# ----------------------------------------------------------------------------
# Kernel 2: temporal (k,1,1) conv + folded-BN shift + ReLU.
# Grid (N, To, kt): kt is the reduction axis ("arbitrary", last) with a VMEM
# f32 accumulator. Temporal padding handled with a clamped index_map plus a
# validity pl.when.
# ----------------------------------------------------------------------------
def _make_temporal_kernel(k, s, p, T):
    def kernel(y_ref, w_ref, shift_ref, o_ref, acc_ref):
        # y_ref: (1,1,M2,Cpad) bf16, w_ref: (1,Cpad,Cpad) bf16 (BN-scaled)
        # shift_ref: (1,Cpad) f32, o_ref: (1,1,M2,Cpad) f32, acc_ref: (M2,Cpad) f32
        to = pl.program_id(1)
        kt = pl.program_id(2)

        @pl.when(kt == 0)
        def _init():
            acc_ref[...] = jnp.zeros_like(acc_ref)

        t_in = to * s + kt - p
        valid = jnp.logical_and(t_in >= 0, t_in < T)

        @pl.when(valid)
        def _accumulate():
            acc_ref[...] += jnp.dot(y_ref[0, 0], w_ref[0],
                                    preferred_element_type=jnp.float32)

        @pl.when(kt == k - 1)
        def _finalize():
            o_ref[0, 0] = jnp.maximum(acc_ref[...] + shift_ref[...], 0.0
                                      ).astype(o_ref.dtype)
    return kernel


# ----------------------------------------------------------------------------
# STConv3d forward
# ----------------------------------------------------------------------------
def _fold_bn(gamma, beta, mean, var, conv_bias):
    scale = gamma / jnp.sqrt(var + EPS)
    shift = beta + (conv_bias - mean) * scale
    return scale, shift


def st_conv3d_forward(x, params, kernel_size, stride, padding):
    """x: (N, Cin, T, H, W) float32 -> (N, Cout, To, Ho, Wo) float32."""
    k, s, p = kernel_size, stride, padding
    w1, b1 = params["w1"], params["b1"]          # (Cout, Cin, 1, k, k), (Cout,)
    w2, b2 = params["w2"], params["b2"]          # (Cout, Cout, k, 1, 1), (Cout,)
    Cout = w1.shape[0]
    assert w2.shape[0] == Cout and w2.shape[1] == Cout

    N, Cin, T, H, W = x.shape
    Ho = (H + 2 * p - k) // s + 1
    Wo = (W + 2 * p - k) // s + 1
    To = (T + 2 * p - k) // s + 1
    Hp, Wp = H + 2 * p, W + 2 * p
    Cpad = _round_up(Cout, 128)                  # lane-dense output channels
    M2 = Ho * Wp                                 # acc rows per frame (incl. junk cols)

    # flat-row coverage: tap slice row j reads x_flat[s*j + kh*Wp + kw];
    # pad a few extra zero rows at the bottom so every tap slice is in-bounds.
    o_max = (k - 1) * Wp + (k - 1)
    rows_needed = o_max + s * (M2 - 1) + 1
    pad_h_extra = max(0, -(-(rows_needed - Hp * Wp) // Wp))   # ceil-div
    Pflat = (Hp + pad_h_extra) * Wp

    scale1, shift1 = _fold_bn(params["g1"], params["be1"],
                              params["m1"], params["v1"], b1)
    scale2, shift2 = _fold_bn(params["g2"], params["be2"],
                              params["m2"], params["v2"], b2)

    # --- weights: fold BN scale, pad Cout->Cpad with zeros, cast to bf16 ---
    # w1: (Cout, Cin, 1, kh, kw) -> (kh, kw, Cin, Cout) -> (k*k, Cin, Cout)
    w1m = jnp.transpose(w1[:, :, 0], (2, 3, 1, 0)).reshape(k * k, Cin, Cout)
    w1m = w1m * scale1[None, None, :]
    w1m = jnp.pad(w1m, ((0, 0), (0, 0), (0, Cpad - Cout))).astype(jnp.bfloat16)
    shift1p = jnp.pad(shift1, (0, Cpad - Cout)).reshape(1, Cpad).astype(jnp.float32)

    # w2: (Cout, Cin=Cout, kt, 1, 1) -> (kt, Cin, Cout); pad both channel dims
    w2m = jnp.transpose(w2[:, :, :, 0, 0], (2, 1, 0))
    w2m = w2m * scale2[None, None, :]
    w2m = jnp.pad(w2m, ((0, 0), (0, Cpad - Cout), (0, Cpad - Cout))
                  ).astype(jnp.bfloat16)
    shift2p = jnp.pad(shift2, (0, Cpad - Cout)).reshape(1, Cpad).astype(jnp.float32)

    # --- input: channels-last, spatially zero-padded, flattened rows, bf16 ---
    # TODO(synk): if the surrounding network kept activations channels-last,
    # this transpose and the final output transpose would disappear.
    xt = jnp.transpose(x, (0, 2, 3, 4, 1))                         # (N,T,H,W,Cin)
    xp = jnp.pad(xt, ((0, 0), (0, 0), (p, p + pad_h_extra), (p, p), (0, 0)))
    xp = xp.astype(jnp.bfloat16).reshape(N * T, Pflat, Cin)

    # --- kernel 1: spatial conv + BN + ReLU -------------------------------
    y1 = pl.pallas_call(
        _make_spatial_kernel(k, s, Wp, M2, Cin, Cpad),
        out_shape=jax.ShapeDtypeStruct((N * T, M2, Cpad), jnp.bfloat16),
        grid_spec=pltpu.PrefetchScalarGridSpec(
            num_scalar_prefetch=0,
            grid=(N * T,),
            in_specs=[
                pl.BlockSpec((1, Pflat, Cin), lambda i: (i, 0, 0)),
                pl.BlockSpec((k * k, Cin, Cpad), lambda i: (0, 0, 0)),   # resident
                pl.BlockSpec((1, Cpad), lambda i: (0, 0)),               # resident
            ],
            out_specs=pl.BlockSpec((1, M2, Cpad), lambda i: (i, 0, 0)),
        ),
        compiler_params=pltpu.CompilerParams(
            dimension_semantics=("parallel",),
            vmem_limit_bytes=VMEM_LIMIT),
    )(xp, w1m, shift1p)

    # --- kernel 2: temporal conv + BN + ReLU ------------------------------
    y1r = y1.reshape(N, T, M2, Cpad)             # metadata-only reshape

    def y_index_map(n, to, kt):
        # clamp to a valid frame; out-of-range taps are skipped in-kernel
        return (n, jnp.clip(to * s + kt - p, 0, T - 1), 0, 0)

    y2 = pl.pallas_call(
        _make_temporal_kernel(k, s, p, T),
        out_shape=jax.ShapeDtypeStruct((N, To, M2, Cpad), jnp.float32),
        grid_spec=pltpu.PrefetchScalarGridSpec(
            num_scalar_prefetch=0,
            grid=(N, To, k),
            in_specs=[
                pl.BlockSpec((1, 1, M2, Cpad), y_index_map),
                pl.BlockSpec((1, Cpad, Cpad), lambda n, to, kt: (kt, 0, 0)),
                pl.BlockSpec((1, Cpad), lambda n, to, kt: (0, 0)),
            ],
            out_specs=pl.BlockSpec((1, 1, M2, Cpad),
                                   lambda n, to, kt: (n, to, 0, 0)),
            scratch_shapes=[pltpu.VMEM((M2, Cpad), jnp.float32)],
        ),
        compiler_params=pltpu.CompilerParams(
            dimension_semantics=("parallel", "parallel", "arbitrary"),
            vmem_limit_bytes=VMEM_LIMIT),
    )(y1r, w2m, shift2p)

    # drop junk columns + padded channels (fuses with the mandatory transpose)
    y2 = y2.reshape(N, To, Ho, Wp, Cpad)[:, :, :, :Wo, :Cout]
    return jnp.transpose(y2, (0, 4, 1, 2, 3))


# ----------------------------------------------------------------------------
# Pure-JAX reference (for correctness check)
# ----------------------------------------------------------------------------
def ref_forward(x, params, kernel_size, stride, padding):
    k, s, p = kernel_size, stride, padding

    def bn_relu(y, g, be, m, v):
        y = (y - m[None, :, None, None, None]) / jnp.sqrt(v + EPS)[None, :, None, None, None]
        y = y * g[None, :, None, None, None] + be[None, :, None, None, None]
        return jnp.maximum(y, 0.0)

    y = lax.conv_general_dilated(
        x, params["w1"], window_strides=(1, s, s),
        padding=[(0, 0), (p, p), (p, p)],
        dimension_numbers=("NCDHW", "OIDHW", "NCDHW"))
    y = y + params["b1"][None, :, None, None, None]
    y = bn_relu(y, params["g1"], params["be1"], params["m1"], params["v1"])
    y = lax.conv_general_dilated(
        y, params["w2"], window_strides=(s, 1, 1),
        padding=[(p, p), (0, 0), (0, 0)],
        dimension_numbers=("NCDHW", "OIDHW", "NCDHW"))
    y = y + params["b2"][None, :, None, None, None]
    y = bn_relu(y, params["g2"], params["be2"], params["m2"], params["v2"])
    return y


# ----------------------------------------------------------------------------
def init_params(key, in_planes, out_planes, kernel_size):
    k = kernel_size
    ks = jax.random.split(key, 8)
    return {
        "w1": 0.1 * jax.random.normal(ks[0], (out_planes, in_planes, 1, k, k), jnp.float32),
        "b1": 0.1 * jax.random.normal(ks[1], (out_planes,), jnp.float32),
        "w2": 0.1 * jax.random.normal(ks[2], (out_planes, out_planes, k, 1, 1), jnp.float32),
        "b2": 0.1 * jax.random.normal(ks[3], (out_planes,), jnp.float32),
        # BatchNorm3d(affine=True), eval mode with deterministic running stats
        "g1": 1.0 + 0.1 * jax.random.normal(ks[4], (out_planes,), jnp.float32),
        "be1": 0.1 * jax.random.normal(ks[5], (out_planes,), jnp.float32),
        "m1": jnp.zeros((out_planes,), jnp.float32),
        "v1": jnp.ones((out_planes,), jnp.float32),
        "g2": 1.0 + 0.1 * jax.random.normal(ks[6], (out_planes,), jnp.float32),
        "be2": 0.1 * jax.random.normal(ks[7], (out_planes,), jnp.float32),
        "m2": jnp.zeros((out_planes,), jnp.float32),
        "v2": jnp.ones((out_planes,), jnp.float32),
    }


if __name__ == "__main__":
    in_planes, out_planes = 4, 8
    kernel_size, stride, padding = 3, 1, 1
    N, T, H, W = 2, 8, 16, 16

    key = jax.random.PRNGKey(0)
    kx, kp = jax.random.split(key)
    x = jax.random.normal(kx, (N, in_planes, T, H, W), jnp.float32)
    params = init_params(kp, in_planes, out_planes, kernel_size)

    fwd = jax.jit(lambda x, p: st_conv3d_forward(x, p, kernel_size, stride, padding))
    out = jax.block_until_ready(fwd(x, params))

    ref = ref_forward(x, params, kernel_size, stride, padding)
    assert out.shape == ref.shape == (N, out_planes, T, H, W), (out.shape, ref.shape)
    # bf16 MXU inputs + bf16 intermediate activation -> tolerance relaxed vs f32
    err = float(jnp.max(jnp.abs(out - ref)))
    assert jnp.allclose(out, ref, atol=2e-2, rtol=2e-2), err

    print("KERNEL_OK")
</pallas_src>

<mosaic_0001>
module attributes {stable_mosaic.version = 11 : i64} {
  func.func @kernel(%arg0: i32, %arg1: memref<1x342x4xbf16, #tpu.memory_space<vmem>>, %arg2: memref<9x4x128xbf16, #tpu.memory_space<vmem>>, %arg3: memref<1x128xf32, #tpu.memory_space<vmem>>, %arg4: memref<1x288x128xbf16, #tpu.memory_space<vmem>>) attributes {dimension_semantics = [#tpu.dimension_semantics<parallel>], iteration_bounds = array<i64: 16>, scalar_prefetch = 0 : i64, scratch_operands = 0 : i64, tpu.core_type = #tpu.core_type<tc>, window_params = [{transform_indices = @transform_0, window_bounds = array<i64: 1, 342, 4>}, {pipeline_mode = #tpu.pipeline_mode<synchronous>, transform_indices = @transform_1, window_bounds = array<i64: 9, 4, 128>}, {pipeline_mode = #tpu.pipeline_mode<synchronous>, transform_indices = @transform_2, window_bounds = array<i64: 1, 128>}, {transform_indices = @transform_3, window_bounds = array<i64: 1, 288, 128>}]} {
    %cst = arith.constant 0.000000e+00 : f32
    %0 = vector.broadcast %cst : f32 to vector<288x128xf32>
    %c0 = arith.constant 0 : index
    %c0_0 = arith.constant 0 : index
    %c0_1 = arith.constant 0 : index
    %1 = vector.load %arg1[%c0, %c0_0, %c0_1] : memref<1x342x4xbf16, #tpu.memory_space<vmem>>, vector<1x288x4xbf16>
    %2 = vector.shape_cast %1 : vector<1x288x4xbf16> to vector<288x4xbf16>
    %c0_2 = arith.constant 0 : index
    %c0_3 = arith.constant 0 : index
    %c0_4 = arith.constant 0 : index
    %3 = vector.load %arg2[%c0_2, %c0_3, %c0_4] : memref<9x4x128xbf16, #tpu.memory_space<vmem>>, vector<1x4x128xbf16>
    %4 = vector.shape_cast %3 : vector<1x4x128xbf16> to vector<4x128xbf16>
    %cst_5 = arith.constant dense<0.000000e+00> : vector<288x128xf32>
    %5 = tpu.matmul %2, %4, %cst_5 {dimension_numbers = #tpu.dot_dimension_numbers<[1], [0], [0], [1], [0, 0, 1, 1], [], []>} : vector<288x4xbf16>, vector<4x128xbf16>, vector<288x128xf32> -> vector<288x128xf32>
    %6 = arith.addf %0, %5 : vector<288x128xf32>
    %c0_6 = arith.constant 0 : index
    %c1 = arith.constant 1 : index
    %c0_7 = arith.constant 0 : index
    %7 = vector.load %arg1[%c0_6, %c1, %c0_7] : memref<1x342x4xbf16, #tpu.memory_space<vmem>>, vector<1x288x4xbf16>
    %8 = vector.shape_cast %7 : vector<1x288x4xbf16> to vector<288x4xbf16>
    %c1_8 = arith.constant 1 : index
    %c0_9 = arith.constant 0 : index
    %c0_10 = arith.constant 0 : index
    %9 = vector.load %arg2[%c1_8, %c0_9, %c0_10] : memref<9x4x128xbf16, #tpu.memory_space<vmem>>, vector<1x4x128xbf16>
    %10 = vector.shape_cast %9 : vector<1x4x128xbf16> to vector<4x128xbf16>
    %cst_11 = arith.constant dense<0.000000e+00> : vector<288x128xf32>
    %11 = tpu.matmul %8, %10, %cst_11 {dimension_numbers = #tpu.dot_dimension_numbers<[1], [0], [0], [1], [0, 0, 1, 1], [], []>} : vector<288x4xbf16>, vector<4x128xbf16>, vector<288x128xf32> -> vector<288x128xf32>
    %12 = arith.addf %6, %11 : vector<288x128xf32>
    %c0_12 = arith.constant 0 : index
    %c2 = arith.constant 2 : index
    %c0_13 = arith.constant 0 : index
    %13 = vector.load %arg1[%c0_12, %c2, %c0_13] : memref<1x342x4xbf16, #tpu.memory_space<vmem>>, vector<1x288x4xbf16>
    %14 = vector.shape_cast %13 : vector<1x288x4xbf16> to vector<288x4xbf16>
    %c2_14 = arith.constant 2 : index
    %c0_15 = arith.constant 0 : index
    %c0_16 = arith.constant 0 : index
    %15 = vector.load %arg2[%c2_14, %c0_15, %c0_16] : memref<9x4x128xbf16, #tpu.memory_space<vmem>>, vector<1x4x128xbf16>
    %16 = vector.shape_cast %15 : vector<1x4x128xbf16> to vector<4x128xbf16>
    %cst_17 = arith.constant dense<0.000000e+00> : vector<288x128xf32>
    %17 = tpu.matmul %14, %16, %cst_17 {dimension_numbers = #tpu.dot_dimension_numbers<[1], [0], [0], [1], [0, 0, 1, 1], [], []>} : vector<288x4xbf16>, vector<4x128xbf16>, vector<288x128xf32> -> vector<288x128xf32>
    %18 = arith.addf %12, %17 : vector<288x128xf32>
    %c0_18 = arith.constant 0 : index
    %c18 = arith.constant 18 : index
    %c0_19 = arith.constant 0 : index
    %19 = vector.load %arg1[%c0_18, %c18, %c0_19] : memref<1x342x4xbf16, #tpu.memory_space<vmem>>, vector<1x288x4xbf16>
    %20 = vector.shape_cast %19 : vector<1x288x4xbf16> to vector<288x4xbf16>
    %c3 = arith.constant 3 : index
    %c0_20 = arith.constant 0 : index
    %c0_21 = arith.constant 0 : index
    %21 = vector.load %arg2[%c3, %c0_20, %c0_21] : memref<9x4x128xbf16, #tpu.memory_space<vmem>>, vector<1x4x128xbf16>
    %22 = vector.shape_cast %21 : vector<1x4x128xbf16> to vector<4x128xbf16>
    %cst_22 = arith.constant dense<0.000000e+00> : vector<288x128xf32>
    %23 = tpu.matmul %20, %22, %cst_22 {dimension_numbers = #tpu.dot_dimension_numbers<[1], [0], [0], [1], [0, 0, 1, 1], [], []>} : vector<288x4xbf16>, vector<4x128xbf16>, vector<288x128xf32> -> vector<288x128xf32>
    %24 = arith.addf %18, %23 : vector<288x128xf32>
    %c0_23 = arith.constant 0 : index
    %c19 = arith.constant 19 : index
    %c0_24 = arith.constant 0 : index
    %25 = vector.load %arg1[%c0_23, %c19, %c0_24] : memref<1x342x4xbf16, #tpu.memory_space<vmem>>, vector<1x288x4xbf16>
    %26 = vector.shape_cast %25 : vector<1x288x4xbf16> to vector<288x4xbf16>
    %c4 = arith.constant 4 : index
    %c0_25 = arith.constant 0 : index
    %c0_26 = arith.constant 0 : index
    %27 = vector.load %arg2[%c4, %c0_25, %c0_26] : memref<9x4x128xbf16, #tpu.memory_space<vmem>>, vector<1x4x128xbf16>
    %28 = vector.shape_cast %27 : vector<1x4x128xbf16> to vector<4x128xbf16>
    %cst_27 = arith.constant dense<0.000000e+00> : vector<288x128xf32>
    %29 = tpu.matmul %26, %28, %cst_27 {dimension_numbers = #tpu.dot_dimension_numbers<[1], [0], [0], [1], [0, 0, 1, 1], [], []>} : vector<288x4xbf16>, vector<4x128xbf16>, vector<288x128xf32> -> vector<288x128xf32>
    %30 = arith.addf %24, %29 : vector<288x128xf32>
    %c0_28 = arith.constant 0 : index
    %c20 = arith.constant 20 : index
    %c0_29 = arith.constant 0 : index
    %31 = vector.load %arg1[%c0_28, %c20, %c0_29] : memref<1x342x4xbf16, #tpu.memory_space<vmem>>, vector<1x288x4xbf16>
    %32 = vector.shape_cast %31 : vector<1x288x4xbf16> to vector<288x4xbf16>
    %c5 = arith.constant 5 : index
    %c0_30 = arith.constant 0 : index
    %c0_31 = arith.constant 0 : index
    %33 = vector.load %arg2[%c5, %c0_30, %c0_31] : memref<9x4x128xbf16, #tpu.memory_space<vmem>>, vector<1x4x128xbf16>
    %34 = vector.shape_cast %33 : vector<1x4x128xbf16> to vector<4x128xbf16>
    %cst_32 = arith.constant dense<0.000000e+00> : vector<288x128xf32>
    %35 = tpu.matmul %32, %34, %cst_32 {dimension_numbers = #tpu.dot_dimension_numbers<[1], [0], [0], [1], [0, 0, 1, 1], [], []>} : vector<288x4xbf16>, vector<4x128xbf16>, vector<288x128xf32> -> vector<288x128xf32>
    %36 = arith.addf %30, %35 : vector<288x128xf32>
    %c0_33 = arith.constant 0 : index
    %c36 = arith.constant 36 : index
    %c0_34 = arith.constant 0 : index
    %37 = vector.load %arg1[%c0_33, %c36, %c0_34] : memref<1x342x4xbf16, #tpu.memory_space<vmem>>, vector<1x288x4xbf16>
    %38 = vector.shape_cast %37 : vector<1x288x4xbf16> to vector<288x4xbf16>
    %c6 = arith.constant 6 : index
    %c0_35 = arith.constant 0 : index
    %c0_36 = arith.constant 0 : index
    %39 = vector.load %arg2[%c6, %c0_35, %c0_36] : memref<9x4x128xbf16, #tpu.memory_space<vmem>>, vector<1x4x128xbf16>
    %40 = vector.shape_cast %39 : vector<1x4x128xbf16> to vector<4x128xbf16>
    %cst_37 = arith.constant dense<0.000000e+00> : vector<288x128xf32>
    %41 = tpu.matmul %38, %40, %cst_37 {dimension_numbers = #tpu.dot_dimension_numbers<[1], [0], [0], [1], [0, 0, 1, 1], [], []>} : vector<288x4xbf16>, vector<4x128xbf16>, vector<288x128xf32> -> vector<288x128xf32>
    %42 = arith.addf %36, %41 : vector<288x128xf32>
    %c0_38 = arith.constant 0 : index
    %c37 = arith.constant 37 : index
    %c0_39 = arith.constant 0 : index
    %43 = vector.load %arg1[%c0_38, %c37, %c0_39] : memref<1x342x4xbf16, #tpu.memory_space<vmem>>, vector<1x288x4xbf16>
    %44 = vector.shape_cast %43 : vector<1x288x4xbf16> to vector<288x4xbf16>
    %c7 = arith.constant 7 : index
    %c0_40 = arith.constant 0 : index
    %c0_41 = arith.constant 0 : index
    %45 = vector.load %arg2[%c7, %c0_40, %c0_41] : memref<9x4x128xbf16, #tpu.memory_space<vmem>>, vector<1x4x128xbf16>
    %46 = vector.shape_cast %45 : vector<1x4x128xbf16> to vector<4x128xbf16>
    %cst_42 = arith.constant dense<0.000000e+00> : vector<288x128xf32>
    %47 = tpu.matmul %44, %46, %cst_42 {dimension_numbers = #tpu.dot_dimension_numbers<[1], [0], [0], [1], [0, 0, 1, 1], [], []>} : vector<288x4xbf16>, vector<4x128xbf16>, vector<288x128xf32> -> vector<288x128xf32>
    %48 = arith.addf %42, %47 : vector<288x128xf32>
    %c0_43 = arith.constant 0 : index
    %c38 = arith.constant 38 : index
    %c0_44 = arith.constant 0 : index
    %49 = vector.load %arg1[%c0_43, %c38, %c0_44] : memref<1x342x4xbf16, #tpu.memory_space<vmem>>, vector<1x288x4xbf16>
    %50 = vector.shape_cast %49 : vector<1x288x4xbf16> to vector<288x4xbf16>
    %c8 = arith.constant 8 : index
    %c0_45 = arith.constant 0 : index
    %c0_46 = arith.constant 0 : index
    %51 = vector.load %arg2[%c8, %c0_45, %c0_46] : memref<9x4x128xbf16, #tpu.memory_space<vmem>>, vector<1x4x128xbf16>
    %52 = vector.shape_cast %51 : vector<1x4x128xbf16> to vector<4x128xbf16>
    %cst_47 = arith.constant dense<0.000000e+00> : vector<288x128xf32>
    %53 = tpu.matmul %50, %52, %cst_47 {dimension_numbers = #tpu.dot_dimension_numbers<[1], [0], [0], [1], [0, 0, 1, 1], [], []>} : vector<288x4xbf16>, vector<4x128xbf16>, vector<288x128xf32> -> vector<288x128xf32>
    %54 = arith.addf %48, %53 : vector<288x128xf32>
    %c0_48 = arith.constant 0 : index
    %c0_49 = arith.constant 0 : index
    %55 = vector.load %arg3[%c0_48, %c0_49] : memref<1x128xf32, #tpu.memory_space<vmem>>, vector<1x128xf32>
    %56 = vector.broadcast %55 : vector<1x128xf32> to vector<288x128xf32>
    %57 = arith.addf %54, %56 : vector<288x128xf32>
    %cst_50 = arith.constant 0.000000e+00 : f32
    %58 = vector.broadcast %cst_50 : f32 to vector<288x128xf32>
    %59 = arith.maximumf %57, %58 : vector<288x128xf32>
    %60 = arith.truncf %59 : vector<288x128xf32> to vector<288x128xbf16>
    %c0_51 = arith.constant 0 : index
    %c0_52 = arith.constant 0 : index
    %c0_53 = arith.constant 0 : index
    %61 = vector.load %arg4[%c0_51, %c0_52, %c0_53] : memref<1x288x128xbf16, #tpu.memory_space<vmem>>, vector<1x288x128xbf16>
    %62 = vector.shape_cast %61 : vector<1x288x128xbf16> to vector<288x128xbf16>
    %63 = vector.shape_cast %60 : vector<288x128xbf16> to vector<1x288x128xbf16>
    tpu.vector_store %arg4[%c0_51, %c0_52, %c0_53], %63 {strides = array<i32>} : memref<1x288x128xbf16, #tpu.memory_space<vmem>>, vector<1x288x128xbf16>,
    return
  }
  func.func @transform_0(%arg0: i32) -> (i32, i32, i32) {
    %c0_i32 = arith.constant 0 : i32
    %c0_i32_0 = arith.constant 0 : i32
    %c0_i32_1 = arith.constant 0 : i32
    return %arg0, %c0_i32, %c0_i32_0 : i32, i32, i32
  }
  func.func @transform_1(%arg0: i32) -> (i32, i32, i32) {
    %c0_i32 = arith.constant 0 : i32
    %c0_i32_0 = arith.constant 0 : i32
    %c0_i32_1 = arith.constant 0 : i32
    %c0_i32_2 = arith.constant 0 : i32
    return %c0_i32, %c0_i32_0, %c0_i32_1 : i32, i32, i32
  }
  func.func @transform_2(%arg0: i32) -> (i32, i32) {
    %c0_i32 = arith.constant 0 : i32
    %c0_i32_0 = arith.constant 0 : i32
    %c0_i32_1 = arith.constant 0 : i32
    return %c0_i32, %c0_i32_0 : i32, i32
  }
  func.func @transform_3(%arg0: i32) -> (i32, i32, i32) {
    %c0_i32 = arith.constant 0 : i32
    %c0_i32_0 = arith.constant 0 : i32
    %c0_i32_1 = arith.constant 0 : i32
    return %arg0, %c0_i32, %c0_i32_0 : i32, i32, i32
  }
}

module attributes {stable_mosaic.version = 11 : i64} {
  func.func @kernel(%arg0: i32, %arg1: i32, %arg2: i32, %arg3: memref<1x1x288x128xbf16, #tpu.memory_space<vmem>>, %arg4: memref<1x128x128xbf16, #tpu.memory_space<vmem>>, %arg5: memref<1x128xf32, #tpu.memory_space<vmem>>, %arg6: memref<1x1x288x128xf32, #tpu.memory_space<vmem>>, %arg7: memref<288x128xf32, #tpu.memory_space<vmem>>) attributes {dimension_semantics = [#tpu.dimension_semantics<parallel>, #tpu.dimension_semantics<parallel>, #tpu.dimension_semantics<arbitrary>], iteration_bounds = array<i64: 2, 8, 3>, scalar_prefetch = 0 : i64, scratch_operands = 1 : i64, tpu.core_type = #tpu.core_type<tc>, window_params = [{transform_indices = @transform_0, window_bounds = array<i64: 1, 1, 288, 128>}, {transform_indices = @transform_1, window_bounds = array<i64: 1, 128, 128>}, {pipeline_mode = #tpu.pipeline_mode<synchronous>, transform_indices = @transform_2, window_bounds = array<i64: 1, 128>}, {transform_indices = @transform_3, window_bounds = array<i64: 1, 1, 288, 128>}]} {
    %c0_i32 = arith.constant 0 : i32
    %0 = arith.cmpi eq, %arg2, %c0_i32 : i32
    %1 = arith.extui %0 : i1 to i32
    %c0_i32_0 = arith.constant 0 : i32
    %2 = arith.cmpi ne, %1, %c0_i32_0 : i32
    scf.if %2 {
      %cst = arith.constant 0.000000e+00 : f32
      %14 = vector.broadcast %cst : f32 to vector<288x128xf32>
      %c0 = arith.constant 0 : index
      %c0_5 = arith.constant 0 : index
      %15 = vector.load %arg7[%c0, %c0_5] : memref<288x128xf32, #tpu.memory_space<vmem>>, vector<288x128xf32>
      tpu.vector_store %arg7[%c0, %c0_5], %14 {strides = array<i32>} : memref<288x128xf32, #tpu.memory_space<vmem>>, vector<288x128xf32>,
    } else {
    }
    %c1_i32 = arith.constant 1 : i32
    %3 = arith.muli %arg1, %c1_i32 : i32
    %4 = arith.addi %3, %arg2 : i32
    %c1_i32_1 = arith.constant 1 : i32
    %5 = arith.subi %4, %c1_i32_1 : i32
    %c0_i32_2 = arith.constant 0 : i32
    %6 = arith.cmpi sge, %5, %c0_i32_2 : i32
    %c8_i32 = arith.constant 8 : i32
    %7 = arith.cmpi slt, %5, %c8_i32 : i32
    %8 = arith.andi %6, %7 : i1
    %9 = arith.extui %8 : i1 to i32
    %c0_i32_3 = arith.constant 0 : i32
    %10 = arith.cmpi ne, %9, %c0_i32_3 : i32
    scf.if %10 {
      %c0 = arith.constant 0 : index
      %c0_5 = arith.constant 0 : index
      %14 = vector.load %arg7[%c0, %c0_5] : memref<288x128xf32, #tpu.memory_space<vmem>>, vector<288x128xf32>
      %c0_6 = arith.constant 0 : index
      %c0_7 = arith.constant 0 : index
      %c0_8 = arith.constant 0 : index
      %c0_9 = arith.constant 0 : index
      %15 = vector.load %arg3[%c0_6, %c0_7, %c0_8, %c0_9] : memref<1x1x288x128xbf16, #tpu.memory_space<vmem>>, vector<1x1x288x128xbf16>
      %16 = vector.shape_cast %15 : vector<1x1x288x128xbf16> to vector<288x128xbf16>
      %c0_10 = arith.constant 0 : index
      %c0_11 = arith.constant 0 : index
      %c0_12 = arith.constant 0 : index
      %17 = vector.load %arg4[%c0_10, %c0_11, %c0_12] : memref<1x128x128xbf16, #tpu.memory_space<vmem>>, vector<1x128x128xbf16>
      %18 = vector.shape_cast %17 : vector<1x128x128xbf16> to vector<128x128xbf16>
      %cst = arith.constant dense<0.000000e+00> : vector<288x128xf32>
      %19 = tpu.matmul %16, %18, %cst {dimension_numbers = #tpu.dot_dimension_numbers<[1], [0], [0], [1], [0, 0, 1, 1], [], []>} : vector<288x128xbf16>, vector<128x128xbf16>, vector<288x128xf32> -> vector<288x128xf32>
      %20 = arith.addf %14, %19 : vector<288x128xf32>
      %c0_13 = arith.constant 0 : index
      %c0_14 = arith.constant 0 : index
      %21 = vector.load %arg7[%c0_13, %c0_14] : memref<288x128xf32, #tpu.memory_space<vmem>>, vector<288x128xf32>
      tpu.vector_store %arg7[%c0_13, %c0_14], %20 {strides = array<i32>} : memref<288x128xf32, #tpu.memory_space<vmem>>, vector<288x128xf32>,
    } else {
    }
    %c2_i32 = arith.constant 2 : i32
    %11 = arith.cmpi eq, %arg2, %c2_i32 : i32
    %12 = arith.extui %11 : i1 to i32
    %c0_i32_4 = arith.constant 0 : i32
    %13 = arith.cmpi ne, %12, %c0_i32_4 : i32
    scf.if %13 {
      %c0 = arith.constant 0 : index
      %c0_5 = arith.constant 0 : index
      %14 = vector.load %arg7[%c0, %c0_5] : memref<288x128xf32, #tpu.memory_space<vmem>>, vector<288x128xf32>
      %c0_6 = arith.constant 0 : index
      %c0_7 = arith.constant 0 : index
      %15 = vector.load %arg5[%c0_6, %c0_7] : memref<1x128xf32, #tpu.memory_space<vmem>>, vector<1x128xf32>
      %16 = vector.broadcast %15 : vector<1x128xf32> to vector<288x128xf32>
      %17 = arith.addf %14, %16 : vector<288x128xf32>
      %cst = arith.constant 0.000000e+00 : f32
      %18 = vector.broadcast %cst : f32 to vector<288x128xf32>
      %19 = arith.maximumf %17, %18 : vector<288x128xf32>
      %c0_8 = arith.constant 0 : index
      %c0_9 = arith.constant 0 : index
      %c0_10 = arith.constant 0 : index
      %c0_11 = arith.constant 0 : index
      %20 = vector.load %arg6[%c0_8, %c0_9, %c0_10, %c0_11] : memref<1x1x288x128xf32, #tpu.memory_space<vmem>>, vector<1x1x288x128xf32>
      %21 = vector.shape_cast %20 : vector<1x1x288x128xf32> to vector<288x128xf32>
      %22 = vector.shape_cast %19 : vector<288x128xf32> to vector<1x1x288x128xf32>
      tpu.vector_store %arg6[%c0_8, %c0_9, %c0_10, %c0_11], %22 {strides = array<i32>} : memref<1x1x288x128xf32, #tpu.memory_space<vmem>>, vector<1x1x288x128xf32>,
    } else {
    }
    return
  }
  func.func @transform_0(%arg0: i32, %arg1: i32, %arg2: i32) -> (i32, i32, i32, i32) {
    %c1_i32 = arith.constant 1 : i32
    %0 = arith.muli %arg1, %c1_i32 : i32
    %1 = arith.addi %0, %arg2 : i32
    %c1_i32_0 = arith.constant 1 : i32
    %2 = arith.subi %1, %c1_i32_0 : i32
    %c0_i32 = arith.constant 0 : i32
    %c7_i32 = arith.constant 7 : i32
    %3 = arith.maxsi %c0_i32, %2 : i32
    %4 = arith.minsi %c7_i32, %3 : i32
    %c0_i32_1 = arith.constant 0 : i32
    %c0_i32_2 = arith.constant 0 : i32
    %c0_i32_3 = arith.constant 0 : i32
    return %arg0, %4, %c0_i32_1, %c0_i32_2 : i32, i32, i32, i32
  }
  func.func @transform_1(%arg0: i32, %arg1: i32, %arg2: i32) -> (i32, i32, i32) {
    %c0_i32 = arith.constant 0 : i32
    %c0_i32_0 = arith.constant 0 : i32
    %c0_i32_1 = arith.constant 0 : i32
    return %arg2, %c0_i32, %c0_i32_0 : i32, i32, i32
  }
  func.func @transform_2(%arg0: i32, %arg1: i32, %arg2: i32) -> (i32, i32) {
    %c0_i32 = arith.constant 0 : i32
    %c0_i32_0 = arith.constant 0 : i32
    %c0_i32_1 = arith.constant 0 : i32
    return %c0_i32, %c0_i32_0 : i32, i32
  }
  func.func @transform_3(%arg0: i32, %arg1: i32, %arg2: i32) -> (i32, i32, i32, i32) {
    %c0_i32 = arith.constant 0 : i32
    %c0_i32_0 = arith.constant 0 : i32
    %c0_i32_1 = arith.constant 0 : i32
    return %arg0, %arg1, %c0_i32, %c0_i32_0 : i32, i32, i32, i32
  }
}

</mosaic_0001>

<bundles_post_ra>
// kernel: _lambda_.3
= control target key start
LH: loop header
LB: loop body
LE: loop exit
PB: predicated region body
PF: predicated region fallthrough
CT: control target
= control target key end

     0   :  { %s1335_s12 = smov 0   ;;  %s1337_s13 = smov 0   ;;  %s1535_s0 = inlined_call_operand.vmem [shape: bf16[2,8,288,128], index: 0, kind: input, shape index: {}]   ;;  %s1536_s1 = inlined_call_operand.vmem [shape: bf16[3,128,128], index: 1, kind: input, shape index: {}]   ;;  %s1537_s2 = inlined_call_operand.vmem [shape: f32[1,128], index: 2, kind: input, shape index: {}]   ;;  %s1538_s3 = inlined_call_operand.vmem [shape: f32[2,8,288,128], index: 3, kind: output, shape index: {}]  }
   0x1   :  { %s1339_s14 = smov 0   ;;  %s1341_s15 = smov 0  }
   0x2   :  { %s1343_s16 = smov 0   ;;  %s1345_s17 = smov 0  }
   0x3   :  { %s1347_s18 = smov 0  }
   0x4 LB: > { %s25_s19 = sadd.s32 1, %s1300_s15  ;;  %s28_s20 = sadd.s32 1, %s1304_s16  ;;  %s1312_s18 = sphi %s1347_s18, %s13_s18   ;;  %s1308_s17 = sphi %s1345_s17, %s1546_s17   ;;  %s1304_s16 = sphi %s1343_s16, %s1545_s16   ;;  %s1300_s15 = sphi %s1341_s15, %s1544_s15   ;;  %s1296_s14 = sphi %s1339_s14, %s1543_s14   ;;  %s1292_s13 = sphi %s1337_s13, %s1542_s13   ;;  %s1288_s12 = sphi %s1335_s12, %s1541_s12  }
   0x5   : > { %p26_p0 = scmp.ge.s32.totalorder %s25_s19, 3  ;;  %p1020_p1 = scmp.ge.s32.totalorder %s1312_s18, 1 }
   0x6   : > { %p198_p2 = scmp.lt.s32.totalorder %s1312_s18, 49  ;;  %s32_s21 = sadd.s32 1, %s1308_s17 }
   0x7   : > { %s1548_s19 = smov (%p26_p0, %s25_s19), 0  ;;  %s1550_s20 = smov (!%p26_p0, %s28_s20), %s1304_s16 }
   0x8   : > { %p199_p3 = pnand %p1020_p1, %p198_p2  ;;  %p30_p4 = scmp.ge.s32.totalorder %s1550_s20, 8 }
   0x9   : > { %s241_s22 = sadd.s32 (!%p199_p3), %s1288_s12, %s1292_s13  ;;  %p247_p6 = scmp.lt.s32.totalorder (!%p199_p3), %s1296_s14, 1 }
   0xa   : > { %s1552_s20 = smov (%p30_p4, %s1550_s20), 0  ;;  %s1554_s21 = smov (!%p30_p4, %s32_s21), %s1308_s17 }
   0xb   : > { %p34_p5 = scmp.ge.s32.totalorder %s1554_s21, 2  ;;  %202 = sbr.rel (%p199_p3) target bundleno = 363 (0x16b), region = 32 }
   0xc   : > { %s1383_s23 = sadd.s32 (!%p199_p3), 4294967295, %s241_s22  ;;  %p262_p7 = scmp.lt.s32.totalorder (!%p199_p3), %s1288_s12, 2 }
   0xd   : > { %s1556_s21 = smov (%p34_p5, %s1554_s21), 0  ;;  %p243_p8 = scmp.gt.s32.totalorder (!%p199_p3), %s1383_s23, 0 }
   0xe   : > { %1539 = sst [smem:[#allocation3_spill]] %s1556_s21  ;;  %p1022_p9 = scmp.lt.s32.totalorder (!%p199_p3), %s1383_s23, 7 }
   0xf   : > { %p269_p11 = scmp.lt.s32.totalorder (!%p199_p3), %s1292_s13, 7  ;;  %p1031_p12 = scmp.ne.s32.totalorder (!%p199_p3), %s1288_s12, 0 }
  0x10   : > { %s1558_s14 = smov (!%p247_p6, %s1296_s14), 1 }
  0x11   : > { %s244_s24 = scalar_select %p243_p8, %s1383_s23, 0 }
  0x12   : > { %s263_s25 = scalar_select %p262_p7, %s1288_s12, 2 }
  0x13   : > { %s1560_s24 = smov (!%p1022_p9, %s244_s24), 7  ;;  %s1198_s26 = smul.u32 288, %s1558_s14 }
  0x14   : > { %p249_p10 = scmp.lt.s32.totalorder %s1560_s24, 7  ;;  %s1146_s27 = sshll.u32 %s263_s25, 6 }
  0x15   : > { %s1394_s30 = scalar_lea.vmem %s1536_s1, %s1146_s27  ;;  %s1564_s13 = smov (!%p269_p11, %s1292_s13), 7 }
  0x16   : > { %s1562_s24 = smov (!%p249_p10, %s1560_s24), 7  ;;  %s1199_s7 = smul.u32 36, %s1564_s13 }
  0x17   : > { %s1197_s4 = smul.u32 36, %s1562_s24 }
  0x18   : > { %s273_s11 = sadd.s32 %s1199_s7, %s1198_s26  ;;  %279 = sbr.rel (%p1031_p12) target bundleno = 66 (0x42), region = 36 }
  0x19   : > { %s253_s5 = sadd.s32 %s1198_s26, %s1197_s4  ;;  %s1030_s14 = sshll.u32 %s273_s11, 3 }
  0x1a   : > { %s1027_s6 = sshll.u32 %s253_s5, 2  ;;  %s1405_s21 = scalar_lea.vmem %s1538_s3, %s1030_s14 }
  0x1b   : > { %s1400_s10 = scalar_lea.vmem %s1535_s0, %s1027_s6 }
  0x1d   : > { %v1314_v0 = vmov 0.0  }
  0x1e   : > { %280 = vst [vmem:[#allocation2 + $0xb0] sm:$0xff] %v1314_v0 }
  0x1f   : > { %281 = vst [vmem:[#allocation2 + $0xd0] sm:$0xff] %v1314_v0 }
  0x20   : > { %282 = vst [vmem:[#allocation2 + $0x10] sm:$0xff] %v1314_v0 }
  0x21   : > { %283 = vst [vmem:[#allocation2 + $0x48] sm:$0xff] %v1314_v0 }
  0x22   : > { %284 = vst [vmem:[#allocation2 + $0x108] sm:$0xff] %v1314_v0 }
  0x23   : > { %285 = vst [vmem:[#allocation2 + $0x68] sm:$0xff] %v1314_v0 }
  0x24   : > { %286 = vst [vmem:[#allocation2 + $0x30] sm:$0xff] %v1314_v0 }
  0x25   : > { %287 = vst [vmem:[#allocation2 + $0x18] sm:$0xff] %v1314_v0 }
  0x26   : > { %288 = vst [vmem:[#allocation2 + $0x80] sm:$0xff] %v1314_v0 }
  0x27   : > { %289 = vst [vmem:[#allocation2 + $0x110] sm:$0xff] %v1314_v0 }
  0x28   : > { %290 = vst [vmem:[#allocation2 + $0x118] sm:$0xff] %v1314_v0 }
  0x29   : > { %291 = vst [vmem:[#allocation2 + $0x98] sm:$0xff] %v1314_v0 }
  0x2a   : > { %292 = vst [vmem:[#allocation2 + $0xf8] sm:$0xff] %v1314_v0 }
  0x2b   : > { %293 = vst [vmem:[#allocation2 + $0x38] sm:$0xff] %v1314_v0 }
  0x2c   : > { %294 = vst [vmem:[#allocation2 + $0x8] sm:$0xff] %v1314_v0 }
  0x2d   : > { %295 = vst [vmem:[#allocation2 + $0x78] sm:$0xff] %v1314_v0 }
  0x2e   : > { %296 = vst [vmem:[#allocation2 + $0x20] sm:$0xff] %v1314_v0 }
  0x2f   : > { %297 = vst [vmem:[#allocation2 + $0xc8] sm:$0xff] %v1314_v0 }
  0x30   : > { %298 = vst [vmem:[#allocation2 + $0x90] sm:$0xff] %v1314_v0 }
  0x31   : > { %299 = vst [vmem:[#allocation2 + $0xa0] sm:$0xff] %v1314_v0 }
  0x32   : > { %300 = vst [vmem:[#allocation2 + $0x70] sm:$0xff] %v1314_v0 }
  0x33   : > { %301 = vst [vmem:[#allocation2 + $0x58] sm:$0xff] %v1314_v0 }
  0x34   : > { %302 = vst [vmem:[#allocation2 + $0xe0] sm:$0xff] %v1314_v0 }
  0x35   : > { %303 = vst [vmem:[#allocation2 + $0x60] sm:$0xff] %v1314_v0 }
  0x36   : > { %304 = vst [vmem:[#allocation2 + $0xa8] sm:$0xff] %v1314_v0 }
  0x37   : > { %305 = vst [vmem:[#allocation2 + $0x88] sm:$0xff] %v1314_v0 }
  0x38   : > { %306 = vst [vmem:[#allocation2 + $0xd8] sm:$0xff] %v1314_v0 }
  0x39   : > { %307 = vst [vmem:[#allocation2 + $0xc0] sm:$0xff] %v1314_v0 }
  0x3a   : > { %308 = vst [vmem:[#allocation2 + $0x50] sm:$0xff] %v1314_v0 }
  0x3b   : > { %309 = vst [vmem:[#allocation2 + $0xf0] sm:$0xff] %v1314_v0 }
  0x3c   : > { %310 = vst [vmem:[#allocation2 + $0xb8] sm:$0xff] %v1314_v0 }
  0x3d   : > { %311 = vst [vmem:[#allocation2 + $0x28] sm:$0xff] %v1314_v0 }
  0x3e   : > { %312 = vst [vmem:[#allocation2 + $0x100] sm:$0xff] %v1314_v0 }
  0x3f   : > { %313 = vst [vmem:[#allocation2] sm:$0xff] %v1314_v0 }
  0x40   : > { %314 = vst [vmem:[#allocation2 + $0x40] sm:$0xff] %v1314_v0 }
  0x41   : > { %315 = vst [vmem:[#allocation2 + $0xe8] sm:$0xff] %v1314_v0 }
  0x42 PF: > { %p318_p13 = scmp.ge.s32.totalorder %s1383_s23, 0  ;;  %p319_p0 = scmp.lt.s32.totalorder %s1383_s23, 8 }
  0x44   : > { %p320_p1 = pnand %p319_p0, %p318_p13 }
  0x46   : > { %323 = sbr.rel (%p320_p1) target bundleno = 315 (0x13b), region = 40 }
  0x4b   : > { %v1172_v1 = vld [vmem:[%s1394_s30 + $0x38] sm:$0xff]  ;;  %v1171_v2 = vld [vmem:[%s1394_s30 + $0x30] sm:$0xff]  ;;  %v1170_v3 = vld [vmem:[%s1394_s30 + $0x28] sm:$0xff] }
  0x4c   : > { %1174 = vmatpush.bf16.msra.mxu2 %v1172_v1  ;;  %1175 = vmatpush.bf16.msra.mxu3 %v1172_v1  ;;  %v1169_v4 = vld [vmem:[%s1394_s30 + $0x20] sm:$0xff]  ;;  %v1168_v5 = vld [vmem:[%s1394_s30 + $0x18] sm:$0xff]  ;;  %v1167_v6 = vld [vmem:[%s1394_s30 + $0x10] sm:$0xff] }
  0x4d   : > { %568 = vmatpush.bf16.msra.mxu0 %v1172_v1  ;;  %1173 = vmatpush.bf16.msra.mxu1 %v1172_v1  ;;  %v1166_v7 = vld [vmem:[%s1394_s30 + $0x8] sm:$0xff]  ;;  %v1165_v8 = vld [vmem:[%s1394_s30] sm:$0xff]  ;;  %v1161_v14 = vld [vmem:[%s1400_s10 + $0x70] sm:$0xff] }
  0x4e   : > { %v1155_v9 = vld [vmem:[%s1400_s10 + $0x40] sm:$0xff]  ;;  %v1160_v10 = vld [vmem:[%s1400_s10 + $0x68] sm:$0xff]  ;;  %v1157_v17 = vld [vmem:[%s1400_s10 + $0x50] sm:$0xff] }
  0x4f   : > { %v1147_v11 = vld [vmem:[%s1400_s10] sm:$0xff]  ;;  %v1156_v13 = vld [vmem:[%s1400_s10 + $0x48] sm:$0xff]  ;;  %v1162_v18 = vld [vmem:[%s1400_s10 + $0x78] sm:$0xff] }
  0x50   : > { %1177 = vmatpush.bf16.msra.mxu2 %v1171_v2  ;;  %1178 = vmatpush.bf16.msra.mxu3 %v1171_v2  ;;  %v1151_v12 = vld [vmem:[%s1400_s10 + $0x20] sm:$0xff]  ;;  %v1148_v15 = vld [vmem:[%s1400_s10 + $0x8] sm:$0xff]  ;;  %v1149_v19 = vld [vmem:[%s1400_s10 + $0x10] sm:$0xff] }
  0x51   : > { %569 = vmatpush.bf16.msra.mxu0 %v1171_v2  ;;  %1176 = vmatpush.bf16.msra.mxu1 %v1171_v2  ;;  %v1152_v16 = vld [vmem:[%s1400_s10 + $0x28] sm:$0xff]  ;;  %v1153_v20 = vld [vmem:[%s1400_s10 + $0x30] sm:$0xff]  ;;  %v1158_v21 = vld [vmem:[%s1400_s10 + $0x58] sm:$0xff] }
  0x52   : > { %v1163_v22 = vld [vmem:[%s1400_s10 + $0x80] sm:$0xff]  ;;  %v1150_v23 = vld [vmem:[%s1400_s10 + $0x18] sm:$0xff]  ;;  %v1164_v26 = vld [vmem:[%s1400_s10 + $0x88] sm:$0xff] }
  0x53   : > { %v1154_v24 = vld [vmem:[%s1400_s10 + $0x38] sm:$0xff]  ;;  %v1159_v25 = vld [vmem:[%s1400_s10 + $0x60] sm:$0xff]  ;;  %v324_v27 = vld [vmem:[#allocation2 + $0xb0] sm:$0xff] }
  0x54   : > { %1180 = vmatpush.bf16.msra.mxu2 %v1170_v3  ;;  %1181 = vmatpush.bf16.msra.mxu3 %v1170_v3  ;;  %v332_v28 = vld [vmem:[#allocation2 + $0x80] sm:$0xff]  ;;  %v350_v34 = vld [vmem:[#allocation2 + $0xd8] sm:$0xff]  ;;  %v325_v39 = vld [vmem:[#allocation2 + $0xd0] sm:$0xff] }
  0x55   : > { %570 = vmatpush.bf16.msra.mxu0 %v1170_v3  ;;  %1179 = vmatpush.bf16.msra.mxu1 %v1170_v3  ;;  %v340_v33 = vld [vmem:[#allocation2 + $0x20] sm:$0xff]  ;;  %v333_v40 = vld [vmem:[#allocation2 + $0x110] sm:$0xff]  ;;  %v341_v45 = vld [vmem:[#allocation2 + $0xc8] sm:$0xff] }
  0x56   : > { %v351_v46 = vld [vmem:[#allocation2 + $0xc0] sm:$0xff]  ;;  %v326_v51 = vld [vmem:[#allocation2 + $0x10] sm:$0xff]  ;;  %v334_v52 = vld [vmem:[#allocation2 + $0x118] sm:$0xff] }
  0x57   : > { %v342_v57 = vld [vmem:[#allocation2 + $0x90] sm:$0xff]  ;;  %v327_v63 = vld [vmem:[#allocation2 + $0x48] sm:$0xff]  ;;  %v335_v0 = vld [vmem:[#allocation2 + $0x98] sm:$0xff] }
  0x58   : > { %1183 = vmatpush.bf16.msra.mxu2 %v1169_v4  ;;  %1184 = vmatpush.bf16.msra.mxu3 %v1169_v4  ;;  %v352_v58 = vld [vmem:[#allocation2 + $0x50] sm:$0xff] }
  0x59   : > { %571 = vmatpush.bf16.msra.mxu0 %v1169_v4  ;;  %1182 = vmatpush.bf16.msra.mxu1 %v1169_v4 }
  0x5c   : > { %1186 = vmatpush.bf16.msra.mxu2 %v1168_v5  ;;  %1187 = vmatpush.bf16.msra.mxu3 %v1168_v5 }
  0x5d   : > { %572 = vmatpush.bf16.msra.mxu0 %v1168_v5  ;;  %1185 = vmatpush.bf16.msra.mxu1 %v1168_v5  ;;  %v343_v5 = vld [vmem:[#allocation2 + $0xa0] sm:$0xff] }
  0x60   : > { %1189 = vmatpush.bf16.msra.mxu2 %v1167_v6  ;;  %1190 = vmatpush.bf16.msra.mxu3 %v1167_v6 }
  0x61   : > { %573 = vmatpush.bf16.msra.mxu0 %v1167_v6  ;;  %1188 = vmatpush.bf16.msra.mxu1 %v1167_v6  ;;  %v353_v6 = vld [vmem:[#allocation2 + $0xf0] sm:$0xff] }
  0x64   : > { %1192 = vmatpush.bf16.msra.mxu2 %v1166_v7  ;;  %1193 = vmatpush.bf16.msra.mxu3 %v1166_v7 }
  0x65   : > { %574 = vmatpush.bf16.msra.mxu0 %v1166_v7  ;;  %1191 = vmatpush.bf16.msra.mxu1 %v1166_v7 }
  0x68   : > { %1195 = vmatpush.bf16.msra.mxu2 %v1165_v8  ;;  %1196 = vmatpush.bf16.msra.mxu3 %v1165_v8 }
  0x69   : > { %575 = vmatpush.bf16.msra.mxu0 %v1165_v8  ;;  %1194 = vmatpush.bf16.msra.mxu1 %v1165_v8 }
  0x6b   : > { %616 = vmatmul.bf16.vlgmr.msra.gmra.mxu2 %v1155_v9  ;;  %641 = vmatmul.bf16.vlgmr.msra.gmra.mxu3 %v1160_v10 }
  0x6c   : > { %576 = vmatmul.bf16.vlgmr.msra.gmra.mxu0 %v1147_v11  ;;  %596 = vmatmul.bf16.vlgmr.msra.gmra.mxu1 %v1151_v12  ;;  %v328_v11 = vld [vmem:[#allocation2 + $0x108] sm:$0xff]  ;;  %v336_v12 = vld [vmem:[#allocation2 + $0xf8] sm:$0xff] }
  0x7b   : > { %621 = vmatmul.bf16.gmra.mxu2 %v1156_v13  ;;  %646 = vmatmul.bf16.gmra.mxu3 %v1161_v14 }
  0x7c   : > { %581 = vmatmul.bf16.gmra.mxu0 %v1148_v15  ;;  %601 = vmatmul.bf16.gmra.mxu1 %v1152_v16 }
  0x8b   : > { %626 = vmatmul.bf16.gmra.mxu2 %v1157_v17  ;;  %651 = vmatmul.bf16.gmra.mxu3 %v1162_v18  ;;  %v344_v17 = vld [vmem:[#allocation2 + $0x70] sm:$0xff]  ;;  %v354_v18 = vld [vmem:[#allocation2 + $0xb8] sm:$0xff] }
  0x8c   : > { %586 = vmatmul.bf16.gmra.mxu0 %v1149_v19  ;;  %606 = vmatmul.bf16.gmra.mxu1 %v1153_v20 }
  0x9b   : > { %631 = vmatmul.bf16.gmra.mxu2 %v1158_v21  ;;  %656 = vmatmul.bf16.gmra.mxu3 %v1163_v22 }
  0x9c   : > { %591 = vmatmul.bf16.gmra.mxu0 %v1150_v23  ;;  %611 = vmatmul.bf16.gmra.mxu1 %v1154_v24  ;;  %v329_v23 = vld [vmem:[#allocation2 + $0x68] sm:$0xff]  ;;  %v337_v24 = vld [vmem:[#allocation2 + $0x38] sm:$0xff] }
  0xab   : > { %636 = vmatmul.bf16.gmra.mxu2 %v1159_v25  ;;  %661 = vmatmul.bf16.gmra.mxu3 %v1164_v26 }
  0xe9   : > { %v577_v29 = vpop.f32.mrf.mxu0  ;;  %v597_v30 = vpop.f32.mrf.mxu1 }
  0xea   : > { %v667_v31 = vadd.f32 %v577_v29, %v324_v27  ;;  %v675_v32 = vadd.f32 %v597_v30, %v332_v28  ;;  %v345_v29 = vld [vmem:[#allocation2 + $0x58] sm:$0xff]  ;;  %v355_v30 = vld [vmem:[#allocation2 + $0x28] sm:$0xff] }
  0xec   : > { %703 = vst [vmem:[#allocation2 + $0xb0] sm:$0xff] %v667_v31 }
  0xed   : > { %711 = vst [vmem:[#allocation2 + $0x80] sm:$0xff] %v675_v32 }
  0xee   : > { %v617_v35 = vpop.f32.mrf.mxu2  ;;  %v642_v36 = vpop.f32.mrf.mxu3 }
  0xef   : > { %v683_v37 = vadd.f32 %v617_v35, %v340_v33  ;;  %v693_v38 = vadd.f32 %v642_v36, %v350_v34  ;;  %v330_v35 = vld [vmem:[#allocation2 + $0x30] sm:$0xff]  ;;  %v338_v36 = vld [vmem:[#allocation2 + $0x8] sm:$0xff] }
  0xf1   : > { %719 = vst [vmem:[#allocation2 + $0x20] sm:$0xff] %v683_v37  ;;  %v579_v41 = vpop.f32.mrf.mxu0  ;;  %v599_v42 = vpop.f32.mrf.mxu1 }
  0xf2   : > { %729 = vst [vmem:[#allocation2 + $0xd8] sm:$0xff] %v693_v38  ;;  %v668_v43 = vadd.f32 %v579_v41, %v325_v39  ;;  %v676_v44 = vadd.f32 %v599_v42, %v333_v40  ;;  %v346_v41 = vld [vmem:[#allocation2 + $0xe0] sm:$0xff] }
  0xf3   : > { %v356_v42 = vld [vmem:[#allocation2 + $0x100] sm:$0xff] }
  0xf4   : > { %704 = vst [vmem:[#allocation2 + $0xd0] sm:$0xff] %v668_v43 }
  0xf5   : > { %712 = vst [vmem:[#allocation2 + $0x110] sm:$0xff] %v676_v44 }
  0xf6   : > { %v619_v47 = vpop.f32.mrf.mxu2  ;;  %v644_v48 = vpop.f32.mrf.mxu3 }
  0xf7   : > { %v684_v49 = vadd.f32 %v619_v47, %v341_v45  ;;  %v694_v50 = vadd.f32 %v644_v48, %v351_v46  ;;  %v331_v47 = vld [vmem:[#allocation2 + $0x18] sm:$0xff] }
  0xf8   : > { %v339_v48 = vld [vmem:[#allocation2 + $0x78] sm:$0xff] }
  0xf9   : > { %720 = vst [vmem:[#allocation2 + $0xc8] sm:$0xff] %v684_v49  ;;  %v582_v53 = vpop.f32.mrf.mxu0  ;;  %v602_v54 = vpop.f32.mrf.mxu1 }
  0xfa   : > { %730 = vst [vmem:[#allocation2 + $0xc0] sm:$0xff] %v694_v50  ;;  %v669_v55 = vadd.f32 %v582_v53, %v326_v51  ;;  %v677_v56 = vadd.f32 %v602_v54, %v334_v52  ;;  %v347_v53 = vld [vmem:[#allocation2 + $0x60] sm:$0xff] }
  0xfb   : > { %v357_v54 = vld [vmem:[#allocation2] sm:$0xff] }
  0xfc   : > { %705 = vst [vmem:[#allocation2 + $0x10] sm:$0xff] %v669_v55 }
  0xfd   : > { %713 = vst [vmem:[#allocation2 + $0x118] sm:$0xff] %v677_v56 }
  0xfe   : > { %v622_v59 = vpop.f32.mrf.mxu2  ;;  %v647_v60 = vpop.f32.mrf.mxu3 }
  0xff   : > { %v685_v61 = vadd.f32 %v622_v59, %v342_v57  ;;  %v695_v62 = vadd.f32 %v647_v60, %v352_v58  ;;  %v348_v59 = vld [vmem:[#allocation2 + $0xa8] sm:$0xff]  ;;  %v358_v60 = vld [vmem:[#allocation2 + $0x40] sm:$0xff] }
 0x101   : > { %721 = vst [vmem:[#allocation2 + $0x90] sm:$0xff] %v685_v61  ;;  %v584_v1 = vpop.f32.mrf.mxu0  ;;  %v604_v2 = vpop.f32.mrf.mxu1 }
 0x102   : > { %731 = vst [vmem:[#allocation2 + $0x50] sm:$0xff] %v695_v62  ;;  %v670_v3 = vadd.f32 %v584_v1, %v327_v63  ;;  %v678_v4 = vadd.f32 %v604_v2, %v335_v0  ;;  %v349_v1 = vld [vmem:[#allocation2 + $0x88] sm:$0xff] }
 0x103   : > { %v359_v2 = vld [vmem:[#allocation2 + $0xe8] sm:$0xff] }
 0x104   : > { %706 = vst [vmem:[#allocation2 + $0x48] sm:$0xff] %v670_v3 }
 0x105   : > { %714 = vst [vmem:[#allocation2 + $0x98] sm:$0xff] %v678_v4 }
 0x106   : > { %v624_v7 = vpop.f32.mrf.mxu2  ;;  %v649_v8 = vpop.f32.mrf.mxu3 }
 0x107   : > { %v686_v9 = vadd.f32 %v624_v7, %v343_v5  ;;  %v696_v10 = vadd.f32 %v649_v8, %v353_v6 }
 0x109   : > { %722 = vst [vmem:[#allocation2 + $0xa0] sm:$0xff] %v686_v9  ;;  %v587_v13 = vpop.f32.mrf.mxu0  ;;  %v607_v14 = vpop.f32.mrf.mxu1 }
 0x10a   : > { %732 = vst [vmem:[#allocation2 + $0xf0] sm:$0xff] %v696_v10  ;;  %v671_v15 = vadd.f32 %v587_v13, %v328_v11  ;;  %v679_v16 = vadd.f32 %v607_v14, %v336_v12 }
 0x10c   : > { %707 = vst [vmem:[#allocation2 + $0x108] sm:$0xff] %v671_v15 }
 0x10d   : > { %715 = vst [vmem:[#allocation2 + $0xf8] sm:$0xff] %v679_v16 }
 0x10e   : > { %v627_v19 = vpop.f32.mrf.mxu2  ;;  %v652_v20 = vpop.f32.mrf.mxu3 }
 0x10f   : > { %v687_v21 = vadd.f32 %v627_v19, %v344_v17  ;;  %v697_v22 = vadd.f32 %v652_v20, %v354_v18 }
 0x111   : > { %723 = vst [vmem:[#allocation2 + $0x70] sm:$0xff] %v687_v21  ;;  %v589_v25 = vpop.f32.mrf.mxu0  ;;  %v609_v26 = vpop.f32.mrf.mxu1 }
 0x112   : > { %733 = vst [vmem:[#allocation2 + $0xb8] sm:$0xff] %v697_v22  ;;  %v672_v27 = vadd.f32 %v589_v25, %v329_v23  ;;  %v680_v28 = vadd.f32 %v609_v26, %v337_v24 }
 0x114   : > { %708 = vst [vmem:[#allocation2 + $0x68] sm:$0xff] %v672_v27 }
 0x115   : > { %716 = vst [vmem:[#allocation2 + $0x38] sm:$0xff] %v680_v28 }
 0x116   : > { %v629_v31 = vpop.f32.mrf.mxu2  ;;  %v654_v32 = vpop.f32.mrf.mxu3 }
 0x117   : > { %v688_v33 = vadd.f32 %v629_v31, %v345_v29  ;;  %v698_v34 = vadd.f32 %v654_v32, %v355_v30 }
 0x119   : > { %724 = vst [vmem:[#allocation2 + $0x58] sm:$0xff] %v688_v33  ;;  %v592_v37 = vpop.f32.mrf.mxu0  ;;  %v612_v38 = vpop.f32.mrf.mxu1 }
 0x11a   : > { %734 = vst [vmem:[#allocation2 + $0x28] sm:$0xff] %v698_v34  ;;  %v673_v39 = vadd.f32 %v592_v37, %v330_v35  ;;  %v681_v40 = vadd.f32 %v612_v38, %v338_v36 }
 0x11c   : > { %709 = vst [vmem:[#allocation2 + $0x30] sm:$0xff] %v673_v39 }
 0x11d   : > { %717 = vst [vmem:[#allocation2 + $0x8] sm:$0xff] %v681_v40 }
 0x11e   : > { %v632_v43 = vpop.f32.mrf.mxu2  ;;  %v657_v44 = vpop.f32.mrf.mxu3 }
 0x11f   : > { %v689_v45 = vadd.f32 %v632_v43, %v346_v41  ;;  %v699_v46 = vadd.f32 %v657_v44, %v356_v42 }
 0x121   : > { %725 = vst [vmem:[#allocation2 + $0xe0] sm:$0xff] %v689_v45  ;;  %v594_v49 = vpop.f32.mrf.mxu0  ;;  %v614_v50 = vpop.f32.mrf.mxu1 }
 0x122   : > { %735 = vst [vmem:[#allocation2 + $0x100] sm:$0xff] %v699_v46  ;;  %v674_v51 = vadd.f32 %v594_v49, %v331_v47  ;;  %v682_v52 = vadd.f32 %v614_v50, %v339_v48 }
 0x124   : > { %710 = vst [vmem:[#allocation2 + $0x18] sm:$0xff] %v674_v51 }
 0x125   : > { %718 = vst [vmem:[#allocation2 + $0x78] sm:$0xff] %v682_v52 }
 0x126   : > { %v634_v55 = vpop.f32.mrf.mxu2  ;;  %v659_v56 = vpop.f32.mrf.mxu3 }
 0x127   : > { %v690_v57 = vadd.f32 %v634_v55, %v347_v53  ;;  %v700_v58 = vadd.f32 %v659_v56, %v357_v54 }
 0x129   : > { %726 = vst [vmem:[#allocation2 + $0x60] sm:$0xff] %v690_v57 }
 0x12a   : > { %736 = vst [vmem:[#allocation2] sm:$0xff] %v700_v58 }
 0x12e   : > { %v637_v61 = vpop.f32.mrf.mxu2  ;;  %v662_v62 = vpop.f32.mrf.mxu3 }
 0x12f   : > { %v691_v63 = vadd.f32 %v637_v61, %v348_v59  ;;  %v701_v0 = vadd.f32 %v662_v62, %v358_v60 }
 0x131   : > { %727 = vst [vmem:[#allocation2 + $0xa8] sm:$0xff] %v691_v63 }
 0x132   : > { %737 = vst [vmem:[#allocation2 + $0x40] sm:$0xff] %v701_v0 }
 0x136   : > { %v639_v3 = vpop.f32.mrf.mxu2  ;;  %v664_v4 = vpop.f32.mrf.mxu3 }
 0x137   : > { %v692_v5 = vadd.f32 %v639_v3, %v349_v1  ;;  %v702_v6 = vadd.f32 %v664_v4, %v359_v2 }
 0x139   : > { %728 = vst [vmem:[#allocation2 + $0x88] sm:$0xff] %v692_v5 }
 0x13a   : > { %738 = vst [vmem:[#allocation2 + $0xe8] sm:$0xff] %v702_v6 }
 0x13b PF: > { %p1137_p2 = scmp.ne.s32.totalorder %s1288_s12, 2 }
 0x13d   : > { %742 = sbr.rel (%p1137_p2) target bundleno = 363 (0x16b), region = 44 }
 0x142   : > { %v743_v7 = vld [vmem:[#allocation2 + $0xb0] sm:$0xff]  ;;  %v1440_v8 = vld [vmem:[%s1537_s2] ss:$0 sm:$0xff]  ;;  %v746_v11 = vld [vmem:[#allocation2 + $0x48] sm:$0xff] }
 0x143   : > { %v744_v9 = vld [vmem:[#allocation2 + $0xd0] sm:$0xff]  ;;  %v783_v12 = vadd.f32 %v1440_v8, %v743_v7  ;;  %v786_v15 = vadd.f32 %v1440_v8, %v746_v11  ;;  %v747_v16 = vld [vmem:[#allocation2 + $0x108] sm:$0xff]  ;;  %v750_v21 = vld [vmem:[#allocation2 + $0x18] sm:$0xff] }
 0x144   : > { %v745_v10 = vld [vmem:[#allocation2 + $0x10] sm:$0xff]  ;;  %v784_v13 = vadd.f32 %v1440_v8, %v744_v9  ;;  %v748_v17 = vld [vmem:[#allocation2 + $0x68] sm:$0xff]  ;;  %v787_v19 = vadd.f32 %v1440_v8, %v747_v16  ;;  %v751_v22 = vld [vmem:[#allocation2 + $0x80] sm:$0xff]  ;;  %v790_v29 = vadd.f32 %v1440_v8, %v750_v21 }
 0x145   : > { %v785_v14 = vadd.f32 %v1440_v8, %v745_v10  ;;  %v749_v18 = vld [vmem:[#allocation2 + $0x30] sm:$0xff]  ;;  %v788_v20 = vadd.f32 %v1440_v8, %v748_v17  ;;  %v819_v23 = vmax.f32 %v783_v12, 0.0  ;;  %v822_v28 = vmax.f32 %v786_v15, 0.0  ;;  %v753_v30 = vld [vmem:[#allocation2 + $0x118] sm:$0xff]  ;;  %v757_v42 = vld [vmem:[#allocation2 + $0x8] sm:$0xff] }
 0x146   : > { %v820_v24 = vmax.f32 %v784_v13, 0.0  ;;  %v789_v26 = vadd.f32 %v1440_v8, %v749_v18  ;;  %v752_v27 = vld [vmem:[#allocation2 + $0x110] sm:$0xff]  ;;  %v823_v31 = vmax.f32 %v787_v19, 0.0  ;;  %v791_v32 = vadd.f32 %v1440_v8, %v751_v22  ;;  %v754_v33 = vld [vmem:[#allocation2 + $0x98] sm:$0xff]  ;;  %v759_v48 = vld [vmem:[#allocation2 + $0x20] sm:$0xff] }
 0x147   : > { %v821_v25 = vmax.f32 %v785_v14, 0.0  ;;  %855 = vst [vmem:[%s1405_s21] sm:$0xff] %v819_v23  ;;  %v824_v34 = vmax.f32 %v788_v20, 0.0  ;;  %v792_v35 = vadd.f32 %v1440_v8, %v752_v27  ;;  %v755_v36 = vld [vmem:[#allocation2 + $0xf8] sm:$0xff]  ;;  %v793_v38 = vadd.f32 %v1440_v8, %v753_v30  ;;  %v760_v51 = vld [vmem:[#allocation2 + $0xc8] sm:$0xff]  ;;  %v761_v54 = vld [vmem:[#allocation2 + $0x90] sm:$0xff] }
 0x148   : > { %856 = vst [vmem:[%s1405_s21 + $0x8] sm:$0xff] %v820_v24  ;;  %v825_v37 = vmax.f32 %v789_v26, 0.0  ;;  %v756_v39 = vld [vmem:[#allocation2 + $0x38] sm:$0xff]  ;;  %v826_v40 = vmax.f32 %v790_v29, 0.0  ;;  %v794_v41 = vadd.f32 %v1440_v8, %v754_v33  ;;  %v827_v43 = vmax.f32 %v791_v32, 0.0  ;;  %v762_v57 = vld [vmem:[#allocation2 + $0xa0] sm:$0xff] }
 0x149   : > { %857 = vst [vmem:[%s1405_s21 + $0x10] sm:$0xff] %v821_v25  ;;  %v795_v44 = vadd.f32 %v1440_v8, %v755_v36  ;;  %v758_v45 = vld [vmem:[#allocation2 + $0x78] sm:$0xff]  ;;  %v828_v46 = vmax.f32 %v792_v35, 0.0  ;;  %v796_v47 = vadd.f32 %v1440_v8, %v756_v39  ;;  %v829_v49 = vmax.f32 %v793_v38, 0.0  ;;  %v763_v60 = vld [vmem:[#allocation2 + $0x70] sm:$0xff]  ;;  %v765_v2 = vld [vmem:[#allocation2 + $0xe0] sm:$0xff] }
 0x14a   : > { %858 = vst [vmem:[%s1405_s21 + $0x18] sm:$0xff] %v822_v28  ;;  %v797_v50 = vadd.f32 %v1440_v8, %v757_v42  ;;  %v830_v52 = vmax.f32 %v794_v41, 0.0  ;;  %v798_v53 = vadd.f32 %v1440_v8, %v758_v45  ;;  %v799_v56 = vadd.f32 %v1440_v8, %v759_v48  ;;  %v764_v63 = vld [vmem:[#allocation2 + $0x58] sm:$0xff]  ;;  %v766_v5 = vld [vmem:[#allocation2 + $0x60] sm:$0xff]  ;;  %v767_v9 = vld [vmem:[#allocation2 + $0xa8] sm:$0xff] }
 0x14b   : > { %859 = vst [vmem:[%s1405_s21 + $0x20] sm:$0xff] %v823_v31  ;;  %v831_v55 = vmax.f32 %v795_v44, 0.0  ;;  %v832_v58 = vmax.f32 %v796_v47, 0.0  ;;  %v800_v59 = vadd.f32 %v1440_v8, %v760_v51  ;;  %v801_v62 = vadd.f32 %v1440_v8, %v761_v54  ;;  %v768_v12 = vld [vmem:[#allocation2 + $0x88] sm:$0xff]  ;;  %v769_v15 = vld [vmem:[#allocation2 + $0xd8] sm:$0xff]  ;;  %v770_v18 = vld [vmem:[#allocation2 + $0xc0] sm:$0xff] }
 0x14c   : > { %860 = vst [vmem:[%s1405_s21 + $0x28] sm:$0xff] %v824_v34  ;;  %v833_v61 = vmax.f32 %v797_v50, 0.0  ;;  %v834_v0 = vmax.f32 %v798_v53, 0.0  ;;  %v802_v1 = vadd.f32 %v1440_v8, %v762_v57  ;;  %v835_v3 = vmax.f32 %v799_v56, 0.0  ;;  %v771_v21 = vld [vmem:[#allocation2 + $0x50] sm:$0xff]  ;;  %v773_v27 = vld [vmem:[#allocation2 + $0xb8] sm:$0xff] }
 0x14d   : > { %861 = vst [vmem:[%s1405_s21 + $0x30] sm:$0xff] %v825_v37  ;;  %v803_v4 = vadd.f32 %v1440_v8, %v763_v60  ;;  %v836_v6 = vmax.f32 %v800_v59, 0.0  ;;  %v804_v7 = vadd.f32 %v1440_v8, %v764_v63  ;;  %v837_v10 = vmax.f32 %v801_v62, 0.0  ;;  %v772_v24 = vld [vmem:[#allocation2 + $0xf0] sm:$0xff]  ;;  %v774_v30 = vld [vmem:[#allocation2 + $0x28] sm:$0xff]  ;;  %v775_v33 = vld [vmem:[#allocation2 + $0x100] sm:$0xff] }
 0x14e   : > { %862 = vst [vmem:[%s1405_s21 + $0x38] sm:$0xff] %v826_v40  ;;  %v805_v11 = vadd.f32 %v1440_v8, %v765_v2  ;;  %v838_v13 = vmax.f32 %v802_v1, 0.0  ;;  %v806_v14 = vadd.f32 %v1440_v8, %v766_v5  ;;  %v807_v17 = vadd.f32 %v1440_v8, %v767_v9  ;;  %v776_v36 = vld [vmem:[#allocation2] sm:$0xff]  ;;  %v778_v42 = vld [vmem:[#allocation2 + $0xe8] sm:$0xff] }
 0x14f   : > { %863 = vst [vmem:[%s1405_s21 + $0x40] sm:$0xff] %v827_v43  ;;  %v839_v16 = vmax.f32 %v803_v4, 0.0  ;;  %v840_v19 = vmax.f32 %v804_v7, 0.0  ;;  %v808_v20 = vadd.f32 %v1440_v8, %v768_v12  ;;  %v809_v23 = vadd.f32 %v1440_v8, %v769_v15  ;;  %v777_v39 = vld [vmem:[#allocation2 + $0x40] sm:$0xff] }
 0x150   : > { %864 = vst [vmem:[%s1405_s21 + $0x48] sm:$0xff] %v828_v46  ;;  %v841_v22 = vmax.f32 %v805_v11, 0.0  ;;  %v842_v25 = vmax.f32 %v806_v14, 0.0  ;;  %v810_v26 = vadd.f32 %v1440_v8, %v770_v18  ;;  %v843_v28 = vmax.f32 %v807_v17, 0.0 }
 0x151   : > { %865 = vst [vmem:[%s1405_s21 + $0x50] sm:$0xff] %v829_v49  ;;  %v811_v29 = vadd.f32 %v1440_v8, %v771_v21  ;;  %v844_v31 = vmax.f32 %v808_v20, 0.0  ;;  %v812_v32 = vadd.f32 %v1440_v8, %v772_v24  ;;  %v845_v34 = vmax.f32 %v809_v23, 0.0 }
 0x152   : > { %866 = vst [vmem:[%s1405_s21 + $0x58] sm:$0xff] %v830_v52  ;;  %v813_v35 = vadd.f32 %v1440_v8, %v773_v27  ;;  %v846_v37 = vmax.f32 %v810_v26, 0.0  ;;  %v814_v38 = vadd.f32 %v1440_v8, %v774_v30  ;;  %v815_v41 = vadd.f32 %v1440_v8, %v775_v33 }
 0x153   : > { %867 = vst [vmem:[%s1405_s21 + $0x60] sm:$0xff] %v831_v55  ;;  %v847_v40 = vmax.f32 %v811_v29, 0.0  ;;  %v848_v43 = vmax.f32 %v812_v32, 0.0  ;;  %v816_v44 = vadd.f32 %v1440_v8, %v776_v36  ;;  %v817_v46 = vadd.f32 %v1440_v8, %v777_v39 }
 0x154   : > { %868 = vst [vmem:[%s1405_s21 + $0x68] sm:$0xff] %v832_v58  ;;  %v849_v45 = vmax.f32 %v813_v35, 0.0  ;;  %v850_v47 = vmax.f32 %v814_v38, 0.0  ;;  %v818_v48 = vadd.f32 %v1440_v8, %v778_v42  ;;  %v851_v49 = vmax.f32 %v815_v41, 0.0 }
 0x155   : > { %869 = vst [vmem:[%s1405_s21 + $0x70] sm:$0xff] %v833_v61  ;;  %v852_v50 = vmax.f32 %v816_v44, 0.0  ;;  %v853_v51 = vmax.f32 %v817_v46, 0.0 }
 0x156   : > { %870 = vst [vmem:[%s1405_s21 + $0x78] sm:$0xff] %v834_v0  ;;  %v854_v52 = vmax.f32 %v818_v48, 0.0 }
 0x157   : > { %871 = vst [vmem:[%s1405_s21 + $0x80] sm:$0xff] %v835_v3 }
 0x158   : > { %872 = vst [vmem:[%s1405_s21 + $0x88] sm:$0xff] %v836_v6 }
 0x159   : > { %873 = vst [vmem:[%s1405_s21 + $0x90] sm:$0xff] %v837_v10 }
 0x15a   : > { %874 = vst [vmem:[%s1405_s21 + $0x98] sm:$0xff] %v838_v13 }
 0x15b   : > { %875 = vst [vmem:[%s1405_s21 + $0xa0] sm:$0xff] %v839_v16 }
 0x15c   : > { %876 = vst [vmem:[%s1405_s21 + $0xa8] sm:$0xff] %v840_v19 }
 0x15d   : > { %877 = vst [vmem:[%s1405_s21 + $0xb0] sm:$0xff] %v841_v22 }
 0x15e   : > { %878 = vst [vmem:[%s1405_s21 + $0xb8] sm:$0xff] %v842_v25 }
 0x15f   : > { %879 = vst [vmem:[%s1405_s21 + $0xc0] sm:$0xff] %v843_v28 }
 0x160   : > { %880 = vst [vmem:[%s1405_s21 + $0xc8] sm:$0xff] %v844_v31 }
 0x161   : > { %881 = vst [vmem:[%s1405_s21 + $0xd0] sm:$0xff] %v845_v34 }
 0x162   : > { %882 = vst [vmem:[%s1405_s21 + $0xd8] sm:$0xff] %v846_v37 }
 0x163   : > { %883 = vst [vmem:[%s1405_s21 + $0xe0] sm:$0xff] %v847_v40 }
 0x164   : > { %884 = vst [vmem:[%s1405_s21 + $0xe8] sm:$0xff] %v848_v43 }
 0x165   : > { %885 = vst [vmem:[%s1405_s21 + $0xf0] sm:$0xff] %v849_v45 }
 0x166   : > { %886 = vst [vmem:[%s1405_s21 + $0xf8] sm:$0xff] %v850_v47 }
 0x167   : > { %887 = vst [vmem:[%s1405_s21 + $0x100] sm:$0xff] %v851_v49 }
 0x168   : > { %888 = vst [vmem:[%s1405_s21 + $0x108] sm:$0xff] %v852_v50 }
 0x169   : > { %889 = vst [vmem:[%s1405_s21 + $0x110] sm:$0xff] %v853_v51 }
 0x16a   : > { %890 = vst [vmem:[%s1405_s21 + $0x118] sm:$0xff] %v854_v52 }
 0x16b PF: > { %s13_s18 = sadd.s32 1, %s1312_s18   ;;  %s1540_s24 = sld [smem:[#allocation3_spill]] }
 0x16c   : > { %p10_p3 = scmp.ge.s32.totalorder %s13_s18, 50   ;;  %s1541_s12 = smov %s1300_s15 }
 0x16d   : > { %s1542_s13 = smov %s1304_s16  ;;  %s1543_s14 = smov %s1308_s17 }
 0x16e   : > { %s1544_s15 = smov %s1548_s19  ;;  %s1545_s16 = smov %s1552_s20 }
 0x16f   :  { %12 = sbr.rel (!%p10_p3) target bundleno = 4 (0x4), region = 77 }
 0x171   : > { %s1546_s17 = smov %s1540_s24 }

// kernel: _lambda_.2
= control target key start
LH: loop header
LB: loop body
LE: loop exit
PB: predicated region body
PF: predicated region fallthrough
CT: control target
= control target key end

     0   :  { %s3732_s12 = smov 0   ;;  %s4778_s0 = inlined_call_operand.vmem [shape: bf16[16,342,4], index: 0, kind: input, shape index: {}]   ;;  %s4779_s1 = inlined_call_operand.vmem [shape: bf16[9,4,128], index: 1, kind: input, shape index: {}]   ;;  %s4780_s2 = inlined_call_operand.vmem [shape: f32[1,128], index: 2, kind: input, shape index: {}]   ;;  %s4781_s3 = inlined_call_operand.vmem [shape: bf16[16,288,128], index: 3, kind: output, shape index: {}]  }
   0x1 LB: > { %s3121_s13 = sadd.s32 4294967295, %s3710_s12   ;;  %p3125_p0 = scmp.ge.s32.totalorder %s3710_s12, 1  ;;  %s3710_s12 = sphi %s3732_s12, %s13_s12  }
   0x2   : > { %p137_p1 = scmp.lt.s32.totalorder %s3710_s12, 17 }
   0x4   : > { %p138_p2 = pnand %p3125_p0, %p137_p1 }
   0x6   : > { %141 = sbr.rel (%p138_p2) target bundleno = 819 (0x333), region = 32 }
   0xb   : > { %v3128_v0 = vld [vmem:[%s4779_s1 + $0x2] sm:$0x3]  ;;  %vm509_vm0 = vcmask 1041408   ;;  %p161_p3 = scmp.lt.s32.totalorder %s3121_s13, 15  ;;  %v3233_v2 = vld [vmem:[%s4779_s1 + $0x4] sm:$0x3] }
   0xc   : > { %v511_v1 = vsel %vm509_vm0, %v3128_v0, 0  ;;  %v208_v3 = vld [vmem:[%s4779_s1] sm:$0x3]  ;;  %v849_v4 = vsel %vm509_vm0, %v3233_v2, 0  ;;  %v3339_v6 = vld [vmem:[%s4779_s1 + $0x8] sm:$0x3] }
   0xd   : > { %3669 = vmatpush.bf16.msra.mxu1 %v511_v1  ;;  %3670 = vmatpush.bf16.msra.mxu2 %v511_v1  ;;  %s4809_s13 = smov (!%p161_p3, %s3121_s13), 15  ;;  %v649_v5 = vsel %vm509_vm0, %v208_v3, 0  ;;  %v1579_v7 = vsel %vm509_vm0, %v3339_v6, 0  ;;  %vm305_vm1 = vsmask.f32 7424  ;;  %vm454_vm2 = vcmask 31744  }
   0xe   : > { %520 = vmatpush.bf16.msra.mxu0 %v511_v1  ;;  %s3672_s22 = smul.u32 172, %s4809_s13  ;;  %3671 = vmatpush.bf16.msra.mxu3 %v511_v1  ;;  %v3252_v45 = vld [vmem:[%s4779_s1 + $0x6] sm:$0x3]  ;;  %vm756_vm3 = vcmask 1046528   ;;  %vm1353_vm4 = vsmask.f32 6400 }
   0xf   : > { %v1210_v53 = vsel %vm509_vm0, %v3252_v45, 0  ;;  %vm2319_vm5 = vsmask.f32 5376  ;;  %vm1722_vm6 = vcmask 1045504   ;;  %vm2688_vm7 = vcmask 1044480   ;;  %s3673_s11 = smul.u32 144, %s4809_s13 }
  0x10   : > { %s3762_s25 = scalar_lea.vmem %s4778_s0, %s3672_s22 }
  0x11   : > { %858 = vmatpush.bf16.msrb.mxu2 %v849_v4  ;;  %658 = vmatpush.bf16.msrb.mxu1 %v649_v5  ;;  %v3765_v8 = vld [vmem:[%s3762_s25 + $0x28] sm:$0xff]  ;;  %v3768_v9 = vld [vmem:[%s3762_s25 + $0x30] sm:$0xff]  ;;  %v3774_v11 = vld [vmem:[%s3762_s25 + $0x58] sm:$0xff]  ;;  %s4534_s16 = scalar_lea.vmem %s4781_s3, %s3673_s11 }
  0x12   : > { %1588 = vmatpush.bf16.msrb.mxu0 %v1579_v7  ;;  %v3771_v10 = vld [vmem:[%s3762_s25 + $0x50] sm:$0xff]  ;;  %v3777_v12 = vld [vmem:[%s3762_s25] sm:$0xff]   ;;  %v3780_v13 = vld [vmem:[%s3762_s25 + $0x8] sm:$0xff]  ;;  %v346_v14 = vshll.u32 %v3765_v8, 16  ;;  %v350_v15 = vshrl.u32 %v3765_v8, 16  ;;  %v354_v16 = vshll.u32 %v3768_v9, 16  ;;  %1219 = vmatpush.bf16.msrb.mxu3 %v1210_v53 }
  0x13   : > { %v386_v17 = vshll.u32 %v3771_v10, 16  ;;  %v390_v18 = vshrl.u32 %v3771_v10, 16  ;;  %v394_v19 = vshll.u32 %v3774_v11, 16  ;;  %v307_v20 = vshrl.u32 %v3777_v12, 16  ;;  %v3798_v31 = vld [vmem:[%s3762_s25 + $0x78] sm:$0xff]  ;;  %v3519_v32 = vld [vmem:[%s3762_s25 + $0x80] sm:$0xff] }
  0x14   : > { %v309_v21 = vshll.u32 %v3777_v12, 16  ;;  %v3790_v22 = vrot.slane %v346_v14, 1  ;;  %v356_v23 = vrot.slane %v354_v16, 1  ;;  %v314_v25 = vshll.u32 %v3780_v13, 16  ;;  %v3807_v37 = vld [vmem:[%s3762_s25 + $0x38] sm:$0xff]  ;;  %v3811_v38 = vld [vmem:[%s3762_s25 + $0x60] sm:$0xff] }
  0x15   : > { %v3792_v24 = vrot.slane %v386_v17, 1  ;;  %v396_v26 = vrot.slane %v394_v19, 1  ;;  %v426_v39 = vshll.u32 %v3798_v31, 16  ;;  %v430_v40 = vshrl.u32 %v3798_v31, 16  ;;  %v3816_v42 = vld [vmem:[%s3762_s25 + $0x10] sm:$0xff]  ;;  %v3520_v59 = vld [vmem:[%s3762_s25 + $0x88] sm:$0xff] }
  0x16   : > { %v311_v27 = vrot.slane %v309_v21, 1  ;;  %v352_v28 = vor.u32 %v350_v15, %v3790_v22  ;;  %v316_v30 = vrot.slane %v314_v25, 1  ;;  %v434_v41 = vshll.u32 %v3519_v32, 16  ;;  %v3835_v60 = vld [vmem:[%s3762_s25 + $0x48] sm:$0xff]  ;;  %v3844_v5 = vld [vmem:[%s3762_s25 + $0x40] sm:$0xff]  ;;  %v3852_v17 = vld [vmem:[%s3762_s25 + $0x18] sm:$0xff] }
  0x17   : > { %v392_v29 = vor.u32 %v390_v18, %v3792_v24  ;;  %v3818_v43 = vrot.slane %v426_v39, 1  ;;  %v358_v46 = vshrl.u32 %v3768_v9, 16  ;;  %v362_v47 = vshll.u32 %v3807_v37, 16  ;;  %v3847_v6 = vld [vmem:[%s3762_s25 + $0x68] sm:$0xff]  ;;  %v209_v18 = vld [vmem:[%s3762_s25 + $0x90] sm:$0x1] }
  0x18   : > { %v312_v33 = vor.u32 %v311_v27, %v307_v20  ;;  %v357_v34 = vsel %vm305_vm1, %v352_v28, %v356_v23  ;;  %v436_v44 = vrot.slane %v434_v41, 1  ;;  %v398_v48 = vshrl.u32 %v3774_v11, 16  ;;  %v3861_v27 = vld [vmem:[%s3762_s25 + $0x20] sm:$0xff] }
  0x19   : > { %v397_v35 = vsel %vm305_vm1, %v392_v29, %v396_v26  ;;  %3202 = vmatmul.msk.bf16.vlgmr.msra.gmra.mxu1 %vm454_vm2, %v357_v34  ;;  %v402_v49 = vshll.u32 %v3811_v38, 16  ;;  %v432_v50 = vor.u32 %v430_v40, %v3818_v43  ;;  %v318_v51 = vshrl.u32 %v3780_v13, 16 }
  0x1a   : > { %3207 = vmatmul.msk.bf16.vlgmr.msra.gmra.mxu2 %vm454_vm2, %v397_v35  ;;  %v317_v36 = vsel %vm305_vm1, %v312_v33, %v316_v30  ;;  %v322_v52 = vshll.u32 %v3816_v42, 16  ;;  %v360_v55 = vor.u32 %v358_v46, %v356_v23  ;;  %v364_v56 = vrot.slane %v362_v47, 1 }
  0x1b   : > { %3197 = vmatmul.msk.bf16.vlgmr.msra.gmra.mxu0 %vm454_vm2, %v317_v36  ;;  %v437_v54 = vsel %vm305_vm1, %v432_v50, %v436_v44  ;;  %v400_v57 = vor.u32 %v398_v48, %v396_v26  ;;  %v404_v58 = vrot.slane %v402_v49, 1  ;;  %v320_v61 = vor.u32 %v318_v51, %v316_v30 }
  0x1c   : > { %3212 = vmatmul.msk.bf16.vlgmr.msra.gmra.mxu3 %vm454_vm2, %v437_v54  ;;  %v324_v62 = vrot.slane %v322_v52, 1  ;;  %v365_v63 = vsel %vm305_vm1, %v360_v55, %v364_v56  ;;  %v438_v1 = vshrl.u32 %v3519_v32, 16  ;;  %v442_v2 = vshll.u32 %v3520_v59, 16  ;;  %v3882_v52 = vld [vmem:[%s3762_s25 + $0x70] sm:$0xff] }
  0x1d   : > { %v405_v0 = vsel %vm305_vm1, %v400_v57, %v404_v58  ;;  %v378_v3 = vshll.u32 %v3835_v60, 16  ;;  %v382_v16 = vshrl.u32 %v3835_v60, 16  ;;  %v366_v20 = vshrl.u32 %v3807_v37, 16 }
  0x1e   : > { %v325_v4 = vsel %vm305_vm1, %v320_v61, %v324_v62  ;;  %v440_v7 = vor.u32 %v438_v1, %v436_v44  ;;  %v444_v14 = vrot.slane %v442_v2, 1  ;;  %v370_v21 = vshll.u32 %v3844_v5, 16 }
  0x1f   : > { %v380_v15 = vrot.slane %v378_v3, 1  ;;  %v406_v23 = vshrl.u32 %v3811_v38, 16  ;;  %v410_v25 = vshll.u32 %v3847_v6, 16  ;;  %v285_v28 = vunpack.c.l.b16 %v209_v18 }
  0x20   : > { %v445_v26 = vsel %vm305_vm1, %v440_v7, %v444_v14  ;;  %v326_v30 = vshrl.u32 %v3816_v42, 16  ;;  %v330_v32 = vshll.u32 %v3852_v17, 16  ;;  %v368_v33 = vor.u32 %v366_v20, %v364_v56  ;;  %v3521_v7 = vld [vmem:[%s3762_s25 + $0x10] sm:$0xff] }
  0x21   : > { %v384_v19 = vor.u32 %v382_v16, %v380_v15  ;;  %v372_v34 = vrot.slane %v370_v21, 1  ;;  %v408_v35 = vor.u32 %v406_v23, %v404_v58  ;;  %v412_v36 = vrot.slane %v410_v25, 1  ;;  %v3377_v21 = vld [vmem:[%s4779_s1 + $0xc] sm:$0x3]  ;;  %v3464_v25 = vld [vmem:[%s4779_s1 + $0xe] sm:$0x3] }
  0x22   : > { %v338_v39 = vshll.u32 %v3861_v27, 16  ;;  %v3871_v40 = vpack.c.b16 %v285_v28, %v285_v28  ;;  %v328_v41 = vor.u32 %v326_v30, %v324_v62  ;;  %v332_v44 = vrot.slane %v330_v32, 1  ;;  %v986_v62 = vld [vmem:[%s3762_s25 + $0x8] sm:$0xe]  ;;  %v3483_v32 = vld [vmem:[%s4779_s1 + $0x10] sm:$0x3] }
  0x23   : > { %v3865_v29 = vsel %vm305_vm1, %v384_v19, %v3792_v24  ;;  %v373_v24 = vsel %vm305_vm1, %v368_v33, %v372_v34  ;;  %v413_v45 = vsel %vm305_vm1, %v408_v35, %v412_v36  ;;  %v446_v47 = vshrl.u32 %v3520_v59, 16 }
  0x24   : > { %v340_v46 = vrot.slane %v338_v39, 1  ;;  %v450_v48 = vshll.u32 %v3871_v40, 16  ;;  %v342_v49 = vshrl.u32 %v3861_v27, 16  ;;  %v333_v50 = vsel %vm305_vm1, %v328_v41, %v332_v44  ;;  %v3522_v41 = vld [vmem:[%s3762_s25 + $0x18] sm:$0xff] }
  0x25   : > { %v448_v53 = vor.u32 %v446_v47, %v444_v14  ;;  %v374_v56 = vshrl.u32 %v3844_v5, 16  ;;  %v414_v57 = vshrl.u32 %v3847_v6, 16  ;;  %v418_v58 = vshll.u32 %v3882_v52, 16 }
  0x26   : > { %v344_v51 = vor.u32 %v342_v49, %v340_v46  ;;  %v452_v54 = vrot.slane %v450_v48, 1  ;;  %v334_v61 = vshrl.u32 %v3852_v17, 16  ;;  %v1062_v3 = vunpack.c.l.b16 %v986_v62 }
  0x27   : > { %v416_v1 = vor.u32 %v414_v57, %v412_v36  ;;  %v420_v2 = vrot.slane %v418_v58, 1  ;;  %v1119_v20 = vrot.slane %v3521_v7, 1  ;;  %v2545_v28 = vsel %vm509_vm0, %v3464_v25, 0 }
  0x28   : > { %v349_v55 = vsel %vm305_vm1, %v344_v51, %v3790_v22  ;;  %v453_v59 = vsel %vm305_vm1, %v448_v53, %v452_v54  ;;  %2554 = vmatpush.bf16.msra.mxu3 %v2545_v28  ;;  %v2781_v33 = vsel %vm509_vm0, %v3483_v32, 0  ;;  %v1363_v48 = vshrl.u32 %v3521_v7, 16 }
  0x29   : > { %3203 = vmatmul.msk.bf16.gmra.mxu1 %vm454_vm2, %v365_v63  ;;  %v3893_v63 = vld [vmem:[%s3762_s25 + $0xc] sm:$0xf]  ;;  %v421_v16 = vsel %vm305_vm1, %v416_v1, %v420_v2  ;;  %2790 = vmatpush.bf16.msra.mxu0 %v2781_v33  ;;  %v1366_v49 = vshll.u32 %v3521_v7, 16  ;;  %v1372_v1 = vshrl.u32 %v3522_v41, 16  ;;  %v762_v28 = vrot.slane %v3852_v17, 1  ;;  %v3525_v33 = vld [vmem:[%s3762_s25 + $0x30] sm:$0xff] }
  0x2a   : > { %3208 = vmatmul.msk.bf16.gmra.mxu2 %vm454_vm2, %v405_v0  ;;  %v376_v0 = vor.u32 %v374_v56, %v372_v34  ;;  %v4782_v22 = vunpack.c.l.b16 %v3893_v63  ;;  %v422_v34 = vshrl.u32 %v3882_v52, 16  ;;  %v1365_v54 = vrot.slane %v1363_v48, 1 }
  0x2b   : > { %3198 = vmatmul.msk.bf16.gmra.mxu0 %vm454_vm2, %v325_v4  ;;  %v336_v4 = vor.u32 %v334_v61, %v332_v44  ;;  %v3649_v44 = vld [vmem:[%s3762_s25] sm:$0xf0]  ;;  %v1368_v56 = vrot.slane %v1366_v49, 2 }
  0x2c   : > { %3213 = vmatmul.msk.bf16.gmra.mxu3 %vm454_vm2, %v445_v26  ;;  %v381_v14 = vsel %vm305_vm1, %v376_v0, %v380_v15  ;;  %v1099_v18 = vpack.c.b16 %v4782_v22, %v1062_v3  ;;  %v2176_v15 = vsel %vm509_vm0, %v3377_v21, 0  ;;  %v3358_v26 = vld [vmem:[%s4779_s1 + $0xa] sm:$0x3]  ;;  %v424_v36 = vor.u32 %v422_v34, %v420_v2  ;;  %v3523_v61 = vld [vmem:[%s3762_s25 + $0x20] sm:$0xff] }
  0x2d   : > { %v341_v19 = vsel %vm305_vm1, %v336_v4, %v340_v46  ;;  %2185 = vmatpush.bf16.msra.mxu2 %v2176_v15  ;;  %v1815_v30 = vsel %vm509_vm0, %v3358_v26, 0  ;;  %v1369_v58 = vor.u32 %v1368_v56, %v1365_v54  ;;  %v1123_v0 = vrot.slane %v3523_v61, 1  ;;  %v3531_v22 = vld [vmem:[%s3762_s25 + $0x60] sm:$0xff] }
  0x2e   : > { %v1118_v23 = vrot.slane %v1099_v18, 1  ;;  %1824 = vmatpush.bf16.msra.mxu1 %v1815_v30  ;;  %v429_v39 = vsel %vm305_vm1, %v424_v36, %v3818_v43  ;;  %v1355_v46 = vshrl.u32 %v1099_v18, 16  ;;  %v1358_v47 = vshll.u32 %v1099_v18, 16 }
  0x2f   : > { %v1375_v2 = vshll.u32 %v3522_v41, 16  ;;  %v1374_v4 = vrot.slane %v1372_v1, 1  ;;  %v1381_v21 = vshrl.u32 %v3523_v61, 16  ;;  %v1127_v34 = vrot.slane %v3525_v33, 1  ;;  %v3527_v1 = vld [vmem:[%s3762_s25 + $0x40] sm:$0xff] }
  0x30   : > { %v1120_v35 = vsel %vm756_vm3, %v1118_v23, %v1119_v20  ;;  %v1357_v43 = vrot.slane %v1355_v46, 1  ;;  %v1360_v53 = vrot.slane %v1358_v47, 2  ;;  %v1384_v23 = vshll.u32 %v3523_v61, 16  ;;  %v3526_v47 = vld [vmem:[%s3762_s25 + $0x38] sm:$0xff] }
  0x31   : > { %v1377_v7 = vrot.slane %v1375_v2, 2  ;;  %v1383_v25 = vrot.slane %v1381_v21, 1 }
  0x32   : > { %v1361_v57 = vor.u32 %v1360_v53, %v1357_v43  ;;  %v1386_v26 = vrot.slane %v1384_v23, 2  ;;  %v1402_v43 = vshll.u32 %v3525_v33, 16  ;;  %v768_v23 = vrot.slane %v3768_v9, 1 }
  0x34   : > { %v1370_v62 = vsel %vm1353_vm4, %v1361_v57, %v1369_v58  ;;  %v1387_v30 = vor.u32 %v1386_v26, %v1383_v25  ;;  %v1404_v57 = vrot.slane %v1402_v43, 2 }
  0x39   : > { %3204 = vmatmul.msk.bf16.gmra.mxu1 %vm454_vm2, %v373_v24  ;;  %v1121_v24 = vrot.slane %v3522_v41, 1 }
  0x3a   : > { %3209 = vmatmul.msk.bf16.gmra.mxu2 %vm454_vm2, %v413_v45  ;;  %v3650_v45 = vld [vmem:[%s3762_s25] sm:$0xe] }
  0x3b   : > { %3199 = vmatmul.msk.bf16.gmra.mxu0 %vm454_vm2, %v333_v50  ;;  %v3651_v50 = vor.u32 %v3650_v45, %v3649_v44  ;;  %v1122_v51 = vsel %vm756_vm3, %v1119_v20, %v1121_v24  ;;  %v1124_v3 = vsel %vm756_vm3, %v1121_v24, %v1123_v0  ;;  %v764_v24 = vrot.slane %v3861_v27, 1 }
  0x3c   : > { %3214 = vmatmul.msk.bf16.gmra.mxu3 %vm454_vm2, %v453_v59 }
  0x49   : > { %3205 = vmatmul.msk.bf16.gmra.mxu1 %vm454_vm2, %v381_v14  ;;  %v760_v14 = vrot.slane %v3816_v42, 1 }
  0x4a   : > { %3210 = vmatmul.msk.bf16.gmra.mxu2 %vm454_vm2, %v421_v16  ;;  %v1378_v16 = vor.u32 %v1377_v7, %v1374_v4  ;;  %v1131_v4 = vrot.slane %v3527_v1, 1  ;;  %v1408_v7 = vshrl.u32 %v3526_v47, 16 }
  0x4b   : > { %3200 = vmatmul.msk.bf16.gmra.mxu0 %vm454_vm2, %v341_v19  ;;  %v763_v32 = vsel %vm756_vm3, %v760_v14, %v762_v28 }
  0x4c   : > { %3321 = vmatmul.msk.bf16.vlgmr.msrb.gmra.mxu3 %vm454_vm2, %v1120_v35  ;;  %v1379_v19 = vsel %vm1353_vm4, %v1369_v58, %v1378_v16  ;;  %v1410_v21 = vrot.slane %v1408_v7, 1 }
  0x59   : > { %3206 = vmatmul.msk.bf16.gmra.mxu1 %vm454_vm2, %v3865_v29  ;;  %v757_v29 = vrot.slane %v3651_v50, 1  ;;  %v1129_v50 = vrot.slane %v3526_v47, 1 }
  0x5a   : > { %3211 = vmatmul.msk.bf16.gmra.mxu2 %vm454_vm2, %v429_v39 }
  0x5b   : > { %3201 = vmatmul.msk.bf16.gmra.mxu0 %vm454_vm2, %v349_v55  ;;  %v758_v55 = vrot.slane %v3780_v13, 1  ;;  %v1130_v56 = vsel %vm756_vm3, %v1127_v34, %v1129_v50 }
  0x5c   : > { %3322 = vmatmul.msk.bf16.gmra.mxu3 %vm454_vm2, %v1122_v51  ;;  %v1399_v51 = vshrl.u32 %v3525_v33, 16 }
  0x5d   : > { %v759_v59 = vsel %vm756_vm3, %v757_v29, %v758_v55  ;;  %v761_v18 = vsel %vm756_vm3, %v758_v55, %v760_v14  ;;  %v1411_v14 = vshll.u32 %v3526_v47, 16  ;;  %v770_v47 = vrot.slane %v3807_v37, 1 }
  0x5e   : > { %v1401_v55 = vrot.slane %v1399_v51, 1 }
  0x60   : > { %v1405_v58 = vor.u32 %v1404_v57, %v1401_v55  ;;  %v3529_v55 = vld [vmem:[%s3762_s25 + $0x50] sm:$0xff] }
  0x69   : > { %3215 = vmatmul.msk.bf16.vlgmr.msrb.gmra.mxu1 %vm454_vm2, %v3777_v12  ;;  %v3524_v12 = vld [vmem:[%s3762_s25 + $0x28] sm:$0xff] }
  0x6a   : > { %3234 = vmatmul.msk.bf16.vlgmr.msrb.gmra.mxu2 %vm454_vm2, %v759_v59  ;;  %v1125_v20 = vrot.slane %v3524_v12, 1  ;;  %v1390_v35 = vshrl.u32 %v3524_v12, 16  ;;  %v1393_v36 = vshll.u32 %v3524_v12, 16 }
  0x6b   : > { %3340 = vmatmul.msk.bf16.vlgmr.msrb.gmra.mxu0 %vm454_vm2, %v1370_v62 }
  0x6c   : > { %3323 = vmatmul.msk.bf16.gmra.mxu3 %vm454_vm2, %v1124_v3  ;;  %v1126_v15 = vsel %vm756_vm3, %v1123_v0, %v1125_v20  ;;  %v1128_v39 = vsel %vm756_vm3, %v1125_v20, %v1127_v34  ;;  %v1392_v41 = vrot.slane %v1390_v35, 1  ;;  %v1395_v44 = vrot.slane %v1393_v36, 2 }
  0x6d   : > { %v1417_v35 = vshrl.u32 %v3527_v1, 16  ;;  %v1420_v36 = vshll.u32 %v3527_v1, 16 }
  0x6e   : > { %v1396_v45 = vor.u32 %v1395_v44, %v1392_v41 }
  0x70   : > { %v1397_v49 = vsel %vm1353_vm4, %v1387_v30, %v1396_v45  ;;  %v1406_v3 = vsel %vm1353_vm4, %v1396_v45, %v1405_v58 }
  0x79   : > { %3216 = vmatmul.msk.bf16.gmra.mxu1 %vm454_vm2, %v3780_v13  ;;  %v1388_v13 = vsel %vm1353_vm4, %v1378_v16, %v1387_v30 }
  0x7a   : > { %3235 = vmatmul.msk.bf16.gmra.mxu2 %vm454_vm2, %v761_v18 }
  0x7b   : > { %3341 = vmatmul.msk.bf16.gmra.mxu0 %vm454_vm2, %v1379_v19  ;;  %v1132_v19 = vsel %vm756_vm3, %v1129_v50, %v1131_v4 }
  0x7c   : > { %3324 = vmatmul.msk.bf16.gmra.mxu3 %vm454_vm2, %v1126_v15 }
  0x89   : > { %3217 = vmatmul.msk.bf16.gmra.mxu1 %vm454_vm2, %v3816_v42  ;;  %v765_v42 = vsel %vm756_vm3, %v762_v28, %v764_v24 }
  0x8a   : > { %3236 = vmatmul.msk.bf16.gmra.mxu2 %vm454_vm2, %v763_v32  ;;  %v3528_v32 = vld [vmem:[%s3762_s25 + $0x48] sm:$0xff] }
  0x8b   : > { %3342 = vmatmul.msk.bf16.gmra.mxu0 %vm454_vm2, %v1388_v13  ;;  %v1133_v34 = vrot.slane %v3528_v32, 1  ;;  %v1429_v1 = vshll.u32 %v3528_v32, 16 }
  0x8c   : > { %3325 = vmatmul.msk.bf16.gmra.mxu3 %vm454_vm2, %v1128_v39 }
  0x96   : > { %v3967_v46 = vpop.f32.mrf.mxu1 }
  0x98   : > { %v3971_v48 = vpop.f32.mrf.mxu0 }
  0x99   : > { %3218 = vmatmul.msk.bf16.gmra.mxu1 %vm454_vm2, %v3852_v17  ;;  %v766_v17 = vrot.slane %v3765_v8, 1 }
  0x9a   : > { %3237 = vmatmul.msk.bf16.gmra.mxu2 %vm454_vm2, %v765_v42  ;;  %v1419_v42 = vrot.slane %v1417_v35, 1  ;;  %v3530_v35 = vld [vmem:[%s3762_s25 + $0x58] sm:$0xff] }
  0x9b   : > { %3343 = vmatmul.msk.bf16.gmra.mxu0 %vm454_vm2, %v1397_v49  ;;  %v767_v0 = vsel %vm756_vm3, %v764_v24, %v766_v17  ;;  %v769_v30 = vsel %vm756_vm3, %v766_v17, %v768_v23  ;;  %v1134_v24 = vsel %vm756_vm3, %v1131_v4, %v1133_v34 }
  0x9c   : > { %3326 = vmatmul.msk.bf16.gmra.mxu3 %vm454_vm2, %v1130_v56  ;;  %v771_v56 = vsel %vm756_vm3, %v768_v23, %v770_v47 }
  0x9d   : > { %v3978_v53 = vpop.f32.mrf.mxu2 }
  0x9e   : > { %v3980_v54 = vpop.f32.mrf.mxu1 }
  0x9f   : > { %v3989_v61 = vpop.f32.mrf.mxu3 }
  0xa0   : > { %v3983_v29 = vpop.f32.mrf.mxu0  ;;  %4784 = vst [vmem:[#allocation2_spill] sm:$0xff] %v3989_v61 }
  0xa5   : > { %v3987_v59 = vpop.f32.mrf.mxu2 }
  0xa6   : > { %v3991_v62 = vpop.f32.mrf.mxu1 }
  0xa7   : > { %v4004_v18 = vpop.f32.mrf.mxu3 }
  0xa8   : > { %v3995_v2 = vpop.f32.mrf.mxu0  ;;  %4785 = vst [vmem:[#allocation3_spill] sm:$0xff] %v4004_v18 }
  0xa9   : > { %3219 = vmatmul.msk.bf16.gmra.mxu1 %vm454_vm2, %v3861_v27  ;;  %v1413_v27 = vrot.slane %v1411_v14, 2 }
  0xaa   : > { %3238 = vmatmul.msk.bf16.gmra.mxu2 %vm454_vm2, %v767_v0  ;;  %v1426_v0 = vshrl.u32 %v3528_v32, 16 }
  0xab   : > { %3344 = vmatmul.msk.bf16.gmra.mxu0 %vm454_vm2, %v1406_v3  ;;  %v1414_v15 = vor.u32 %v1413_v27, %v1410_v21  ;;  %v772_v27 = vrot.slane %v3844_v5, 1 }
  0xac   : > { %3327 = vmatmul.msk.bf16.gmra.mxu3 %vm454_vm2, %v1132_v19  ;;  %v1428_v21 = vrot.slane %v1426_v0, 1 }
  0xad   : > { %v4002_v16 = vpop.f32.mrf.mxu2  ;;  %v1415_v13 = vsel %vm1353_vm4, %v1405_v58, %v1414_v15  ;;  %v1135_v58 = vrot.slane %v3529_v55, 1 }
  0xae   : > { %v4006_v12 = vpop.f32.mrf.mxu1 }
  0xaf   : > { %v4015_v26 = vpop.f32.mrf.mxu3  ;;  %v1136_v14 = vsel %vm756_vm3, %v1133_v34, %v1135_v58 }
  0xb0   : > { %v4009_v20 = vpop.f32.mrf.mxu0  ;;  %4786 = vst [vmem:[#allocation4_spill] sm:$0xff] %v4015_v26 }
  0xb5   : > { %v4013_v25 = vpop.f32.mrf.mxu2 }
  0xb6   : > { %v4017_v28 = vpop.f32.mrf.mxu1 }
  0xb7   : > { %v4030_v41 = vpop.f32.mrf.mxu3 }
  0xb8   : > { %v4021_v33 = vpop.f32.mrf.mxu0  ;;  %4787 = vst [vmem:[#allocation5_spill] sm:$0xff] %v4030_v41 }
  0xb9   : > { %3220 = vmatmul.msk.bf16.gmra.mxu1 %vm454_vm2, %v3765_v8  ;;  %v1422_v8 = vrot.slane %v1420_v36, 2 }
  0xba   : > { %3239 = vmatmul.msk.bf16.gmra.mxu2 %vm454_vm2, %v769_v30 }
  0xbb   : > { %3345 = vmatmul.msk.bf16.gmra.mxu0 %vm454_vm2, %v1415_v13  ;;  %v1423_v49 = vor.u32 %v1422_v8, %v1419_v42  ;;  %v773_v13 = vsel %vm756_vm3, %v770_v47, %v772_v27  ;;  %v1435_v42 = vshrl.u32 %v3529_v55, 16  ;;  %v1438_v8 = vshll.u32 %v3529_v55, 16 }
  0xbc   : > { %3328 = vmatmul.msk.bf16.gmra.mxu3 %vm454_vm2, %v1134_v24  ;;  %v1137_v24 = vrot.slane %v3530_v35, 1 }
  0xbd   : > { %v4028_v39 = vpop.f32.mrf.mxu2  ;;  %v1424_v17 = vsel %vm1353_vm4, %v1414_v15, %v1423_v49 }
  0xbe   : > { %v4032_v44 = vpop.f32.mrf.mxu1  ;;  %v1138_v0 = vsel %vm756_vm3, %v1135_v58, %v1137_v24  ;;  %v1139_v58 = vrot.slane %v3531_v22, 1 }
  0xbf   : > { %v4041_v51 = vpop.f32.mrf.mxu3 }
  0xc0   : > { %v4035_v45 = vpop.f32.mrf.mxu0  ;;  %4788 = vst [vmem:[#allocation6_spill] sm:$0xff] %v4041_v51  ;;  %v1140_v26 = vsel %vm756_vm3, %v1137_v24, %v1139_v58  ;;  %v3532_v24 = vld [vmem:[%s3762_s25 + $0x68] sm:$0xff] }
  0xc5   : > { %v4039_v50 = vpop.f32.mrf.mxu2 }
  0xc6   : > { %v4043_v43 = vpop.f32.mrf.mxu1 }
  0xc7   : > { %v4056_v4 = vpop.f32.mrf.mxu3 }
  0xc8   : > { %v4047_v57 = vpop.f32.mrf.mxu0  ;;  %4789 = vst [vmem:[#allocation7_spill] sm:$0xff] %v4056_v4 }
  0xc9   : > { %3221 = vmatmul.msk.bf16.gmra.mxu1 %vm454_vm2, %v3768_v9  ;;  %v1431_v9 = vrot.slane %v1429_v1, 2 }
  0xca   : > { %3240 = vmatmul.msk.bf16.gmra.mxu2 %vm454_vm2, %v771_v56 }
  0xcb   : > { %3346 = vmatmul.msk.bf16.gmra.mxu0 %vm454_vm2, %v1424_v17  ;;  %v1432_v23 = vor.u32 %v1431_v9, %v1428_v21 }
  0xcc   : > { %3329 = vmatmul.msk.bf16.gmra.mxu3 %vm454_vm2, %v1136_v14  ;;  %v1440_v14 = vrot.slane %v1438_v8, 2  ;;  %v1444_v8 = vshrl.u32 %v3530_v35, 16 }
  0xcd   : > { %v4054_v3 = vpop.f32.mrf.mxu2  ;;  %v1433_v34 = vsel %vm1353_vm4, %v1423_v49, %v1432_v23  ;;  %v1437_v49 = vrot.slane %v1435_v42, 1 }
  0xce   : > { %v4058_v7 = vpop.f32.mrf.mxu1  ;;  %v1446_v61 = vrot.slane %v1444_v8, 1 }
  0xcf   : > { %v1221_v30 = vpop.f32.mrf.mxu3  ;;  %v1441_v21 = vor.u32 %v1440_v14, %v1437_v49 }
  0xd0   : > { %v4061_v19 = vpop.f32.mrf.mxu0 }
  0xd1   : > { %v1442_v51 = vsel %vm1353_vm4, %v1432_v23, %v1441_v21 }
  0xd5   : > { %v4065_v15 = vpop.f32.mrf.mxu2 }
  0xd6   : > { %v4067_v32 = vpop.f32.mrf.mxu1 }
  0xd7   : > { %v1223_v17 = vpop.f32.mrf.mxu3 }
  0xd8   : > { %v4071_v36 = vpop.f32.mrf.mxu0 }
  0xd9   : > { %3222 = vmatmul.msk.bf16.gmra.mxu1 %vm454_vm2, %v3807_v37  ;;  %v774_v37 = vrot.slane %v3835_v60, 1 }
  0xda   : > { %3241 = vmatmul.msk.bf16.gmra.mxu2 %vm454_vm2, %v773_v13 }
  0xdb   : > { %3347 = vmatmul.msk.bf16.gmra.mxu0 %vm454_vm2, %v1433_v34  ;;  %v775_v34 = vsel %vm756_vm3, %v772_v27, %v774_v37 }
  0xdc   : > { %3330 = vmatmul.msk.bf16.gmra.mxu3 %vm454_vm2, %v1138_v0  ;;  %v1447_v0 = vshll.u32 %v3530_v35, 16 }
  0xdd   : > { %v4078_v56 = vpop.f32.mrf.mxu2 }
  0xde   : > { %4790 = vst [vmem:[#allocation8_spill] sm:$0xff] %v4078_v56  ;;  %v4080_v47 = vpop.f32.mrf.mxu1 }
  0xdf   : > { %v1226_v13 = vpop.f32.mrf.mxu3 }
  0xe0   : > { %v4083_v1 = vpop.f32.mrf.mxu0 }
  0xe5   : > { %v4087_v9 = vpop.f32.mrf.mxu2 }
  0xe6   : > { %4791 = vst [vmem:[#allocation9_spill] sm:$0xff] %v4087_v9  ;;  %v660_v55 = vpop.f32.mrf.mxu1 }
  0xe7   : > { %v661_v42 = vadd.f32 %v660_v55, %v3971_v48  ;;  %v1228_v14 = vpop.f32.mrf.mxu3 }
  0xe8   : > { %v1590_v4 = vpop.f32.mrf.mxu0 }
  0xe9   : > { %3223 = vmatmul.msk.bf16.gmra.mxu1 %vm454_vm2, %v3844_v5  ;;  %v1449_v5 = vrot.slane %v1447_v0, 2  ;;  %v1456_v0 = vshll.u32 %v3531_v22, 16 }
  0xea   : > { %3242 = vmatmul.msk.bf16.gmra.mxu2 %vm454_vm2, %v775_v34 }
  0xeb   : > { %3348 = vmatmul.msk.bf16.gmra.mxu0 %vm454_vm2, %v1442_v51  ;;  %v776_v51 = vrot.slane %v3771_v10, 1  ;;  %v1450_v35 = vor.u32 %v1449_v5, %v1446_v61 }
  0xec   : > { %3331 = vmatmul.msk.bf16.gmra.mxu3 %vm454_vm2, %v1140_v26 }
  0xed   : > { %v860_v49 = vpop.f32.mrf.mxu2  ;;  %v777_v56 = vsel %vm756_vm3, %v774_v37, %v776_v51  ;;  %v1451_v8 = vsel %vm1353_vm4, %v1441_v21, %v1450_v35 }
  0xee   : > { %v950_v41 = vadd.f32 %v860_v49, %v661_v42  ;;  %v662_v27 = vpop.f32.mrf.mxu1 }
  0xef   : > { %v663_v48 = vadd.f32 %v662_v27, %v3983_v29  ;;  %v1231_v9 = vpop.f32.mrf.mxu3  ;;  %v1141_v29 = vrot.slane %v3532_v24, 1 }
  0xf0   : > { %v1311_v23 = vadd.f32 %v1221_v30, %v950_v41  ;;  %v1592_v18 = vpop.f32.mrf.mxu0 }
  0xf1   : > { %v1142_v21 = vsel %vm756_vm3, %v1139_v58, %v1141_v29  ;;  %v3533_v58 = vld [vmem:[%s3762_s25 + $0x70] sm:$0xff] }
  0xf2   : > { %v4099_v34 = vadd.f32 %v1590_v4, %v1311_v23  ;;  %v1453_v4 = vshrl.u32 %v3531_v22, 16 }
  0xf5   : > { %v862_v55 = vpop.f32.mrf.mxu2 }
  0xf6   : > { %v951_v42 = vadd.f32 %v862_v55, %v663_v48  ;;  %v665_v49 = vpop.f32.mrf.mxu1  ;;  %v1455_v48 = vrot.slane %v1453_v4, 1  ;;  %v778_v55 = vrot.slane %v3774_v11, 1 }
  0xf7   : > { %v666_v61 = vadd.f32 %v665_v49, %v3995_v2  ;;  %v1233_v27 = vpop.f32.mrf.mxu3 }
  0xf8   : > { %v1312_v41 = vadd.f32 %v1223_v17, %v951_v42  ;;  %v1595_v30 = vpop.f32.mrf.mxu0 }
  0xf9   : > { %3224 = vmatmul.msk.bf16.gmra.mxu1 %vm454_vm2, %v3835_v60 }
  0xfa   : > { %3243 = vmatmul.msk.bf16.gmra.mxu2 %vm454_vm2, %v777_v56  ;;  %v4109_v26 = vadd.f32 %v1592_v18, %v1312_v41  ;;  %v1458_v56 = vrot.slane %v1456_v0, 2 }
  0xfb   : > { %3349 = vmatmul.msk.bf16.gmra.mxu0 %vm454_vm2, %v1451_v8 }
  0xfc   : > { %3332 = vmatmul.msk.bf16.gmra.mxu3 %vm454_vm2, %v1142_v21  ;;  %v1459_v22 = vor.u32 %v1458_v56, %v1455_v48 }
  0xfd   : > { %v865_v37 = vpop.f32.mrf.mxu2 }
  0xfe   : > { %v952_v17 = vadd.f32 %v865_v37, %v666_v61  ;;  %v667_v23 = vpop.f32.mrf.mxu1  ;;  %v779_v61 = vsel %vm756_vm3, %v776_v51, %v778_v55  ;;  %v1460_v4 = vsel %vm1353_vm4, %v1450_v35, %v1459_v22 }
  0xff   : > { %v668_v2 = vadd.f32 %v667_v23, %v4009_v20  ;;  %v1236_v49 = vpop.f32.mrf.mxu3  ;;  %v1143_v20 = vrot.slane %v3533_v58, 1  ;;  %v1465_v23 = vshll.u32 %v3532_v24, 16 }
 0x100   : > { %v1313_v5 = vadd.f32 %v1226_v13, %v952_v17  ;;  %v1597_v60 = vpop.f32.mrf.mxu0  ;;  %v1462_v17 = vshrl.u32 %v3532_v24, 16 }
 0x101   : > { %v1144_v35 = vsel %vm756_vm3, %v1141_v29, %v1143_v20  ;;  %v3534_v29 = vld [vmem:[%s3762_s25 + $0x78] sm:$0xff] }
 0x102   : > { %v4115_v18 = vadd.f32 %v1595_v30, %v1313_v5  ;;  %v1464_v56 = vrot.slane %v1462_v17, 1 }
 0x105   : > { %v867_v42 = vpop.f32.mrf.mxu2 }
 0x106   : > { %v953_v41 = vadd.f32 %v867_v42, %v668_v2  ;;  %v670_v8 = vpop.f32.mrf.mxu1  ;;  %v1467_v2 = vrot.slane %v1465_v23, 2  ;;  %v780_v42 = vrot.slane %v3811_v38, 1 }
 0x107   : > { %v671_v0 = vadd.f32 %v670_v8, %v4021_v33  ;;  %v1238_v21 = vpop.f32.mrf.mxu3 }
 0x108   : > { %v1314_v13 = vadd.f32 %v1228_v14, %v953_v41  ;;  %v1600_v37 = vpop.f32.mrf.mxu0  ;;  %v1468_v24 = vor.u32 %v1467_v2, %v1464_v56 }
 0x109   : > { %3225 = vmatmul.msk.bf16.gmra.mxu1 %vm454_vm2, %v3771_v10 }
 0x10a   : > { %3244 = vmatmul.msk.bf16.gmra.mxu2 %vm454_vm2, %v779_v61  ;;  %v4125_v30 = vadd.f32 %v1597_v60, %v1314_v13  ;;  %v1469_v17 = vsel %vm1353_vm4, %v1459_v22, %v1468_v24 }
 0x10b   : > { %3350 = vmatmul.msk.bf16.gmra.mxu0 %vm454_vm2, %v1460_v4  ;;  %v781_v4 = vsel %vm756_vm3, %v778_v55, %v780_v42 }
 0x10c   : > { %3333 = vmatmul.msk.bf16.gmra.mxu3 %vm454_vm2, %v1144_v35 }
 0x10d   : > { %v870_v51 = vpop.f32.mrf.mxu2 }
 0x10e   : > { %v954_v14 = vadd.f32 %v870_v51, %v671_v0  ;;  %v672_v5 = vpop.f32.mrf.mxu1  ;;  %v1471_v51 = vshrl.u32 %v3533_v58, 16 }
 0x10f   : > { %v673_v33 = vadd.f32 %v672_v5, %v4035_v45  ;;  %v1241_v8 = vpop.f32.mrf.mxu3  ;;  %v1145_v45 = vrot.slane %v3534_v29, 1 }
 0x110   : > { %v1315_v48 = vadd.f32 %v1231_v9, %v954_v14  ;;  %v1602_v10 = vpop.f32.mrf.mxu0  ;;  %v1474_v14 = vshll.u32 %v3533_v58, 16  ;;  %v1473_v56 = vrot.slane %v1471_v51, 1 }
 0x111   : > { %v1146_v22 = vsel %vm756_vm3, %v1143_v20, %v1145_v45  ;;  %v3535_v20 = vld [vmem:[%s3762_s25 + $0x80] sm:$0xff] }
 0x112   : > { %v4131_v60 = vadd.f32 %v1600_v37, %v1315_v48  ;;  %v1476_v2 = vrot.slane %v1474_v14, 2  ;;  %v1480_v14 = vshrl.u32 %v3534_v29, 16 }
 0x114   : > { %v1477_v58 = vor.u32 %v1476_v2, %v1473_v56  ;;  %v784_v2 = vrot.slane %v3882_v52, 1 }
 0x115   : > { %v872_v41 = vpop.f32.mrf.mxu2 }
 0x116   : > { %v955_v61 = vadd.f32 %v872_v41, %v673_v33  ;;  %v675_v13 = vpop.f32.mrf.mxu1  ;;  %v782_v33 = vrot.slane %v3847_v6, 1 }
 0x117   : > { %v676_v23 = vadd.f32 %v675_v13, %v4047_v57  ;;  %v1243_v5 = vpop.f32.mrf.mxu3 }
 0x118   : > { %v1316_v9 = vadd.f32 %v1233_v27, %v955_v61  ;;  %v1605_v0 = vpop.f32.mrf.mxu0 }
 0x119   : > { %3226 = vmatmul.msk.bf16.gmra.mxu1 %vm454_vm2, %v3774_v11 }
 0x11a   : > { %3245 = vmatmul.msk.bf16.gmra.mxu2 %vm454_vm2, %v781_v4  ;;  %v4141_v37 = vadd.f32 %v1602_v10, %v1316_v9  ;;  %v783_v9 = vsel %vm756_vm3, %v780_v42, %v782_v33 }
 0x11b   : > { %3351 = vmatmul.msk.bf16.gmra.mxu0 %vm454_vm2, %v1469_v17 }
 0x11c   : > { %3334 = vmatmul.msk.bf16.gmra.mxu3 %vm454_vm2, %v1146_v22 }
 0x11d   : > { %v875_v55 = vpop.f32.mrf.mxu2 }
 0x11e   : > { %v956_v27 = vadd.f32 %v875_v55, %v676_v23  ;;  %v677_v35 = vpop.f32.mrf.mxu1  ;;  %v1478_v23 = vsel %vm1353_vm4, %v1468_v24, %v1477_v58  ;;  %v1483_v55 = vshll.u32 %v3534_v29, 16 }
 0x11f   : > { %v678_v57 = vadd.f32 %v677_v35, %v4061_v19  ;;  %v1246_v61 = vpop.f32.mrf.mxu3  ;;  %v1147_v19 = vrot.slane %v3535_v20, 1 }
 0x120   : > { %v1317_v48 = vadd.f32 %v1236_v49, %v956_v27  ;;  %v1607_v11 = vpop.f32.mrf.mxu0  ;;  %v1485_v56 = vrot.slane %v1483_v55, 2  ;;  %v1492_v55 = vshll.u32 %v3535_v20, 16 }
 0x121   : > { %v1148_v24 = vsel %vm756_vm3, %v1145_v45, %v1147_v19  ;;  %v3536_v45 = vld [vmem:[%s3762_s25 + $0x88] sm:$0xff] }
 0x122   : > { %v4147_v10 = vadd.f32 %v1605_v0, %v1317_v48  ;;  %v1482_v48 = vrot.slane %v1480_v14, 1  ;;  %v1489_v14 = vshrl.u32 %v3535_v20, 16 }
 0x124   : > { %v1486_v29 = vor.u32 %v1485_v56, %v1482_v48  ;;  %v786_v48 = vrot.slane %v3798_v31, 1 }
 0x125   : > { %v877_v41 = vpop.f32.mrf.mxu2 }
 0x126   : > { %v957_v13 = vadd.f32 %v877_v41, %v678_v57  ;;  %v680_v4 = vpop.f32.mrf.mxu1 }
 0x127   : > { %v681_v51 = vadd.f32 %v680_v4, %v4071_v36  ;;  %v1248_v27 = vpop.f32.mrf.mxu3 }
 0x128   : > { %v1318_v49 = vadd.f32 %v1238_v21, %v957_v13  ;;  %v1610_v17 = vpop.f32.mrf.mxu0 }
 0x129   : > { %3227 = vmatmul.msk.bf16.gmra.mxu1 %vm454_vm2, %v3811_v38 }
 0x12a   : > { %3246 = vmatmul.msk.bf16.gmra.mxu2 %vm454_vm2, %v783_v9  ;;  %v4157_v0 = vadd.f32 %v1607_v11, %v1318_v49  ;;  %v785_v9 = vsel %vm756_vm3, %v782_v33, %v784_v2 }
 0x12b   : > { %3352 = vmatmul.msk.bf16.gmra.mxu0 %vm454_vm2, %v1478_v23  ;;  %v1487_v23 = vsel %vm1353_vm4, %v1477_v58, %v1486_v29 }
 0x12c   : > { %3335 = vmatmul.msk.bf16.gmra.mxu3 %vm454_vm2, %v1148_v24  ;;  %v1491_v24 = vrot.slane %v1489_v14, 1 }
 0x12d   : > { %v880_v42 = vpop.f32.mrf.mxu2 }
 0x12e   : > { %v958_v21 = vadd.f32 %v880_v42, %v681_v51  ;;  %v682_v35 = vpop.f32.mrf.mxu1 }
 0x12f   : > { %v683_v36 = vadd.f32 %v682_v35, %v4083_v1  ;;  %v1251_v41 = vpop.f32.mrf.mxu3  ;;  %v1149_v1 = vrot.slane %v3536_v45, 1 }
 0x130   : > { %v1319_v22 = vadd.f32 %v1241_v8, %v958_v21  ;;  %v1612_v38 = vpop.f32.mrf.mxu0 }
 0x131   : > { %v1150_v58 = vsel %vm756_vm3, %v1147_v19, %v1149_v1  ;;  %v3537_v19 = vld [vmem:[%s3762_s25 + $0x90] sm:$0xff] }
 0x132   : > { %v4163_v11 = vadd.f32 %v1610_v17, %v1319_v22  ;;  %v1494_v22 = vrot.slane %v1492_v55, 2 }
 0x134   : > { %v1495_v20 = vor.u32 %v1494_v22, %v1491_v24 }
 0x135   : > { %v882_v57 = vpop.f32.mrf.mxu2 }
 0x136   : > { %v959_v13 = vadd.f32 %v882_v57, %v683_v36  ;;  %v685_v4 = vpop.f32.mrf.mxu1 }
 0x137   : > { %v686_v51 = vadd.f32 %v685_v4, %v3967_v46  ;;  %v1253_v42 = vpop.f32.mrf.mxu3  ;;  %v787_v4 = vsel %vm756_vm3, %v784_v2, %v786_v48  ;;  %v1498_v2 = vshrl.u32 %v3536_v45, 16 }
 0x138   : > { %v1320_v8 = vadd.f32 %v1243_v5, %v959_v13  ;;  %v1615_v49 = vpop.f32.mrf.mxu0 }
 0x139   : > { %3228 = vmatmul.msk.bf16.gmra.mxu1 %vm454_vm2, %v3847_v6 }
 0x13a   : > { %3247 = vmatmul.msk.bf16.gmra.mxu2 %vm454_vm2, %v785_v9  ;;  %v4173_v17 = vadd.f32 %v1612_v38, %v1320_v8  ;;  %v1496_v8 = vsel %vm1353_vm4, %v1486_v29, %v1495_v20 }
 0x13b   : > { %3353 = vmatmul.msk.bf16.gmra.mxu0 %vm454_vm2, %v1487_v23  ;;  %v1501_v23 = vshll.u32 %v3536_v45, 16 }
 0x13c   : > { %3336 = vmatmul.msk.bf16.gmra.mxu3 %vm454_vm2, %v1150_v58  ;;  %v1022_v58 = vld [vmem:[%s3762_s25 + $0x98] sm:$0x1] }
 0x13d   : > { %v885_v33 = vpop.f32.mrf.mxu2 }
 0x13e   : > { %v960_v5 = vadd.f32 %v885_v33, %v686_v51  ;;  %v687_v21 = vpop.f32.mrf.mxu1 }
 0x13f   : > { %v688_v46 = vadd.f32 %v687_v21, %v3980_v54  ;;  %v1256_v36 = vpop.f32.mrf.mxu3  ;;  %v1151_v54 = vrot.slane %v3537_v19, 1  ;;  %v1503_v21 = vrot.slane %v1501_v23, 2 }
 0x140   : > { %v1321_v35 = vadd.f32 %v1246_v61, %v960_v5  ;;  %v1617_v6 = vpop.f32.mrf.mxu0  ;;  %v1500_v5 = vrot.slane %v1498_v2, 1  ;;  %v3684_v2 = vld [vmem:[%s3762_s25 + $0x78] sm:$0xff] }
 0x142   : > { %v4179_v38 = vadd.f32 %v1615_v49, %v1321_v35 }
 0x145   : > { %v887_v56 = vpop.f32.mrf.mxu2 }
 0x146   : > { %v961_v57 = vadd.f32 %v887_v56, %v688_v46  ;;  %v690_v13 = vpop.f32.mrf.mxu1 }
 0x147   : > { %v691_v49 = vadd.f32 %v690_v13, %v3991_v62  ;;  %v4193_v51 = vpop.f32.mrf.mxu3  ;;  %v4201_v62 = vld [vmem:[%s3762_s25 + $0x80] sm:$0xff] }
 0x148   : > { %v1322_v61 = vadd.f32 %v1248_v27, %v961_v57  ;;  %v1620_v9 = vpop.f32.mrf.mxu0  ;;  %v788_v45 = vrot.slane %v4201_v62, 1 }
 0x149   : > { %3229 = vmatmul.msk.bf16.gmra.mxu1 %vm454_vm2, %v3882_v52  ;;  %v1152_v52 = vsel %vm756_vm3, %v1149_v1, %v1151_v54  ;;  %v1504_v1 = vor.u32 %v1503_v21, %v1500_v5  ;;  %v4225_v21 = vld [vmem:[%s3762_s25 + $0x18] sm:$0xff] }
 0x14a   : > { %3248 = vmatmul.msk.bf16.gmra.mxu2 %vm454_vm2, %v787_v4  ;;  %v4189_v31 = vadd.f32 %v1617_v6, %v1322_v61  ;;  %v1098_v6 = vunpack.c.l.b16 %v1022_v58  ;;  %v789_v57 = vsel %vm756_vm3, %v786_v48, %v788_v45 }
 0x14b   : > { %3354 = vmatmul.msk.bf16.gmra.mxu0 %vm454_vm2, %v1496_v8  ;;  %v1952_v8 = vld [vmem:[%s3762_s25 + $0x10] sm:$0xc] }
 0x14c   : > { %3337 = vmatmul.msk.bf16.gmra.mxu3 %vm454_vm2, %v1152_v52  ;;  %v1117_v13 = vpack.c.b16 %v1098_v6, %v1098_v6  ;;  %v2028_v48 = vunpack.c.l.b16 %v1952_v8 }
 0x14d   : > { %v890_v27 = vpop.f32.mrf.mxu2 }
 0x14e   : > { %v962_v29 = vadd.f32 %v890_v27, %v691_v49  ;;  %v692_v14 = vpop.f32.mrf.mxu1  ;;  %v4211_v49 = vld [vmem:[%s3762_s25 + $0x14] sm:$0xf]  ;;  %v1153_v23 = vrot.slane %v1117_v13, 1  ;;  %v1507_v27 = vshrl.u32 %v3537_v19, 16 }
 0x14f   : > { %v693_v24 = vadd.f32 %v692_v14, %v4006_v12  ;;  %v4205_v22 = vpop.f32.mrf.mxu3 }
 0x150   : > { %v1323_v55 = vadd.f32 %v1251_v41, %v962_v29  ;;  %v1622_v33 = vpop.f32.mrf.mxu0  ;;  %v1510_v29 = vshll.u32 %v3537_v19, 16 }
 0x152   : > { %v4198_v35 = vadd.f32 %v1620_v9, %v1323_v55  ;;  %v1505_v9 = vsel %vm1353_vm4, %v1495_v20, %v1504_v1 }
 0x155   : > { %v892_v41 = vpop.f32.mrf.mxu2 }
 0x156   : > { %v963_v46 = vadd.f32 %v892_v41, %v693_v24  ;;  %v695_v56 = vpop.f32.mrf.mxu1  ;;  %v1509_v41 = vrot.slane %v1507_v27, 1 }
 0x157   : > { %v696_v20 = vadd.f32 %v695_v56, %v4017_v28  ;;  %v4221_v52 = vpop.f32.mrf.mxu3  ;;  %v1347_v28 = vld [vmem:[%s3762_s25 + $0x98] sm:$0x3]  ;;  %v4233_v56 = vld [vmem:[%s3762_s25 + $0x88] sm:$0xff] }
 0x158   : > { %v1324_v4 = vadd.f32 %v1253_v42, %v963_v46  ;;  %v1625_v61 = vpop.f32.mrf.mxu0  ;;  %v4783_v42 = vunpack.c.l.b16 %v4211_v49  ;;  %v1512_v46 = vrot.slane %v1510_v29, 2  ;;  %v790_v19 = vrot.slane %v4233_v56, 1 }
 0x159   : > { %3230 = vmatmul.msk.bf16.gmra.mxu1 %vm454_vm2, %v3684_v2  ;;  %v1351_v2 = vunpack.c.l.b16 %v1347_v28 }
 0x15a   : > { %3249 = vmatmul.msk.bf16.gmra.mxu2 %vm454_vm2, %v789_v57  ;;  %v4216_v12 = vadd.f32 %v1622_v33, %v1324_v4  ;;  %v1154_v33 = vsel %vm756_vm3, %v1151_v54, %v1153_v23  ;;  %v4229_v58 = vpack.c.b16 %v4783_v42, %v2028_v48  ;;  %v2329_v4 = vshrl.u32 %v4225_v21, 16 }
 0x15b   : > { %3355 = vmatmul.msk.bf16.gmra.mxu0 %vm454_vm2, %v1505_v9  ;;  %v1513_v8 = vor.u32 %v1512_v46, %v1509_v41  ;;  %v791_v27 = vsel %vm756_vm3, %v788_v45, %v790_v19 }
 0x15c   : > { %4792 = vst [vmem:[#allocation10_spill] sm:$0xff] %v4216_v12  ;;  %3338 = vmatmul.msk.bf16.gmra.mxu3 %vm454_vm2, %v1154_v33  ;;  %v2321_v54 = vshrl.u32 %v4229_v58, 16  ;;  %v2324_v13 = vshll.u32 %v4229_v58, 16  ;;  %v4249_v12 = vpack.c.b16 %v1351_v2, %v1351_v2  ;;  %v792_v2 = vrot.slane %v3871_v40, 1 }
 0x15d   : > { %v895_v14 = vpop.f32.mrf.mxu2 }
 0x15e   : > { %v964_v55 = vadd.f32 %v895_v14, %v696_v20  ;;  %v697_v5 = vpop.f32.mrf.mxu1  ;;  %v2323_v29 = vrot.slane %v2321_v54, 2  ;;  %v2326_v14 = vrot.slane %v2324_v13, 3 }
 0x15f   : > { %v698_v9 = vadd.f32 %v697_v5, %v4032_v44  ;;  %v4244_v48 = vpop.f32.mrf.mxu3 }
 0x160   : > { %v1325_v6 = vadd.f32 %v1256_v36, %v964_v55  ;;  %v1627_v24 = vpop.f32.mrf.mxu0  ;;  %v2332_v36 = vshll.u32 %v4225_v21, 16  ;;  %v2331_v55 = vrot.slane %v2329_v4, 2  ;;  %v2327_v45 = vor.u32 %v2326_v14, %v2323_v29 }
 0x162   : > { %v4237_v57 = vadd.f32 %v1625_v61, %v1325_v6  ;;  %v2334_v33 = vrot.slane %v2332_v36, 3 }
 0x164   : > { %4793 = vst [vmem:[#allocation11_spill] sm:$0xff] %v4237_v57  ;;  %v1514_v57 = vsel %vm1353_vm4, %v1504_v1, %v1513_v8  ;;  %v2335_v5 = vor.u32 %v2334_v33, %v2331_v55  ;;  %v1519_v1 = vshll.u32 %v4249_v12, 16  ;;  %v793_v33 = vsel %vm756_vm3, %v790_v19, %v792_v2  ;;  %v4294_v2 = vld [vmem:[%s3762_s25 + $0x28] sm:$0xff] }
 0x165   : > { %v897_v23 = vpop.f32.mrf.mxu2 }
 0x166   : > { %v965_v20 = vadd.f32 %v897_v23, %v698_v9  ;;  %v700_v61 = vpop.f32.mrf.mxu1  ;;  %v2336_v13 = vsel %vm2319_vm5, %v2327_v45, %v2335_v5 }
 0x167   : > { %v701_v41 = vadd.f32 %v700_v61, %v4043_v43  ;;  %v4260_v28 = vpop.f32.mrf.mxu3  ;;  %v1521_v43 = vrot.slane %v1519_v1, 2  ;;  %v2682_v1 = vld [vmem:[%s3762_s25 + $0x10] sm:$0x8] }
 0x168   : > { %v1326_v6 = vadd.f32 %v4193_v51, %v965_v20  ;;  %v1630_v42 = vpop.f32.mrf.mxu0  ;;  %v1516_v51 = vshrl.u32 %v4249_v12, 16 }
 0x169   : > { %3231 = vmatmul.msk.bf16.gmra.mxu1 %vm454_vm2, %v4201_v62 }
 0x16a   : > { %3250 = vmatmul.msk.bf16.gmra.mxu2 %vm454_vm2, %v791_v27  ;;  %v4254_v44 = vadd.f32 %v1627_v24, %v1326_v6  ;;  %v4264_v24 = vld [vmem:[%s3762_s25 + $0x20] sm:$0xff]  ;;  %v1518_v36 = vrot.slane %v1516_v51, 1  ;;  %v1716_v6 = vld [vmem:[%s3762_s25 + $0x8] sm:$0xc] }
 0x16b   : > { %3356 = vmatmul.msk.bf16.gmra.mxu0 %vm454_vm2, %v1514_v57  ;;  %v2338_v23 = vshrl.u32 %v4264_v24, 16  ;;  %v2341_v20 = vshll.u32 %v4264_v24, 16 }
 0x16c   : > { %3465 = vmatmul.msk.bf16.vlgmr.msra.gmra.mxu3 %vm454_vm2, %v2336_v13  ;;  %v1522_v61 = vor.u32 %v1521_v43, %v1518_v36 }
 0x16d   : > { %v900_v46 = vpop.f32.mrf.mxu2  ;;  %v2343_v45 = vrot.slane %v2341_v20, 3  ;;  %v4795_v20 = vunpack.c.l.b16 %v4211_v49 }
 0x16e   : > { %v966_v54 = vadd.f32 %v900_v46, %v701_v41  ;;  %v702_v62 = vpop.f32.mrf.mxu1  ;;  %v1523_v51 = vsel %vm1353_vm4, %v1513_v8, %v1522_v61  ;;  %v3686_v61 = vld [vmem:[%s3762_s25 + $0x10] sm:$0xff] }
 0x16f   : > { %v703_v27 = vadd.f32 %v702_v62, %v4058_v7  ;;  %v1720_v7 = vunpack.c.l.b16 %v1716_v6  ;;  %v2690_v6 = vrot.slane %v4225_v21, 3 }
 0x170   : > { %v1327_v57 = vadd.f32 %v4205_v22, %v966_v54  ;;  %v1632_v4 = vpop.f32.mrf.mxu0  ;;  %v4274_v22 = vpop.f32.mrf.mxu3 }
 0x172   : > { %v4268_v9 = vadd.f32 %v1630_v42, %v1327_v57  ;;  %v2340_v42 = vrot.slane %v2338_v23, 2  ;;  %v4794_v57 = vunpack.c.l.b16 %v3893_v63  ;;  %v2084_v63 = vrot.slane %v4229_v58, 2 }
 0x174   : > { %v2344_v19 = vor.u32 %v2343_v45, %v2340_v42  ;;  %v1721_v36 = vpack.c.b16 %v4794_v57, %v1720_v7 }
 0x175   : > { %v902_v29 = vpop.f32.mrf.mxu2 }
 0x176   : > { %v967_v14 = vadd.f32 %v902_v29, %v703_v27  ;;  %v705_v55 = vpop.f32.mrf.mxu1  ;;  %v2345_v43 = vsel %vm2319_vm5, %v2335_v5, %v2344_v19  ;;  %v1724_v29 = vrot.slane %v3686_v61, 2  ;;  %v2347_v5 = vshrl.u32 %v4294_v2, 16 }
 0x177   : > { %v706_v54 = vadd.f32 %v705_v55, %v4067_v32  ;;  %v1723_v32 = vrot.slane %v1721_v36, 2  ;;  %v2085_v55 = vrot.slane %v4225_v21, 2 }
 0x178   : > { %v1328_v40 = vadd.f32 %v4221_v52, %v967_v14  ;;  %v1635_v41 = vpop.f32.mrf.mxu0  ;;  %v2686_v52 = vunpack.c.l.b16 %v2682_v1  ;;  %v4288_v13 = vpop.f32.mrf.mxu3  ;;  %v2349_v1 = vrot.slane %v2347_v5, 2 }
 0x179   : > { %3232 = vmatmul.msk.bf16.gmra.mxu1 %vm454_vm2, %v4233_v56  ;;  %v2086_v58 = vsel %vm1722_vm6, %v2084_v63, %v2085_v55  ;;  %v2087_v63 = vrot.slane %v4264_v24, 2 }
 0x17a   : > { %3251 = vmatmul.msk.bf16.gmra.mxu2 %vm454_vm2, %v793_v33  ;;  %v4284_v46 = vadd.f32 %v1632_v4, %v1328_v40  ;;  %v2687_v27 = vpack.c.b16 %v4795_v20, %v2686_v52  ;;  %v2350_v33 = vshll.u32 %v4294_v2, 16 }
 0x17b   : > { %3357 = vmatmul.msk.bf16.gmra.mxu0 %vm454_vm2, %v1523_v51  ;;  %v1725_v51 = vsel %vm1722_vm6, %v1723_v32, %v1724_v29  ;;  %v3687_v32 = vld [vmem:[%s3762_s25 + $0x18] sm:$0xff] }
 0x17c   : > { %3466 = vmatmul.msk.bf16.gmra.mxu3 %vm454_vm2, %v2345_v43  ;;  %v2689_v49 = vrot.slane %v2687_v27, 3  ;;  %v2352_v7 = vrot.slane %v2350_v33, 3  ;;  %v1726_v61 = vrot.slane %v3687_v32, 2 }
 0x17d   : > { %v905_v62 = vpop.f32.mrf.mxu2 }
 0x17e   : > { %v968_v8 = vadd.f32 %v905_v62, %v706_v54  ;;  %v707_v56 = vpop.f32.mrf.mxu1  ;;  %v2353_v62 = vor.u32 %v2352_v7, %v2349_v1 }
 0x180   : > { %v1329_v4 = vadd.f32 %v4244_v48, %v968_v8  ;;  %v1637_v23 = vpop.f32.mrf.mxu0  ;;  %v708_v48 = vadd.f32 %v707_v56, %v4080_v47  ;;  %v1276_v45 = vpop.f32.mrf.mxu3  ;;  %v2691_v47 = vsel %vm2688_vm7, %v2689_v49, %v2690_v6 }
 0x182   : > { %v4301_v14 = vadd.f32 %v1635_v41, %v1329_v4  ;;  %v4321_v4 = vld [vmem:[%s3762_s25 + $0x30] sm:$0xff] }
 0x183   : > { %v2359_v5 = vshll.u32 %v4321_v4, 16 }
 0x185   : > { %v907_v42 = vpop.f32.mrf.mxu2 }
 0x186   : > { %v969_v40 = vadd.f32 %v907_v42, %v708_v48  ;;  %v710_v41 = vpop.f32.mrf.mxu1 }
 0x187   : > { %v711_v8 = vadd.f32 %v710_v41, %v3978_v53  ;;  %v2356_v53 = vshrl.u32 %v4321_v4, 16  ;;  %v2088_v41 = vsel %vm1722_vm6, %v2085_v55, %v2087_v63 }
 0x188   : > { %v1330_v54 = vadd.f32 %v4260_v28, %v969_v40  ;;  %v1640_v52 = vpop.f32.mrf.mxu0  ;;  %v1278_v36 = vpop.f32.mrf.mxu3  ;;  %v2354_v28 = vsel %vm2319_vm5, %v2344_v19, %v2353_v62  ;;  %v2692_v19 = vrot.slane %v4264_v24, 3  ;;  %v1727_v40 = vsel %vm1722_vm6, %v1724_v29, %v1726_v61 }
 0x189   : > { %3359 = vmatmul.msk.bf16.vlgmr.msra.gmra.mxu1 %vm454_vm2, %v1725_v51  ;;  %v2358_v51 = vrot.slane %v2356_v53, 2 }
 0x18a   : > { %3446 = vmatmul.msk.bf16.vlgmr.msra.gmra.mxu2 %vm454_vm2, %v2086_v58  ;;  %v4315_v21 = vadd.f32 %v1637_v23, %v1330_v54  ;;  %v2361_v58 = vrot.slane %v2359_v5, 3  ;;  %v2693_v54 = vsel %vm2688_vm7, %v2690_v6, %v2692_v19 }
 0x18b   : > { %3484 = vmatmul.msk.bf16.vlgmr.msra.gmra.mxu0 %vm454_vm2, %v2691_v47 }
 0x18c   : > { %3467 = vmatmul.msk.bf16.gmra.mxu3 %vm454_vm2, %v2354_v28  ;;  %v2362_v24 = vor.u32 %v2361_v58, %v2358_v51  ;;  %v3688_v28 = vld [vmem:[%s3762_s25 + $0x20] sm:$0xff] }
 0x18d   : > { %v910_v57 = vpop.f32.mrf.mxu2 }
 0x18e   : > { %v970_v56 = vadd.f32 %v910_v57, %v711_v8  ;;  %v712_v43 = vpop.f32.mrf.mxu1  ;;  %v4345_v57 = vld [vmem:[%s3762_s25 + $0x38] sm:$0xff] }
 0x18f   : > { %v713_v33 = vadd.f32 %v712_v43, %v3987_v59  ;;  %v2368_v32 = vshll.u32 %v4345_v57, 16 }
 0x190   : > { %v1331_v20 = vadd.f32 %v4274_v22, %v970_v56  ;;  %v1642_v27 = vpop.f32.mrf.mxu0  ;;  %v1281_v49 = vpop.f32.mrf.mxu3 }
 0x192   : > { %v4325_v23 = vadd.f32 %v1640_v52, %v1331_v20  ;;  %v1728_v20 = vrot.slane %v3688_v28, 2 }
 0x195   : > { %v912_v48 = vpop.f32.mrf.mxu2 }
 0x196   : > { %v971_v22 = vadd.f32 %v912_v48, %v713_v33  ;;  %v715_v42 = vpop.f32.mrf.mxu1 }
 0x197   : > { %v716_v29 = vadd.f32 %v715_v42, %v4002_v16  ;;  %v2365_v16 = vshrl.u32 %v4345_v57, 16 }
 0x198   : > { %v1332_v1 = vadd.f32 %v4288_v13, %v971_v22  ;;  %v1645_v7 = vpop.f32.mrf.mxu0  ;;  %v1283_v52 = vpop.f32.mrf.mxu3  ;;  %v2363_v13 = vsel %vm2319_vm5, %v2353_v62, %v2362_v24  ;;  %v2694_v62 = vrot.slane %v4294_v2, 3  ;;  %v1729_v22 = vsel %vm1722_vm6, %v1726_v61, %v1728_v20 }
 0x199   : > { %3360 = vmatmul.msk.bf16.gmra.mxu1 %vm454_vm2, %v1727_v40  ;;  %v2367_v40 = vrot.slane %v2365_v16, 2 }
 0x19a   : > { %3447 = vmatmul.msk.bf16.gmra.mxu2 %vm454_vm2, %v2088_v41  ;;  %v4339_v59 = vadd.f32 %v1642_v27, %v1332_v1  ;;  %v2089_v27 = vrot.slane %v4294_v2, 2  ;;  %v2370_v41 = vrot.slane %v2368_v32, 3  ;;  %v2695_v1 = vsel %vm2688_vm7, %v2692_v19, %v2694_v62 }
 0x19b   : > { %3485 = vmatmul.msk.bf16.gmra.mxu0 %vm454_vm2, %v2693_v54 }
 0x19c   : > { %3468 = vmatmul.msk.bf16.gmra.mxu3 %vm454_vm2, %v2363_v13  ;;  %v2090_v42 = vsel %vm1722_vm6, %v2087_v63, %v2089_v27  ;;  %v2371_v2 = vor.u32 %v2370_v41, %v2367_v40  ;;  %v3689_v13 = vld [vmem:[%s3762_s25 + $0x28] sm:$0xff] }
 0x19d   : > { %v915_v55 = vpop.f32.mrf.mxu2 }
 0x19e   : > { %v972_v47 = vadd.f32 %v915_v55, %v716_v29  ;;  %v717_v8 = vpop.f32.mrf.mxu1  ;;  %v4367_v55 = vld [vmem:[%s3762_s25 + $0x40] sm:$0xff] }
 0x19f   : > { %v718_v53 = vadd.f32 %v717_v8, %v4013_v25  ;;  %v2377_v28 = vshll.u32 %v4367_v55, 16 }
 0x1a0   : > { %v1333_v6 = vadd.f32 %v1276_v45, %v972_v47  ;;  %v1647_v56 = vpop.f32.mrf.mxu0  ;;  %v1286_v33 = vpop.f32.mrf.mxu3 }
 0x1a2   : > { %v4348_v43 = vadd.f32 %v1645_v7, %v1333_v6  ;;  %v1730_v6 = vrot.slane %v3689_v13, 2 }
 0x1a5   : > { %v917_v5 = vpop.f32.mrf.mxu2 }
 0x1a6   : > { %v973_v45 = vadd.f32 %v917_v5, %v718_v53  ;;  %v720_v48 = vpop.f32.mrf.mxu1 }
 0x1a7   : > { %v721_v61 = vadd.f32 %v720_v48, %v4028_v39  ;;  %v2374_v39 = vshrl.u32 %v4367_v55, 16 }
 0x1a8   : > { %v1334_v51 = vadd.f32 %v1278_v36, %v973_v45  ;;  %v1650_v58 = vpop.f32.mrf.mxu0  ;;  %v1288_v7 = vpop.f32.mrf.mxu3  ;;  %v2372_v36 = vsel %vm2319_vm5, %v2362_v24, %v2371_v2  ;;  %v2696_v24 = vrot.slane %v4321_v4, 3  ;;  %v1731_v45 = vsel %vm1722_vm6, %v1728_v20, %v1730_v6 }
 0x1a9   : > { %3361 = vmatmul.msk.bf16.gmra.mxu1 %vm454_vm2, %v1729_v22  ;;  %v2376_v22 = vrot.slane %v2374_v39, 2 }
 0x1aa   : > { %3448 = vmatmul.msk.bf16.gmra.mxu2 %vm454_vm2, %v2090_v42  ;;  %v4361_v25 = vadd.f32 %v1647_v56, %v1334_v51  ;;  %v2091_v56 = vrot.slane %v4321_v4, 2  ;;  %v2379_v42 = vrot.slane %v2377_v28, 3  ;;  %v2697_v51 = vsel %vm2688_vm7, %v2694_v62, %v2696_v24 }
 0x1ab   : > { %3486 = vmatmul.msk.bf16.gmra.mxu0 %vm454_vm2, %v2695_v1 }
 0x1ac   : > { %3469 = vmatmul.msk.bf16.gmra.mxu3 %vm454_vm2, %v2372_v36  ;;  %v2092_v48 = vsel %vm1722_vm6, %v2089_v27, %v2091_v56  ;;  %v2380_v4 = vor.u32 %v2379_v42, %v2376_v22  ;;  %v3690_v36 = vld [vmem:[%s3762_s25 + $0x30] sm:$0xff] }
 0x1ad   : > { %v920_v63 = vpop.f32.mrf.mxu2 }
 0x1ae   : > { %v974_v54 = vadd.f32 %v920_v63, %v721_v61  ;;  %v722_v29 = vpop.f32.mrf.mxu1  ;;  %v4389_v63 = vld [vmem:[%s3762_s25 + $0x48] sm:$0xff] }
 0x1af   : > { %v723_v16 = vadd.f32 %v722_v29, %v4039_v50  ;;  %v2386_v13 = vshll.u32 %v4389_v63, 16 }
 0x1b0   : > { %v1335_v19 = vadd.f32 %v1281_v49, %v974_v54  ;;  %v1652_v47 = vpop.f32.mrf.mxu0  ;;  %v1291_v53 = vpop.f32.mrf.mxu3 }
 0x1b2   : > { %v4370_v8 = vadd.f32 %v1650_v58, %v1335_v19  ;;  %v1732_v19 = vrot.slane %v3690_v36, 2  ;;  %v2095_v36 = vrot.slane %v4367_v55, 2 }
 0x1b5   : > { %v922_v32 = vpop.f32.mrf.mxu2 }
 0x1b6   : > { %v975_v49 = vadd.f32 %v922_v32, %v723_v16  ;;  %v725_v5 = vpop.f32.mrf.mxu1 }
 0x1b7   : > { %v726_v20 = vadd.f32 %v725_v5, %v4054_v3  ;;  %v2383_v3 = vshrl.u32 %v4389_v63, 16 }
 0x1b8   : > { %v1336_v40 = vadd.f32 %v1283_v52, %v975_v49  ;;  %v1655_v41 = vpop.f32.mrf.mxu0  ;;  %v1293_v58 = vpop.f32.mrf.mxu3  ;;  %v2381_v52 = vsel %vm2319_vm5, %v2371_v2, %v2380_v4  ;;  %v2698_v2 = vrot.slane %v4345_v57, 3  ;;  %v1733_v49 = vsel %vm1722_vm6, %v1730_v6, %v1732_v19  ;;  %v4796_v6 = vld [vmem:[#allocation8_spill] sm:$0xff] }
 0x1b9   : > { %3362 = vmatmul.msk.bf16.gmra.mxu1 %vm454_vm2, %v1731_v45  ;;  %v2385_v45 = vrot.slane %v2383_v3, 2 }
 0x1ba   : > { %3449 = vmatmul.msk.bf16.gmra.mxu2 %vm454_vm2, %v2092_v48  ;;  %v4383_v50 = vadd.f32 %v1652_v47, %v1336_v40  ;;  %v2093_v47 = vrot.slane %v4345_v57, 2  ;;  %v2388_v48 = vrot.slane %v2386_v13, 3  ;;  %v2699_v40 = vsel %vm2688_vm7, %v2696_v24, %v2698_v2 }
 0x1bb   : > { %3487 = vmatmul.msk.bf16.gmra.mxu0 %vm454_vm2, %v2697_v51 }
 0x1bc   : > { %3470 = vmatmul.msk.bf16.gmra.mxu3 %vm454_vm2, %v2381_v52  ;;  %v2094_v5 = vsel %vm1722_vm6, %v2091_v56, %v2093_v47  ;;  %v2389_v57 = vor.u32 %v2388_v48, %v2385_v45  ;;  %v2096_v45 = vsel %vm1722_vm6, %v2093_v47, %v2095_v36 }
 0x1bd   : > { %v925_v27 = vpop.f32.mrf.mxu2 }
 0x1be   : > { %v976_v1 = vadd.f32 %v925_v27, %v726_v20  ;;  %v727_v61 = vpop.f32.mrf.mxu1 }
 0x1bf   : > { %v728_v39 = vadd.f32 %v727_v61, %v4065_v15 }
 0x1c0   : > { %v1337_v62 = vadd.f32 %v1286_v33, %v976_v1  ;;  %v1657_v54 = vpop.f32.mrf.mxu0  ;;  %v1296_v16 = vpop.f32.mrf.mxu3  ;;  %v4411_v1 = vld [vmem:[%s3762_s25 + $0x50] sm:$0xff] }
 0x1c1   : > { %v2392_v3 = vshrl.u32 %v4411_v1, 16  ;;  %v2395_v13 = vshll.u32 %v4411_v1, 16 }
 0x1c2   : > { %v4392_v29 = vadd.f32 %v1655_v41, %v1337_v62  ;;  %v3691_v62 = vld [vmem:[%s3762_s25 + $0x38] sm:$0xff] }
 0x1c3   : > { %v2394_v48 = vrot.slane %v2392_v3, 2 }
 0x1c5   : > { %v927_v28 = vpop.f32.mrf.mxu2 }
 0x1c6   : > { %v977_v33 = vadd.f32 %v927_v28, %v728_v39  ;;  %v730_v32 = vpop.f32.mrf.mxu1  ;;  %v4797_v39 = vld [vmem:[#allocation9_spill] sm:$0xff] }
 0x1c7   : > { %v731_v41 = vadd.f32 %v730_v32, %v4796_v6 }
 0x1c8   : > { %v1338_v22 = vadd.f32 %v1288_v7, %v977_v33  ;;  %v1660_v42 = vpop.f32.mrf.mxu0  ;;  %v1298_v51 = vpop.f32.mrf.mxu3  ;;  %v2390_v7 = vsel %vm2319_vm5, %v2380_v4, %v2389_v57  ;;  %v2700_v4 = vrot.slane %v4367_v55, 3 }
 0x1c9   : > { %3363 = vmatmul.msk.bf16.gmra.mxu1 %vm454_vm2, %v1733_v49 }
 0x1ca   : > { %3450 = vmatmul.msk.bf16.gmra.mxu2 %vm454_vm2, %v2094_v5  ;;  %v4405_v15 = vadd.f32 %v1657_v54, %v1338_v22  ;;  %v1734_v54 = vrot.slane %v3691_v62, 2  ;;  %v2397_v22 = vrot.slane %v2395_v13, 3  ;;  %v2701_v6 = vsel %vm2688_vm7, %v2698_v2, %v2700_v4 }
 0x1cb   : > { %3488 = vmatmul.msk.bf16.gmra.mxu0 %vm454_vm2, %v2699_v40 }
 0x1cc   : > { %3471 = vmatmul.msk.bf16.gmra.mxu3 %vm454_vm2, %v2390_v7  ;;  %v1735_v5 = vsel %vm1722_vm6, %v1732_v19, %v1734_v54  ;;  %v4798_v19 = vld [vmem:[#allocation2_spill] sm:$0xff] }
 0x1cd   : > { %v930_v56 = vpop.f32.mrf.mxu2 }
 0x1ce   : > { %v978_v20 = vadd.f32 %v930_v56, %v731_v41  ;;  %v732_v27 = vpop.f32.mrf.mxu1  ;;  %v2398_v41 = vor.u32 %v2397_v22, %v2394_v48 }
 0x1cf   : > { %v733_v28 = vadd.f32 %v732_v27, %v4797_v39  ;;  %v2097_v39 = vrot.slane %v4389_v63, 2 }
 0x1d0   : > { %v1339_v24 = vadd.f32 %v1291_v53, %v978_v20  ;;  %v1662_v61 = vpop.f32.mrf.mxu0  ;;  %v1301_v32 = vpop.f32.mrf.mxu3 }
 0x1d2   : > { %v4414_v52 = vadd.f32 %v1660_v42, %v1339_v24  ;;  %v4433_v24 = vld [vmem:[%s3762_s25 + $0x58] sm:$0xff] }
 0x1d5   : > { %v932_v33 = vpop.f32.mrf.mxu2 }
 0x1d6   : > { %v979_v53 = vadd.f32 %v932_v33, %v733_v28  ;;  %v735_v49 = vpop.f32.mrf.mxu1  ;;  %v2401_v28 = vshrl.u32 %v4433_v24, 16  ;;  %v2404_v33 = vshll.u32 %v4433_v24, 16 }
 0x1d7   : > { %v736_v56 = vadd.f32 %v735_v49, %v4798_v19 }
 0x1d8   : > { %v1340_v42 = vadd.f32 %v1293_v58, %v979_v53  ;;  %v1665_v40 = vpop.f32.mrf.mxu0  ;;  %v1303_v20 = vpop.f32.mrf.mxu3  ;;  %v2399_v58 = vsel %vm2319_vm5, %v2389_v57, %v2398_v41  ;;  %v4799_v53 = vld [vmem:[#allocation3_spill] sm:$0xff]  ;;  %v2702_v57 = vrot.slane %v4389_v63, 3 }
 0x1d9   : > { %3364 = vmatmul.msk.bf16.gmra.mxu1 %vm454_vm2, %v1735_v5 }
 0x1da   : > { %3451 = vmatmul.msk.bf16.gmra.mxu2 %vm454_vm2, %v2096_v45  ;;  %v4427_v55 = vadd.f32 %v1662_v61, %v1340_v42  ;;  %v3692_v61 = vld [vmem:[%s3762_s25 + $0x40] sm:$0xff]  ;;  %v2098_v42 = vsel %vm1722_vm6, %v2095_v36, %v2097_v39 }
 0x1db   : > { %3489 = vmatmul.msk.bf16.gmra.mxu0 %vm454_vm2, %v2701_v6  ;;  %v1736_v13 = vrot.slane %v3692_v61, 2  ;;  %v2406_v6 = vrot.slane %v2404_v33, 3 }
 0x1dc   : > { %3472 = vmatmul.msk.bf16.gmra.mxu3 %vm454_vm2, %v2399_v58 }
 0x1dd   : > { %v935_v47 = vpop.f32.mrf.mxu2  ;;  %v1737_v22 = vsel %vm1722_vm6, %v1734_v54, %v1736_v13  ;;  %v4800_v54 = vld [vmem:[#allocation4_spill] sm:$0xff] }
 0x1de   : > { %v980_v27 = vadd.f32 %v935_v47, %v736_v56  ;;  %v737_v7 = vpop.f32.mrf.mxu1  ;;  %v2703_v47 = vsel %vm2688_vm7, %v2700_v4, %v2702_v57 }
 0x1df   : > { %v738_v49 = vadd.f32 %v737_v7, %v4799_v53 }
 0x1e0   : > { %v1341_v2 = vadd.f32 %v1296_v16, %v980_v27  ;;  %v1667_v62 = vpop.f32.mrf.mxu0  ;;  %v1306_v45 = vpop.f32.mrf.mxu3 }
 0x1e2   : > { %v4436_v3 = vadd.f32 %v1665_v40, %v1341_v2  ;;  %v2403_v40 = vrot.slane %v2401_v28, 2  ;;  %v4455_v28 = vld [vmem:[%s3762_s25 + $0x60] sm:$0xff] }
 0x1e4   : > { %v2407_v27 = vor.u32 %v2406_v6, %v2403_v40 }
 0x1e5   : > { %v937_v5 = vpop.f32.mrf.mxu2 }
 0x1e6   : > { %v981_v16 = vadd.f32 %v937_v5, %v738_v49  ;;  %v740_v48 = vpop.f32.mrf.mxu1  ;;  %v2099_v5 = vrot.slane %v4411_v1, 2 }
 0x1e7   : > { %v741_v7 = vadd.f32 %v740_v48, %v4800_v54  ;;  %v2413_v48 = vshll.u32 %v4455_v28, 16 }
 0x1e8   : > { %v1342_v19 = vadd.f32 %v1298_v51, %v981_v16  ;;  %v1670_v56 = vpop.f32.mrf.mxu0  ;;  %v1308_v58 = vpop.f32.mrf.mxu3  ;;  %v2408_v51 = vsel %vm2319_vm5, %v2398_v41, %v2407_v27  ;;  %v2410_v16 = vshrl.u32 %v4455_v28, 16  ;;  %v2704_v41 = vrot.slane %v4411_v1, 3 }
 0x1e9   : > { %3365 = vmatmul.msk.bf16.gmra.mxu1 %vm454_vm2, %v1737_v22  ;;  %v4801_v22 = vld [vmem:[#allocation5_spill] sm:$0xff] }
 0x1ea   : > { %3452 = vmatmul.msk.bf16.gmra.mxu2 %vm454_vm2, %v2098_v42  ;;  %v4449_v63 = vadd.f32 %v1667_v62, %v1342_v19  ;;  %v3693_v62 = vld [vmem:[%s3762_s25 + $0x48] sm:$0xff]  ;;  %v2412_v54 = vrot.slane %v2410_v16, 2 }
 0x1eb   : > { %3490 = vmatmul.msk.bf16.gmra.mxu0 %vm454_vm2, %v2703_v47  ;;  %v1738_v49 = vrot.slane %v3693_v62, 2 }
 0x1ec   : > { %3473 = vmatmul.msk.bf16.gmra.mxu3 %vm454_vm2, %v2408_v51  ;;  %v2705_v51 = vsel %vm2688_vm7, %v2702_v57, %v2704_v41 }
 0x1ed   : > { %v940_v36 = vpop.f32.mrf.mxu2  ;;  %v1739_v47 = vsel %vm1722_vm6, %v1736_v13, %v1738_v49  ;;  %v4802_v13 = vld [vmem:[#allocation6_spill] sm:$0xff] }
 0x1ee   : > { %v982_v2 = vadd.f32 %v940_v36, %v741_v7  ;;  %v742_v61 = vpop.f32.mrf.mxu1  ;;  %v2415_v7 = vrot.slane %v2413_v48, 3 }
 0x1ef   : > { %v743_v42 = vadd.f32 %v742_v61, %v4801_v22  ;;  %v4477_v22 = vld [vmem:[%s3762_s25 + $0x68] sm:$0xff] }
 0x1f0   : > { %v1343_v4 = vadd.f32 %v1301_v32, %v982_v2  ;;  %v1672_v33 = vpop.f32.mrf.mxu0  ;;  %v2556_v6 = vpop.f32.mrf.mxu3  ;;  %v2416_v61 = vor.u32 %v2415_v7, %v2412_v54  ;;  %v4803_v54 = vld [vmem:[#allocation7_spill] sm:$0xff] }
 0x1f2   : > { %v4458_v53 = vadd.f32 %v1670_v56, %v1343_v4  ;;  %v2100_v56 = vsel %vm1722_vm6, %v2097_v39, %v2099_v5 }
 0x1f5   : > { %v942_v40 = vpop.f32.mrf.mxu2 }
 0x1f6   : > { %v983_v32 = vadd.f32 %v942_v40, %v743_v42  ;;  %v745_v19 = vpop.f32.mrf.mxu1 }
 0x1f7   : > { %v746_v4 = vadd.f32 %v745_v19, %v4802_v13  ;;  %v2419_v19 = vshrl.u32 %v4477_v22, 16 }
 0x1f8   : > { %v1344_v36 = vadd.f32 %v1303_v20, %v983_v32  ;;  %v1675_v2 = vpop.f32.mrf.mxu0  ;;  %v2558_v62 = vpop.f32.mrf.mxu3  ;;  %v2417_v20 = vsel %vm2319_vm5, %v2407_v27, %v2416_v61  ;;  %v2706_v27 = vrot.slane %v4433_v24, 3 }
 0x1f9   : > { %3366 = vmatmul.msk.bf16.gmra.mxu1 %vm454_vm2, %v1739_v47  ;;  %v2101_v47 = vrot.slane %v4433_v24, 2 }
 0x1fa   : > { %3453 = vmatmul.msk.bf16.gmra.mxu2 %vm454_vm2, %v2100_v56  ;;  %v4471_v1 = vadd.f32 %v1672_v33, %v1344_v36  ;;  %v3694_v33 = vld [vmem:[%s3762_s25 + $0x50] sm:$0xff]  ;;  %v2422_v56 = vshll.u32 %v4477_v22, 16 }
 0x1fb   : > { %3491 = vmatmul.msk.bf16.gmra.mxu0 %vm454_vm2, %v2705_v51  ;;  %v1740_v32 = vrot.slane %v3694_v33, 2  ;;  %v2707_v33 = vsel %vm2688_vm7, %v2704_v41, %v2706_v27  ;;  %v4503_v41 = vld [vmem:[%s3762_s25 + $0x70] sm:$0xff] }
 0x1fc   : > { %3474 = vmatmul.msk.bf16.gmra.mxu3 %vm454_vm2, %v2417_v20 }
 0x1fd   : > { %v945_v39 = vpop.f32.mrf.mxu2 }
 0x1fe   : > { %v984_v16 = vadd.f32 %v945_v39, %v746_v4  ;;  %v747_v48 = vpop.f32.mrf.mxu1  ;;  %v2102_v4 = vsel %vm1722_vm6, %v2099_v5, %v2101_v47  ;;  %v2421_v39 = vrot.slane %v2419_v19, 2 }
 0x1ff   : > { %v748_v7 = vadd.f32 %v747_v48, %v4803_v54 }
 0x200   : > { %v1345_v57 = vadd.f32 %v1306_v45, %v984_v16  ;;  %v1677_v42 = vpop.f32.mrf.mxu0  ;;  %v4488_v51 = vpop.f32.mrf.mxu3  ;;  %v2424_v16 = vrot.slane %v2422_v56, 3 }
 0x202   : > { %v4480_v40 = vadd.f32 %v1675_v2, %v1345_v57  ;;  %v1741_v2 = vsel %vm1722_vm6, %v1738_v49, %v1740_v32  ;;  %v2425_v48 = vor.u32 %v2424_v16, %v2421_v39  ;;  %v2708_v39 = vrot.slane %v4455_v28, 3 }
 0x204   : > { %v2426_v54 = vsel %vm2319_vm5, %v2416_v61, %v2425_v48 }
 0x205   : > { %v947_v36 = vpop.f32.mrf.mxu2 }
 0x206   : > { %v985_v45 = vadd.f32 %v947_v36, %v748_v7  ;;  %v1826_v13 = vpop.f32.mrf.mxu1 }
 0x207   : > { %v1916_v49 = vadd.f32 %v1826_v13, %v4099_v34  ;;  %v2431_v34 = vshll.u32 %v4503_v41, 16 }
 0x208   : > { %v1346_v20 = vadd.f32 %v1308_v58, %v985_v45  ;;  %v2792_v57 = vpop.f32.mrf.mxu0  ;;  %v4499_v19 = vpop.f32.mrf.mxu3 }
 0x209   : > { %3367 = vmatmul.msk.bf16.gmra.mxu1 %vm454_vm2, %v1741_v2  ;;  %v2103_v2 = vrot.slane %v4455_v28, 2 }
 0x20a   : > { %3454 = vmatmul.msk.bf16.gmra.mxu2 %vm454_vm2, %v2102_v4  ;;  %v4495_v24 = vadd.f32 %v1677_v42, %v1346_v20  ;;  %v3695_v42 = vld [vmem:[%s3762_s25 + $0x58] sm:$0xff]  ;;  %v2428_v4 = vshrl.u32 %v4503_v41, 16 }
 0x20b   : > { %3492 = vmatmul.msk.bf16.gmra.mxu0 %vm454_vm2, %v2707_v33  ;;  %v1742_v45 = vrot.slane %v3695_v42, 2  ;;  %v2709_v42 = vsel %vm2688_vm7, %v2706_v27, %v2708_v39 }
 0x20c   : > { %4804 = vst [vmem:[#allocation8_spill] sm:$0xff] %v4495_v24  ;;  %3475 = vmatmul.msk.bf16.gmra.mxu3 %vm454_vm2, %v2426_v54  ;;  %v2430_v54 = vrot.slane %v2428_v4, 2 }
 0x20d   : > { %v2187_v5 = vpop.f32.mrf.mxu2 }
 0x20e   : > { %v2277_v56 = vadd.f32 %v2187_v5, %v1916_v49  ;;  %v1828_v58 = vpop.f32.mrf.mxu1  ;;  %v1743_v5 = vsel %vm1722_vm6, %v1740_v32, %v1742_v45 }
 0x20f   : > { %v1917_v13 = vadd.f32 %v1828_v58, %v4109_v26  ;;  %v2433_v26 = vrot.slane %v2431_v34, 3 }
 0x210   : > { %v2794_v7 = vpop.f32.mrf.mxu0  ;;  %v2646_v36 = vadd.f32 %v2556_v6, %v2277_v56  ;;  %v4512_v61 = vpop.f32.mrf.mxu3  ;;  %v4517_v6 = vld [vmem:[%s4780_s2] ss:$0 sm:$0xff]  ;;  %v2104_v56 = vsel %vm1722_vm6, %v2101_v47, %v2103_v2 }
 0x211   : > { %v2434_v32 = vor.u32 %v2433_v26, %v2430_v54 }
 0x212   : > { %v2882_v20 = vadd.f32 %v2792_v57, %v2646_v36 }
 0x214   : > { %v2922_v24 = vadd.f32 %v4517_v6, %v2882_v20  ;;  %v4538_v20 = vld [vmem:[%s3762_s25 + $0x78] sm:$0xff] }
 0x215   : > { %v2189_v16 = vpop.f32.mrf.mxu2  ;;  %v2437_v54 = vshrl.u32 %v4538_v20, 16  ;;  %v2440_v26 = vshll.u32 %v4538_v20, 16 }
 0x216   : > { %v2278_v33 = vadd.f32 %v2189_v16, %v1917_v13  ;;  %v1831_v49 = vpop.f32.mrf.mxu1  ;;  %v2958_v27 = vmax.f32 %v2922_v24, 0.0  ;;  %v2435_v16 = vsel %vm2319_vm5, %v2425_v48, %v2434_v32  ;;  %v3696_v24 = vld [vmem:[%s3762_s25 + $0x60] sm:$0xff]  ;;  %v2710_v48 = vrot.slane %v4477_v22, 3 }
 0x218   : > { %v2647_v58 = vadd.f32 %v2558_v62, %v2278_v33  ;;  %v2797_v28 = vpop.f32.mrf.mxu0  ;;  %v1918_v62 = vadd.f32 %v1831_v49, %v4115_v18  ;;  %v4529_v4 = vpop.f32.mrf.mxu3  ;;  %v1744_v49 = vrot.slane %v3696_v24, 2  ;;  %v2711_v24 = vsel %vm2688_vm7, %v2708_v39, %v2710_v48 }
 0x219   : > { %3368 = vmatmul.msk.bf16.gmra.mxu1 %vm454_vm2, %v1743_v5 }
 0x21a   : > { %v2883_v57 = vadd.f32 %v2794_v7, %v2647_v58  ;;  %3455 = vmatmul.msk.bf16.gmra.mxu2 %vm454_vm2, %v2104_v56  ;;  %v2105_v56 = vrot.slane %v4477_v22, 2 }
 0x21b   : > { %3493 = vmatmul.msk.bf16.gmra.mxu0 %vm454_vm2, %v2709_v42 }
 0x21c   : > { %v2923_v47 = vadd.f32 %v4517_v6, %v2883_v57  ;;  %3476 = vmatmul.msk.bf16.gmra.mxu3 %vm454_vm2, %v2435_v16 }
 0x21d   : > { %v2192_v36 = vpop.f32.mrf.mxu2 }
 0x21e   : > { %v2959_v34 = vmax.f32 %v2923_v47, 0.0  ;;  %v2279_v7 = vadd.f32 %v2192_v36, %v1918_v62  ;;  %v1833_v13 = vpop.f32.mrf.mxu1  ;;  %v1745_v36 = vsel %vm1722_vm6, %v1742_v45, %v1744_v49 }
 0x21f   : > { %v1919_v58 = vadd.f32 %v1833_v13, %v4125_v30 }
 0x220   : > { %v3562_v33 = vpack.c.bf16 %v2959_v34, %v2958_v27  ;;  %v2799_v5 = vpop.f32.mrf.mxu0  ;;  %v2648_v18 = vadd.f32 %v4488_v51, %v2279_v7  ;;  %v4549_v57 = vpop.f32.mrf.mxu3  ;;  %v2106_v27 = vsel %vm1722_vm6, %v2103_v2, %v2105_v56  ;;  %v2439_v34 = vrot.slane %v2437_v54, 2 }
 0x221   : > { %v2442_v7 = vrot.slane %v2440_v26, 3 }
 0x222   : > { %3563 = vst [vmem:[%s4534_s16] sm:$0xff] %v3562_v33   ;;  %v2884_v47 = vadd.f32 %v2797_v28, %v2648_v18 }
 0x223   : > { %v2443_v45 = vor.u32 %v2442_v7, %v2439_v34 }
 0x224   : > { %v2924_v30 = vadd.f32 %v4517_v6, %v2884_v47 }
 0x225   : > { %v2194_v42 = vpop.f32.mrf.mxu2  ;;  %v2444_v26 = vsel %vm2319_vm5, %v2434_v32, %v2443_v45  ;;  %v2712_v32 = vrot.slane %v4503_v41, 3 }
 0x226   : > { %v2280_v62 = vadd.f32 %v2194_v42, %v1919_v58  ;;  %v1836_v51 = vpop.f32.mrf.mxu1  ;;  %v2960_v39 = vmax.f32 %v2924_v30, 0.0  ;;  %v4565_v58 = vld [vmem:[%s3762_s25 + $0x80] sm:$0xff] }
 0x227   : > { %v2449_v34 = vshll.u32 %v4565_v58, 16 }
 0x228   : > { %v2649_v16 = vadd.f32 %v4499_v19, %v2280_v62  ;;  %v2802_v33 = vpop.f32.mrf.mxu0  ;;  %v1920_v19 = vadd.f32 %v1836_v51, %v4131_v60  ;;  %v4561_v13 = vpop.f32.mrf.mxu3  ;;  %v2107_v51 = vrot.slane %v4503_v41, 2 }
 0x229   : > { %3369 = vmatmul.msk.bf16.gmra.mxu1 %vm454_vm2, %v1745_v36  ;;  %v3697_v36 = vld [vmem:[%s3762_s25 + $0x68] sm:$0xff] }
 0x22a   : > { %v2885_v22 = vadd.f32 %v2799_v5, %v2649_v16  ;;  %3456 = vmatmul.msk.bf16.gmra.mxu2 %vm454_vm2, %v2106_v27  ;;  %v1746_v60 = vrot.slane %v3697_v36, 2  ;;  %v2446_v27 = vshrl.u32 %v4565_v58, 16 }
 0x22b   : > { %3494 = vmatmul.msk.bf16.gmra.mxu0 %vm454_vm2, %v2711_v24 }
 0x22c   : > { %v2925_v2 = vadd.f32 %v4517_v6, %v2885_v22  ;;  %3477 = vmatmul.msk.bf16.gmra.mxu3 %vm454_vm2, %v2444_v26  ;;  %v2713_v26 = vsel %vm2688_vm7, %v2710_v48, %v2712_v32 }
 0x22d   : > { %v2197_v28 = vpop.f32.mrf.mxu2 }
 0x22e   : > { %v2961_v18 = vmax.f32 %v2925_v2, 0.0  ;;  %v2281_v54 = vadd.f32 %v2197_v28, %v1920_v19  ;;  %v1838_v5 = vpop.f32.mrf.mxu1  ;;  %v1747_v2 = vsel %vm1722_vm6, %v1744_v49, %v1746_v60  ;;  %v2108_v19 = vsel %vm1722_vm6, %v2105_v56, %v2107_v51 }
 0x22f   : > { %v1921_v7 = vadd.f32 %v1838_v5, %v4141_v37  ;;  %v2448_v28 = vrot.slane %v2446_v27, 2  ;;  %v4592_v27 = vld [vmem:[%s3762_s25 + $0x88] sm:$0xff] }
 0x230   : > { %v3567_v42 = vpack.c.bf16 %v2961_v18, %v2960_v39  ;;  %v2804_v47 = vpop.f32.mrf.mxu0  ;;  %v2650_v62 = vadd.f32 %v4512_v61, %v2281_v54  ;;  %v4576_v24 = vpop.f32.mrf.mxu3  ;;  %v2451_v39 = vrot.slane %v2449_v34, 3 }
 0x232   : > { %3652 = vst [vmem:[%s4534_s16 + $0x8] sm:$0xff] %v3567_v42   ;;  %v2886_v30 = vadd.f32 %v2802_v33, %v2650_v62  ;;  %v2452_v49 = vor.u32 %v2451_v39, %v2448_v28 }
 0x234   : > { %v2926_v37 = vadd.f32 %v4517_v6, %v2886_v30  ;;  %v2453_v36 = vsel %vm2319_vm5, %v2443_v45, %v2452_v49  ;;  %v3698_v30 = vld [vmem:[%s3762_s25 + $0x70] sm:$0xff]  ;;  %v2714_v45 = vrot.slane %v4538_v20, 3 }
 0x235   : > { %v2199_v16 = vpop.f32.mrf.mxu2 }
 0x236   : > { %v2282_v22 = vadd.f32 %v2199_v16, %v1921_v7  ;;  %v1841_v61 = vpop.f32.mrf.mxu1  ;;  %v2962_v48 = vmax.f32 %v2926_v37, 0.0 }
 0x238   : > { %v2651_v18 = vadd.f32 %v4529_v4, %v2282_v22  ;;  %v2807_v54 = vpop.f32.mrf.mxu0  ;;  %v1922_v4 = vadd.f32 %v1841_v61, %v4147_v10  ;;  %v4588_v5 = vpop.f32.mrf.mxu3  ;;  %v1748_v10 = vrot.slane %v3698_v30, 2  ;;  %v2109_v22 = vrot.slane %v4538_v20, 2 }
 0x239   : > { %3370 = vmatmul.msk.bf16.gmra.mxu1 %vm454_vm2, %v1747_v2  ;;  %v2455_v61 = vshrl.u32 %v4592_v27, 16  ;;  %v2458_v2 = vshll.u32 %v4592_v27, 16 }
 0x23a   : > { %v2887_v41 = vadd.f32 %v2804_v47, %v2651_v18  ;;  %3457 = vmatmul.msk.bf16.gmra.mxu2 %vm454_vm2, %v2108_v19  ;;  %v1749_v37 = vsel %vm1722_vm6, %v1746_v60, %v1748_v10 }
 0x23b   : > { %3495 = vmatmul.msk.bf16.gmra.mxu0 %vm454_vm2, %v2713_v26 }
 0x23c   : > { %v2927_v56 = vadd.f32 %v4517_v6, %v2887_v41  ;;  %3478 = vmatmul.msk.bf16.gmra.mxu3 %vm454_vm2, %v2453_v36  ;;  %v2110_v41 = vsel %vm1722_vm6, %v2107_v51, %v2109_v22 }
 0x23d   : > { %v2202_v33 = vpop.f32.mrf.mxu2 }
 0x23e   : > { %v2963_v42 = vmax.f32 %v2927_v56, 0.0  ;;  %v2283_v62 = vadd.f32 %v2202_v33, %v1922_v4  ;;  %v1843_v47 = vpop.f32.mrf.mxu1  ;;  %v2457_v56 = vrot.slane %v2455_v61, 2  ;;  %v2460_v4 = vrot.slane %v2458_v2, 3 }
 0x23f   : > { %v1923_v19 = vadd.f32 %v1843_v47, %v4157_v0 }
 0x240   : > { %v3572_v34 = vpack.c.bf16 %v2963_v42, %v2962_v48  ;;  %v2809_v7 = vpop.f32.mrf.mxu0  ;;  %v2652_v16 = vadd.f32 %v4549_v57, %v2283_v62  ;;  %v4603_v39 = vpop.f32.mrf.mxu3  ;;  %v2715_v42 = vsel %vm2688_vm7, %v2712_v32, %v2714_v45  ;;  %v2461_v60 = vor.u32 %v2460_v4, %v2457_v56 }
 0x242   : > { %3653 = vst [vmem:[%s4534_s16 + $0x10] sm:$0xff] %v3572_v34   ;;  %v2888_v18 = vadd.f32 %v2807_v54, %v2652_v16  ;;  %v4619_v16 = vld [vmem:[%s3762_s25 + $0x90] sm:$0xff] }
 0x244   : > { %v2928_v0 = vadd.f32 %v4517_v6, %v2888_v18  ;;  %v2464_v18 = vshrl.u32 %v4619_v16, 16 }
 0x245   : > { %v2204_v28 = vpop.f32.mrf.mxu2 }
 0x246   : > { %v2284_v26 = vadd.f32 %v2204_v28, %v1923_v19  ;;  %v1846_v57 = vpop.f32.mrf.mxu1  ;;  %v2964_v32 = vmax.f32 %v2928_v0, 0.0  ;;  %v3699_v19 = vld [vmem:[%s3762_s25 + $0x78] sm:$0xff]  ;;  %v2111_v28 = vrot.slane %v4565_v58, 2  ;;  %v2466_v0 = vrot.slane %v2464_v18, 2  ;;  %v3700_v18 = vld [vmem:[%s3762_s25 + $0x80] sm:$0xff] }
 0x248   : > { %v2653_v33 = vadd.f32 %v4561_v13, %v2284_v26  ;;  %v2812_v48 = vpop.f32.mrf.mxu0  ;;  %v1924_v13 = vadd.f32 %v1846_v57, %v4163_v11  ;;  %v4615_v62 = vpop.f32.mrf.mxu3  ;;  %v1750_v11 = vrot.slane %v3699_v19, 2  ;;  %v2467_v26 = vshll.u32 %v4619_v16, 16 }
 0x249   : > { %3371 = vmatmul.msk.bf16.gmra.mxu1 %vm454_vm2, %v1749_v37 }
 0x24a   : > { %v2889_v20 = vadd.f32 %v2809_v7, %v2653_v33  ;;  %3458 = vmatmul.msk.bf16.gmra.mxu2 %vm454_vm2, %v2110_v41  ;;  %v2462_v7 = vsel %vm2319_vm5, %v2452_v49, %v2461_v60  ;;  %v2716_v49 = vrot.slane %v4565_v58, 3  ;;  %v1751_v33 = vsel %vm1722_vm6, %v1748_v10, %v1750_v11 }
 0x24b   : > { %3496 = vmatmul.msk.bf16.gmra.mxu0 %vm454_vm2, %v2715_v42  ;;  %v2112_v42 = vsel %vm1722_vm6, %v2109_v22, %v2111_v28 }
 0x24c   : > { %v2929_v51 = vadd.f32 %v4517_v6, %v2889_v20  ;;  %3479 = vmatmul.msk.bf16.gmra.mxu3 %vm454_vm2, %v2462_v7  ;;  %v2469_v20 = vrot.slane %v2467_v26, 3  ;;  %v2113_v26 = vrot.slane %v4592_v27, 2 }
 0x24d   : > { %v2207_v54 = vpop.f32.mrf.mxu2 }
 0x24e   : > { %v2965_v47 = vmax.f32 %v2929_v51, 0.0  ;;  %v2285_v36 = vadd.f32 %v2207_v54, %v1924_v13  ;;  %v1848_v34 = vpop.f32.mrf.mxu1  ;;  %v2717_v54 = vsel %vm2688_vm7, %v2714_v45, %v2716_v49  ;;  %v2470_v10 = vor.u32 %v2469_v20, %v2466_v0 }
 0x24f   : > { %v1925_v57 = vadd.f32 %v1848_v34, %v4173_v17  ;;  %v2114_v20 = vsel %vm1722_vm6, %v2111_v28, %v2113_v26 }
 0x250   : > { %v3577_v30 = vpack.c.bf16 %v2965_v47, %v2964_v32  ;;  %v2814_v61 = vpop.f32.mrf.mxu0  ;;  %v2654_v2 = vadd.f32 %v4576_v24, %v2285_v36  ;;  %v4630_v41 = vpop.f32.mrf.mxu3  ;;  %v2471_v7 = vsel %vm2319_vm5, %v2461_v60, %v2470_v10 }
 0x252   : > { %3654 = vst [vmem:[%s4534_s16 + $0x18] sm:$0xff] %v3577_v30   ;;  %v2890_v56 = vadd.f32 %v2812_v48, %v2654_v2  ;;  %v4646_v30 = vld [vmem:[%s3762_s25 + $0x98] sm:$0xff] }
 0x254   : > { %v2930_v17 = vadd.f32 %v4517_v6, %v2890_v56  ;;  %v2718_v56 = vrot.slane %v4592_v27, 3 }
 0x255   : > { %v2209_v37 = vpop.f32.mrf.mxu2 }
 0x256   : > { %v2286_v4 = vadd.f32 %v2209_v37, %v1925_v57  ;;  %v1851_v24 = vpop.f32.mrf.mxu1  ;;  %v2966_v45 = vmax.f32 %v2930_v17, 0.0  ;;  %v2473_v57 = vshrl.u32 %v4646_v30, 16  ;;  %v2476_v37 = vshll.u32 %v4646_v30, 16 }
 0x258   : > { %v2655_v51 = vadd.f32 %v4588_v5, %v2286_v4  ;;  %v2817_v13 = vpop.f32.mrf.mxu0  ;;  %v1926_v5 = vadd.f32 %v1851_v24, %v4179_v38  ;;  %v4642_v32 = vpop.f32.mrf.mxu3  ;;  %v1752_v38 = vrot.slane %v3700_v18, 2 }
 0x259   : > { %3372 = vmatmul.msk.bf16.gmra.mxu1 %vm454_vm2, %v1751_v33 }
 0x25a   : > { %v2891_v58 = vadd.f32 %v2814_v61, %v2655_v51  ;;  %3459 = vmatmul.msk.bf16.gmra.mxu2 %vm454_vm2, %v2112_v42  ;;  %v1753_v0 = vsel %vm1722_vm6, %v1750_v11, %v1752_v38  ;;  %v2475_v51 = vrot.slane %v2473_v57, 2  ;;  %v3701_v57 = vld [vmem:[%s3762_s25 + $0x88] sm:$0xff] }
 0x25b   : > { %3497 = vmatmul.msk.bf16.gmra.mxu0 %vm454_vm2, %v2717_v54  ;;  %v2478_v54 = vrot.slane %v2476_v37, 3  ;;  %v2115_v37 = vrot.slane %v4619_v16, 2 }
 0x25c   : > { %v2931_v22 = vadd.f32 %v4517_v6, %v2891_v58  ;;  %3480 = vmatmul.msk.bf16.gmra.mxu3 %vm454_vm2, %v2471_v7 }
 0x25d   : > { %v2212_v48 = vpop.f32.mrf.mxu2  ;;  %v2479_v11 = vor.u32 %v2478_v54, %v2475_v51 }
 0x25e   : > { %v2967_v47 = vmax.f32 %v2931_v22, 0.0  ;;  %v2287_v36 = vadd.f32 %v2212_v48, %v1926_v5  ;;  %v1853_v34 = vpop.f32.mrf.mxu1  ;;  %v2719_v22 = vsel %vm2688_vm7, %v2716_v49, %v2718_v56 }
 0x25f   : > { %v1927_v60 = vadd.f32 %v1853_v34, %v4189_v31  ;;  %v2313_v31 = vld [vmem:[%s3762_s25 + $0xa0] sm:$0x7]  ;;  %v2480_v7 = vsel %vm2319_vm5, %v2470_v10, %v2479_v11  ;;  %v2720_v10 = vrot.slane %v4619_v16, 3 }
 0x260   : > { %v3582_v61 = vpack.c.bf16 %v2967_v47, %v2966_v45  ;;  %v2819_v2 = vpop.f32.mrf.mxu0  ;;  %v2656_v19 = vadd.f32 %v4603_v39, %v2287_v36  ;;  %v4657_v24 = vpop.f32.mrf.mxu3  ;;  %v2317_v28 = vunpack.c.l.b16 %v2313_v31 }
 0x262   : > { %3655 = vst [vmem:[%s4534_s16 + $0x20] sm:$0xff] %v3582_v61   ;;  %v2892_v33 = vadd.f32 %v2817_v13, %v2656_v19  ;;  %v4673_v61 = vpack.c.b16 %v2317_v28, %v2317_v28  ;;  %v2721_v28 = vsel %vm2688_vm7, %v2718_v56, %v2720_v10 }
 0x264   : > { %v2932_v27 = vadd.f32 %v4517_v6, %v2892_v33  ;;  %v4805_v33 = vld [vmem:[#allocation10_spill] sm:$0xff] }
 0x265   : > { %v2214_v4 = vpop.f32.mrf.mxu2 }
 0x266   : > { %v2288_v39 = vadd.f32 %v2214_v4, %v1927_v60  ;;  %v1856_v42 = vpop.f32.mrf.mxu1  ;;  %v2968_v45 = vmax.f32 %v2932_v27, 0.0  ;;  %v2482_v60 = vshrl.u32 %v4673_v61, 16  ;;  %v2485_v4 = vshll.u32 %v4673_v61, 16 }
 0x268   : > { %v2657_v17 = vadd.f32 %v4615_v62, %v2288_v39  ;;  %v2822_v58 = vpop.f32.mrf.mxu0  ;;  %v1928_v62 = vadd.f32 %v1856_v42, %v4198_v35  ;;  %v4670_v49 = vpop.f32.mrf.mxu3  ;;  %v1754_v35 = vrot.slane %v3701_v57, 2  ;;  %v2487_v31 = vrot.slane %v2485_v4, 3 }
 0x269   : > { %3373 = vmatmul.msk.bf16.gmra.mxu1 %vm454_vm2, %v1753_v0 }
 0x26a   : > { %v2893_v5 = vadd.f32 %v2819_v2, %v2657_v17  ;;  %3460 = vmatmul.msk.bf16.gmra.mxu2 %vm454_vm2, %v2114_v20  ;;  %v1755_v54 = vsel %vm1722_vm6, %v1752_v38, %v1754_v35  ;;  %v2116_v17 = vsel %vm1722_vm6, %v2113_v26, %v2115_v37 }
 0x26b   : > { %3498 = vmatmul.msk.bf16.gmra.mxu0 %vm454_vm2, %v2719_v22  ;;  %v2484_v22 = vrot.slane %v2482_v60, 2  ;;  %v2117_v60 = vrot.slane %v4646_v30, 2 }
 0x26c   : > { %v2933_v13 = vadd.f32 %v4517_v6, %v2893_v5  ;;  %3481 = vmatmul.msk.bf16.gmra.mxu3 %vm454_vm2, %v2480_v7 }
 0x26d   : > { %v2217_v48 = vpop.f32.mrf.mxu2  ;;  %v2488_v38 = vor.u32 %v2487_v31, %v2484_v22  ;;  %v1988_v31 = vld [vmem:[%s3762_s25 + $0xa0] sm:$0x3] }
 0x26e   : > { %v2969_v47 = vmax.f32 %v2933_v13, 0.0  ;;  %v2289_v36 = vadd.f32 %v2217_v48, %v1928_v62  ;;  %v1858_v34 = vpop.f32.mrf.mxu1 }
 0x26f   : > { %v1929_v39 = vadd.f32 %v1858_v34, %v4805_v33  ;;  %v2489_v34 = vsel %vm2319_vm5, %v2479_v11, %v2488_v38  ;;  %v2722_v33 = vrot.slane %v4646_v30, 3  ;;  %v2064_v30 = vunpack.c.l.b16 %v1988_v31 }
 0x270   : > { %v3587_v2 = vpack.c.bf16 %v2969_v47, %v2968_v45  ;;  %v2824_v19 = vpop.f32.mrf.mxu0  ;;  %v2658_v18 = vadd.f32 %v4630_v41, %v2289_v36  ;;  %v4684_v0 = vpop.f32.mrf.mxu3 }
 0x271   : > { %v2723_v22 = vsel %vm2688_vm7, %v2720_v10, %v2722_v33  ;;  %v2083_v38 = vpack.c.b16 %v2064_v30, %v2064_v30 }
 0x272   : > { %3656 = vst [vmem:[%s4534_s16 + $0x28] sm:$0xff] %v3587_v2   ;;  %v2894_v20 = vadd.f32 %v2822_v58, %v2658_v18  ;;  %v4806_v58 = vld [vmem:[#allocation11_spill] sm:$0xff]  ;;  %v3702_v18 = vld [vmem:[%s3762_s25 + $0x90] sm:$0xff] }
 0x273   : > { %v1756_v57 = vrot.slane %v3702_v18, 2 }
 0x274   : > { %v2934_v13 = vadd.f32 %v4517_v6, %v2894_v20 }
 0x275   : > { %v2219_v42 = vpop.f32.mrf.mxu2 }
 0x276   : > { %v2290_v51 = vadd.f32 %v2219_v42, %v1929_v39  ;;  %v1861_v41 = vpop.f32.mrf.mxu1  ;;  %v2970_v45 = vmax.f32 %v2934_v13, 0.0 }
 0x277   : > { %v1930_v62 = vadd.f32 %v1861_v41, %v4806_v58  ;;  %v1757_v41 = vsel %vm1722_vm6, %v1754_v35, %v1756_v57 }
 0x278   : > { %v2659_v27 = vadd.f32 %v4642_v32, %v2290_v51  ;;  %v2827_v5 = vpop.f32.mrf.mxu0  ;;  %v2598_v48 = vpop.f32.mrf.mxu3 }
 0x279   : > { %3374 = vmatmul.msk.bf16.gmra.mxu1 %vm454_vm2, %v1755_v54 }
 0x27a   : > { %v2895_v16 = vadd.f32 %v2824_v19, %v2659_v27  ;;  %3461 = vmatmul.msk.bf16.gmra.mxu2 %vm454_vm2, %v2116_v17 }
 0x27b   : > { %3499 = vmatmul.msk.bf16.gmra.mxu0 %vm454_vm2, %v2721_v28 }
 0x27c   : > { %v2935_v26 = vadd.f32 %v4517_v6, %v2895_v16  ;;  %3482 = vmatmul.msk.bf16.gmra.mxu3 %vm454_vm2, %v2489_v34 }
 0x27d   : > { %v2222_v32 = vpop.f32.mrf.mxu2 }
 0x27e   : > { %v2971_v56 = vmax.f32 %v2935_v26, 0.0  ;;  %v2291_v47 = vadd.f32 %v2222_v32, %v1930_v62  ;;  %v1863_v36 = vpop.f32.mrf.mxu1  ;;  %v1758_v32 = vrot.slane %v4249_v12, 2 }
 0x27f   : > { %v1931_v4 = vadd.f32 %v1863_v36, %v4254_v44 }
 0x280   : > { %v3592_v7 = vpack.c.bf16 %v2971_v56, %v2970_v45  ;;  %v2829_v2 = vpop.f32.mrf.mxu0  ;;  %v2660_v19 = vadd.f32 %v4657_v24, %v2291_v47  ;;  %v2601_v42 = vpop.f32.mrf.mxu3  ;;  %v2118_v24 = vsel %vm1722_vm6, %v2115_v37, %v2117_v60  ;;  %v2119_v45 = vrot.slane %v2083_v38, 2 }
 0x281   : > { %v2724_v47 = vrot.slane %v4673_v61, 3 }
 0x282   : > { %3657 = vst [vmem:[%s4534_s16 + $0x30] sm:$0xff] %v3592_v7   ;;  %v2896_v20 = vadd.f32 %v2827_v5, %v2660_v19  ;;  %v1759_v19 = vsel %vm1722_vm6, %v1756_v57, %v1758_v32  ;;  %v2120_v18 = vsel %vm1722_vm6, %v2117_v60, %v2119_v45 }
 0x284   : > { %v2936_v27 = vadd.f32 %v4517_v6, %v2896_v20 }
 0x285   : > { %v2224_v39 = vpop.f32.mrf.mxu2 }
 0x286   : > { %v2292_v11 = vadd.f32 %v2224_v39, %v1931_v4  ;;  %v1866_v51 = vpop.f32.mrf.mxu1  ;;  %v2972_v28 = vmax.f32 %v2936_v27, 0.0 }
 0x287   : > { %v1932_v37 = vadd.f32 %v1866_v51, %v4268_v9 }
 0x288   : > { %v2661_v54 = vadd.f32 %v4670_v49, %v2292_v11  ;;  %v2832_v17 = vpop.f32.mrf.mxu0  ;;  %v2603_v5 = vpop.f32.mrf.mxu3 }
 0x289   : > { %3375 = vmatmul.msk.bf16.gmra.mxu1 %vm454_vm2, %v1757_v41 }
 0x28a   : > { %v2897_v44 = vadd.f32 %v2829_v2, %v2661_v54  ;;  %3462 = vmatmul.msk.bf16.gmra.mxu2 %vm454_vm2, %v2118_v24 }
 0x28b   : > { %3500 = vmatmul.msk.bf16.gmra.mxu0 %vm454_vm2, %v2723_v22 }
 0x28c   : > { %v2937_v35 = vadd.f32 %v4517_v6, %v2897_v44 }
 0x28d   : > { %v2227_v49 = vpop.f32.mrf.mxu2 }
 0x28e   : > { %v2973_v10 = vmax.f32 %v2937_v35, 0.0  ;;  %v2293_v13 = vadd.f32 %v2227_v49, %v1932_v37  ;;  %v1868_v16 = vpop.f32.mrf.mxu1 }
 0x28f   : > { %v1933_v56 = vadd.f32 %v1868_v16, %v4284_v46 }
 0x290   : > { %v3597_v26 = vpack.c.bf16 %v2973_v10, %v2972_v28  ;;  %v2834_v58 = vpop.f32.mrf.mxu0  ;;  %v2662_v62 = vadd.f32 %v4684_v0, %v2293_v13  ;;  %v2606_v36 = vpop.f32.mrf.mxu3  ;;  %v2725_v0 = vsel %vm2688_vm7, %v2722_v33, %v2724_v47 }
 0x292   : > { %3658 = vst [vmem:[%s4534_s16 + $0x38] sm:$0xff] %v3597_v26   ;;  %v2898_v34 = vadd.f32 %v2832_v17, %v2662_v62 }
 0x294   : > { %v2938_v12 = vadd.f32 %v4517_v6, %v2898_v34 }
 0x295   : > { %v2229_v9 = vpop.f32.mrf.mxu2 }
 0x296   : > { %v2294_v7 = vadd.f32 %v2229_v9, %v1933_v56  ;;  %v1871_v2 = vpop.f32.mrf.mxu1 }
 0x297   : > { %v1934_v61 = vadd.f32 %v1871_v2, %v4301_v14 }
 0x298   : > { %v2663_v4 = vadd.f32 %v2598_v48, %v2294_v7  ;;  %v2837_v39 = vpop.f32.mrf.mxu0  ;;  %v2608_v60 = vpop.f32.mrf.mxu3  ;;  %v2974_v48 = vmax.f32 %v2938_v12, 0.0 }
 0x299   : > { %3376 = vmatmul.msk.bf16.gmra.mxu1 %vm454_vm2, %v1759_v19 }
 0x29a   : > { %v2899_v20 = vadd.f32 %v2834_v58, %v2663_v4  ;;  %3463 = vmatmul.msk.bf16.gmra.mxu2 %vm454_vm2, %v2120_v18 }
 0x29b   : > { %3501 = vmatmul.msk.bf16.gmra.mxu0 %vm454_vm2, %v2725_v0 }
 0x29c   : > { %v2939_v46 = vadd.f32 %v4517_v6, %v2899_v20 }
 0x29d   : > { %v2232_v57 = vpop.f32.mrf.mxu2 }
 0x29e   : > { %v2975_v11 = vmax.f32 %v2939_v46, 0.0  ;;  %v2295_v51 = vadd.f32 %v2232_v57, %v1934_v61  ;;  %v1873_v33 = vpop.f32.mrf.mxu1 }
 0x29f   : > { %v1935_v17 = vadd.f32 %v1873_v33, %v4315_v21 }
 0x2a0   : > { %v3602_v41 = vpack.c.bf16 %v2975_v11, %v2974_v48  ;;  %v2839_v24 = vpop.f32.mrf.mxu0  ;;  %v2664_v54 = vadd.f32 %v2601_v42, %v2295_v51  ;;  %v2611_v31 = vpop.f32.mrf.mxu3 }
 0x2a2   : > { %3659 = vst [vmem:[%s4534_s16 + $0x40] sm:$0xff] %v3602_v41   ;;  %v2900_v27 = vadd.f32 %v2837_v39, %v2664_v54 }
 0x2a4   : > { %v2940_v37 = vadd.f32 %v4517_v6, %v2900_v27 }
 0x2a5   : > { %v2234_v22 = vpop.f32.mrf.mxu2 }
 0x2a6   : > { %v2296_v44 = vadd.f32 %v2234_v22, %v1935_v17  ;;  %v1876_v30 = vpop.f32.mrf.mxu1  ;;  %v2976_v16 = vmax.f32 %v2940_v37, 0.0 }
 0x2a7   : > { %v1936_v10 = vadd.f32 %v1876_v30, %v4325_v23 }
 0x2a8   : > { %v2665_v35 = vadd.f32 %v2603_v5, %v2296_v44  ;;  %v2842_v14 = vpop.f32.mrf.mxu0  ;;  %v2613_v26 = vpop.f32.mrf.mxu3 }
 0x2aa   : > { %v2901_v49 = vadd.f32 %v2839_v24, %v2665_v35 }
 0x2ac   : > { %v2941_v28 = vadd.f32 %v4517_v6, %v2901_v49 }
 0x2ad   : > { %v2237_v13 = vpop.f32.mrf.mxu2 }
 0x2ae   : > { %v2977_v42 = vmax.f32 %v2941_v28, 0.0  ;;  %v2297_v38 = vadd.f32 %v2237_v13, %v1936_v10  ;;  %v1878_v21 = vpop.f32.mrf.mxu1 }
 0x2af   : > { %v1937_v5 = vadd.f32 %v1878_v21, %v4339_v59 }
 0x2b0   : > { %v3607_v58 = vpack.c.bf16 %v2977_v42, %v2976_v16  ;;  %v2844_v62 = vpop.f32.mrf.mxu0  ;;  %v2666_v32 = vadd.f32 %v2606_v36, %v2297_v38  ;;  %v2616_v23 = vpop.f32.mrf.mxu3 }
 0x2b2   : > { %3660 = vst [vmem:[%s4534_s16 + $0x48] sm:$0xff] %v3607_v58   ;;  %v2902_v56 = vadd.f32 %v2842_v14, %v2666_v32 }
 0x2b4   : > { %v2942_v2 = vadd.f32 %v4517_v6, %v2902_v56 }
 0x2b5   : > { %v2239_v45 = vpop.f32.mrf.mxu2 }
 0x2b6   : > { %v2298_v47 = vadd.f32 %v2239_v45, %v1937_v5  ;;  %v1881_v9 = vpop.f32.mrf.mxu1  ;;  %v2978_v0 = vmax.f32 %v2942_v2, 0.0 }
 0x2b7   : > { %v1938_v4 = vadd.f32 %v1881_v9, %v4348_v43 }
 0x2b8   : > { %v2667_v34 = vadd.f32 %v2608_v60, %v2298_v47  ;;  %v2847_v7 = vpop.f32.mrf.mxu0  ;;  %v2618_v57 = vpop.f32.mrf.mxu3 }
 0x2ba   : > { %v2903_v19 = vadd.f32 %v2844_v62, %v2667_v34 }
 0x2bc   : > { %v2943_v18 = vadd.f32 %v4517_v6, %v2903_v19 }
 0x2bd   : > { %v2242_v39 = vpop.f32.mrf.mxu2 }
 0x2be   : > { %v2979_v36 = vmax.f32 %v2943_v18, 0.0  ;;  %v2299_v12 = vadd.f32 %v2242_v39, %v1938_v4  ;;  %v1883_v59 = vpop.f32.mrf.mxu1 }
 0x2bf   : > { %v1939_v60 = vadd.f32 %v1883_v59, %v4361_v25 }
 0x2c0   : > { %v3612_v20 = vpack.c.bf16 %v2979_v36, %v2978_v0  ;;  %v2849_v46 = vpop.f32.mrf.mxu0  ;;  %v2668_v61 = vadd.f32 %v2611_v31, %v2299_v12  ;;  %v2621_v44 = vpop.f32.mrf.mxu3 }
 0x2c2   : > { %3661 = vst [vmem:[%s4534_s16 + $0x50] sm:$0xff] %v3612_v20   ;;  %v2904_v11 = vadd.f32 %v2847_v7, %v2668_v61 }
 0x2c4   : > { %v2944_v43 = vadd.f32 %v4517_v6, %v2904_v11 }
 0x2c5   : > { %v2244_v48 = vpop.f32.mrf.mxu2 }
 0x2c6   : > { %v2300_v51 = vadd.f32 %v2244_v48, %v1939_v60  ;;  %v1886_v33 = vpop.f32.mrf.mxu1  ;;  %v2980_v31 = vmax.f32 %v2944_v43, 0.0 }
 0x2c7   : > { %v1940_v22 = vadd.f32 %v1886_v33, %v4370_v8 }
 0x2c8   : > { %v2669_v41 = vadd.f32 %v2613_v26, %v2300_v51  ;;  %v2852_v24 = vpop.f32.mrf.mxu0  ;;  %v2623_v38 = vpop.f32.mrf.mxu3 }
 0x2ca   : > { %v2905_v54 = vadd.f32 %v2849_v46, %v2669_v41 }
 0x2cc   : > { %v2945_v17 = vadd.f32 %v4517_v6, %v2905_v54 }
 0x2cd   : > { %v2247_v27 = vpop.f32.mrf.mxu2 }
 0x2ce   : > { %v2981_v30 = vmax.f32 %v2945_v17, 0.0  ;;  %v2301_v35 = vadd.f32 %v2247_v27, %v1940_v22  ;;  %v1888_v25 = vpop.f32.mrf.mxu1 }
 0x2cf   : > { %v1941_v28 = vadd.f32 %v1888_v25, %v4383_v50 }
 0x2d0   : > { %v3617_v14 = vpack.c.bf16 %v2981_v30, %v2980_v31  ;;  %v2854_v37 = vpop.f32.mrf.mxu0  ;;  %v2670_v49 = vadd.f32 %v2616_v23, %v2301_v35  ;;  %v2626_v7 = vpop.f32.mrf.mxu3 }
 0x2d2   : > { %3662 = vst [vmem:[%s4534_s16 + $0x58] sm:$0xff] %v3617_v14   ;;  %v2906_v13 = vadd.f32 %v2852_v24, %v2670_v49 }
 0x2d4   : > { %v2946_v26 = vadd.f32 %v4517_v6, %v2906_v13 }
 0x2d5   : > { %v2249_v10 = vpop.f32.mrf.mxu2 }
 0x2d6   : > { %v2302_v16 = vadd.f32 %v2249_v10, %v1941_v28  ;;  %v1891_v42 = vpop.f32.mrf.mxu1  ;;  %v2982_v45 = vmax.f32 %v2946_v26, 0.0 }
 0x2d7   : > { %v1942_v32 = vadd.f32 %v1891_v42, %v4392_v29 }
 0x2d8   : > { %v2671_v21 = vadd.f32 %v2618_v57, %v2302_v16  ;;  %v2857_v8 = vpop.f32.mrf.mxu0  ;;  %v2628_v59 = vpop.f32.mrf.mxu3 }
 0x2da   : > { %v2907_v58 = vadd.f32 %v2854_v37, %v2671_v21 }
 0x2dc   : > { %v2947_v62 = vadd.f32 %v4517_v6, %v2907_v58 }
 0x2dd   : > { %v2252_v5 = vpop.f32.mrf.mxu2 }
 0x2de   : > { %v2983_v56 = vmax.f32 %v2947_v62, 0.0  ;;  %v2303_v47 = vadd.f32 %v2252_v5, %v1942_v32  ;;  %v1893_v50 = vpop.f32.mrf.mxu1 }
 0x2df   : > { %v1943_v2 = vadd.f32 %v1893_v50, %v4405_v15 }
 0x2e0   : > { %v3622_v9 = vpack.c.bf16 %v2983_v56, %v2982_v45  ;;  %v2859_v34 = vpop.f32.mrf.mxu0  ;;  %v2672_v23 = vadd.f32 %v2621_v44, %v2303_v47  ;;  %v2631_v43 = vpop.f32.mrf.mxu3 }
 0x2e2   : > { %3663 = vst [vmem:[%s4534_s16 + $0x60] sm:$0xff] %v3622_v9   ;;  %v2908_v18 = vadd.f32 %v2857_v8, %v2672_v23 }
 0x2e4   : > { %v2948_v29 = vadd.f32 %v4517_v6, %v2908_v18 }
 0x2e5   : > { %v2254_v19 = vpop.f32.mrf.mxu2 }
 0x2e6   : > { %v2304_v4 = vadd.f32 %v2254_v19, %v1943_v2  ;;  %v1896_v39 = vpop.f32.mrf.mxu1  ;;  %v2984_v57 = vmax.f32 %v2948_v29, 0.0 }
 0x2e7   : > { %v1944_v46 = vadd.f32 %v1896_v39, %v4414_v52 }
 0x2e8   : > { %v2673_v0 = vadd.f32 %v2623_v38, %v2304_v4  ;;  %v2862_v36 = vpop.f32.mrf.mxu0  ;;  %v2633_v28 = vpop.f32.mrf.mxu3 }
 0x2ea   : > { %v2909_v12 = vadd.f32 %v2859_v34, %v2673_v0 }
 0x2ec   : > { %v2949_v20 = vadd.f32 %v4517_v6, %v2909_v12 }
 0x2ed   : > { %v2257_v61 = vpop.f32.mrf.mxu2 }
 0x2ee   : > { %v2985_v60 = vmax.f32 %v2949_v20, 0.0  ;;  %v2305_v48 = vadd.f32 %v2257_v61, %v1944_v46  ;;  %v1898_v15 = vpop.f32.mrf.mxu1 }
 0x2ef   : > { %v1945_v41 = vadd.f32 %v1898_v15, %v4427_v55 }
 0x2f0   : > { %v3627_v11 = vpack.c.bf16 %v2985_v60, %v2984_v57  ;;  %v2864_v51 = vpop.f32.mrf.mxu0  ;;  %v2674_v33 = vadd.f32 %v2626_v7, %v2305_v48  ;;  %v2636_v62 = vpop.f32.mrf.mxu3 }
 0x2f2   : > { %3664 = vst [vmem:[%s4534_s16 + $0x68] sm:$0xff] %v3627_v11   ;;  %v2910_v54 = vadd.f32 %v2862_v36, %v2674_v33  ;;  %v4807_v33 = vld [vmem:[#allocation8_spill] sm:$0xff] }
 0x2f4   : > { %v2950_v52 = vadd.f32 %v4517_v6, %v2910_v54 }
 0x2f5   : > { %v2259_v24 = vpop.f32.mrf.mxu2 }
 0x2f6   : > { %v2306_v17 = vadd.f32 %v2259_v24, %v1945_v41  ;;  %v1901_v22 = vpop.f32.mrf.mxu1  ;;  %v2986_v14 = vmax.f32 %v2950_v52, 0.0 }
 0x2f7   : > { %v1946_v35 = vadd.f32 %v1901_v22, %v4436_v3 }
 0x2f8   : > { %v2675_v27 = vadd.f32 %v2628_v59, %v2306_v17  ;;  %v2867_v44 = vpop.f32.mrf.mxu0  ;;  %v2638_v2 = vpop.f32.mrf.mxu3 }
 0x2fa   : > { %v2911_v31 = vadd.f32 %v2864_v51, %v2675_v27 }
 0x2fc   : > { %v2951_v30 = vadd.f32 %v4517_v6, %v2911_v31 }
 0x2fd   : > { %v2262_v25 = vpop.f32.mrf.mxu2 }
 0x2fe   : > { %v2987_v37 = vmax.f32 %v2951_v30, 0.0  ;;  %v2307_v49 = vadd.f32 %v2262_v25, %v1946_v35  ;;  %v1903_v55 = vpop.f32.mrf.mxu1 }
 0x2ff   : > { %v1947_v42 = vadd.f32 %v1903_v55, %v4449_v63 }
 0x300   : > { %v3632_v10 = vpack.c.bf16 %v2987_v37, %v2986_v14  ;;  %v2869_v13 = vpop.f32.mrf.mxu0  ;;  %v2676_v16 = vadd.f32 %v2631_v43, %v2307_v49  ;;  %v2641_v46 = vpop.f32.mrf.mxu3 }
 0x302   : > { %3665 = vst [vmem:[%s4534_s16 + $0x70] sm:$0xff] %v3632_v10   ;;  %v2912_v21 = vadd.f32 %v2867_v44, %v2676_v16 }
 0x304   : > { %v2952_v3 = vadd.f32 %v4517_v6, %v2912_v21 }
 0x305   : > { %v2264_v38 = vpop.f32.mrf.mxu2 }
 0x306   : > { %v2308_v8 = vadd.f32 %v2264_v38, %v1947_v42  ;;  %v1906_v26 = vpop.f32.mrf.mxu1  ;;  %v2988_v50 = vmax.f32 %v2952_v3, 0.0 }
 0x307   : > { %v1948_v56 = vadd.f32 %v1906_v26, %v4458_v53 }
 0x308   : > { %v2677_v58 = vadd.f32 %v2633_v28, %v2308_v8  ;;  %v2872_v5 = vpop.f32.mrf.mxu0  ;;  %v2643_v17 = vpop.f32.mrf.mxu3 }
 0x30a   : > { %v2913_v32 = vadd.f32 %v2869_v13, %v2677_v58 }
 0x30c   : > { %v2953_v45 = vadd.f32 %v4517_v6, %v2913_v32 }
 0x30d   : > { %v2267_v47 = vpop.f32.mrf.mxu2 }
 0x30e   : > { %v2989_v9 = vmax.f32 %v2953_v45, 0.0  ;;  %v2309_v34 = vadd.f32 %v2267_v47, %v1948_v56  ;;  %v1908_v63 = vpop.f32.mrf.mxu1 }
 0x30f   : > { %v1949_v19 = vadd.f32 %v1908_v63, %v4471_v1 }
 0x310   : > { %v3637_v7 = vpack.c.bf16 %v2989_v9, %v2988_v50  ;;  %v2678_v23 = vadd.f32 %v2636_v62, %v2309_v34  ;;  %v2874_v18 = vpop.f32.mrf.mxu0 }
 0x312   : > { %3666 = vst [vmem:[%s4534_s16 + $0x78] sm:$0xff] %v3637_v7   ;;  %v2914_v39 = vadd.f32 %v2872_v5, %v2678_v23 }
 0x314   : > { %v2954_v53 = vadd.f32 %v4517_v6, %v2914_v39 }
 0x315   : > { %v2269_v4 = vpop.f32.mrf.mxu2 }
 0x316   : > { %v2310_v0 = vadd.f32 %v2269_v4, %v1949_v19  ;;  %v1911_v36 = vpop.f32.mrf.mxu1  ;;  %v2990_v57 = vmax.f32 %v2954_v53, 0.0 }
 0x317   : > { %v1950_v20 = vadd.f32 %v1911_v36, %v4480_v40  ;;  %v3703_v40 = vld [vmem:[%s4780_s2] ss:$0 sm:$0xff] }
 0x318   : > { %v2679_v29 = vadd.f32 %v2638_v2, %v2310_v0  ;;  %v2877_v1 = vpop.f32.mrf.mxu0 }
 0x31a   : > { %v2915_v12 = vadd.f32 %v2874_v18, %v2679_v29 }
 0x31c   : > { %v2955_v59 = vadd.f32 %v4517_v6, %v2915_v12 }
 0x31d   : > { %v2272_v61 = vpop.f32.mrf.mxu2 }
 0x31e   : > { %v2991_v60 = vmax.f32 %v2955_v59, 0.0  ;;  %v2311_v48 = vadd.f32 %v2272_v61, %v1950_v20  ;;  %v1913_v11 = vpop.f32.mrf.mxu1 }
 0x31f   : > { %v1951_v41 = vadd.f32 %v1913_v11, %v4807_v33 }
 0x320   : > { %v3642_v15 = vpack.c.bf16 %v2991_v60, %v2990_v57  ;;  %v2680_v51 = vadd.f32 %v2641_v46, %v2311_v48  ;;  %v2879_v22 = vpop.f32.mrf.mxu0 }
 0x322   : > { %3667 = vst [vmem:[%s4534_s16 + $0x80] sm:$0xff] %v3642_v15   ;;  %v2916_v43 = vadd.f32 %v2877_v1, %v2680_v51 }
 0x324   : > { %v2956_v27 = vadd.f32 %v3703_v40, %v2916_v43 }
 0x325   : > { %v2274_v24 = vpop.f32.mrf.mxu2 }
 0x326   : > { %v2312_v54 = vadd.f32 %v2274_v24, %v1951_v41  ;;  %v2992_v31 = vmax.f32 %v2956_v27, 0.0 }
 0x328   : > { %v2681_v6 = vadd.f32 %v2643_v17, %v2312_v54 }
 0x32a   : > { %v2917_v44 = vadd.f32 %v2879_v22, %v2681_v6 }
 0x32c   : > { %v2957_v52 = vadd.f32 %v3703_v40, %v2917_v44 }
 0x32e   : > { %v2993_v30 = vmax.f32 %v2957_v52, 0.0 }
 0x330   : > { %v3647_v35 = vpack.c.bf16 %v2993_v30, %v2992_v31 }
 0x332   : > { %3668 = vst [vmem:[%s4534_s16 + $0x88] sm:$0xff] %v3647_v35  }
 0x333 PF: > { %s13_s12 = sadd.s32 1, %s3710_s12  }
 0x334   : > { %p10_p4 = scmp.ge.s32.totalorder %s13_s12, 18  }
 0x336   :  { %12 = sbr.rel (!%p10_p4) target bundleno = 1 (0x1), region = 70 }

</bundles_post_ra>
